<compile_context>
chip_gen: v7x
topology: tpu7x:2x2x1
jax: 0.10.0
libtpu: 0.0.40
codegen_flags: <defaults>
</compile_context>

<pallas_src>
import jax
import jax.numpy as jnp
from jax import lax
from jax.experimental import pallas as pl
from jax.experimental.pallas import tpu as pltpu


# ----------------------------- configuration ------------------------------ #
CONFIG = {
    "embed_dim": 8,
    "hidden_layers": [32, 16],   # WideDeep.__init__ inserts the input dim at 0
    "deep_dropout": 0.0,
}
DENSE_FEATURES = [f"d{i}" for i in range(8)]            # 8 dense features
SPARSE_FEATURES_COLS = [10, 20, 30, 40]                 # vocab sizes, 4 sparse cols

NUM_DENSE = len(DENSE_FEATURES)
NUM_SPARSE = len(SPARSE_FEATURES_COLS)
EMBED_DIM = CONFIG["embed_dim"]
DEEP_IN = NUM_DENSE + EMBED_DIM * NUM_SPARSE            # 8 + 8*4 = 40
HIDDEN = [DEEP_IN] + CONFIG["hidden_layers"]            # [40, 32, 16]
NFEAT = NUM_DENSE + NUM_SPARSE                          # 12 raw input columns

TILE_B = 512        # batch rows per grid step (multiple of 8; 512-2048 is the
                    # HBM-roofline sweet spot; VMEM use per step is ~0.5 MiB so
                    # this also fits v7x's smaller 64 MiB VMEM comfortably)
HEAD_PAD = 8        # pad 1-row head matmuls to 8 rows (sublane granularity)


def _dot_t(a, b):
    """a[M, K] . b[N, K] -> [M, N] (contraction on the last dim of both)."""
    return lax.dot_general(a, b, (((1,), (1,)), ((), ())),
                           preferred_element_type=jnp.float32)


# ------------------------------- the kernel -------------------------------- #
def widedeep_kernel(
    x_ref,       # [TILE_B, NFEAT]       f32  (dense cols ++ sparse-index cols)
    w1d_ref,     # [H1, NUM_DENSE]       f32  (dense slice of W1, transposed)
    t0_ref,      # [H1, vocab0]          f32  (table0 @ W1[0:8], transposed)
    t1_ref,      # [H1, vocab1]
    t2_ref,      # [H1, vocab2]
    t3_ref,      # [H1, vocab3]
    b1_ref,      # [H1, 1]
    w2_ref,      # [H2, H1]
    b2_ref,      # [H2, 1]
    hwd_ref,     # [HEAD_PAD, H2]        (row 0 = wf^T, rest zero)
    hww_ref,     # [HEAD_PAD, NUM_DENSE] (row 0 = w_wide^T, rest zero)
    hb_ref,      # [1, 1]                (bf + b_wide)
    out_ref,     # [1, 1, TILE_B]
):
    x = x_ref[...]                                   # [TILE_B, 12]
    dense = x[:, :NUM_DENSE]                         # [TILE_B, 8]
    idx = x[:, NUM_DENSE:].astype(jnp.int32)         # [TILE_B, 4]  (.long() in torch)

    # ---- deep layer 1, feature-major: h1 = relu(W1^T @ deep_input^T + b1) ----
    # dense contribution
    acc = _dot_t(w1d_ref[...], dense)                # [H1, TILE_B]
    # in-kernel embedding "gather": one-hot matmul against pre-folded tables
    tfold_refs = (t0_ref, t1_ref, t2_ref, t3_ref)
    for i, (tref, vocab) in enumerate(zip(tfold_refs, SPARSE_FEATURES_COLS)):
        lanes = lax.broadcasted_iota(jnp.int32, (TILE_B, vocab), 1)
        onehot = (idx[:, i:i + 1] == lanes).astype(jnp.float32)   # [TILE_B, vocab]
        acc = acc + _dot_t(tref[...], onehot)        # [H1, TILE_B]
    h1 = jnp.maximum(acc + b1_ref[...], 0.0)         # [H1, TILE_B]

    # ---- deep layer 2 ----
    h2 = jnp.maximum(
        jnp.dot(w2_ref[...], h1, preferred_element_type=jnp.float32) + b2_ref[...],
        0.0,
    )                                                # [H2, TILE_B]

    # ---- fused head: sigmoid(0.5 * (wide_out + deep_out)) ----
    head = (jnp.dot(hwd_ref[...], h2, preferred_element_type=jnp.float32)
            + _dot_t(hww_ref[...], dense))           # [HEAD_PAD, TILE_B]
    logit = head[0:1, :] + hb_ref[...]               # [1, TILE_B]
    out_ref[0] = jax.nn.sigmoid(0.5 * logit)         # lane-dense store


# ------------------------------ Pallas wrapper ------------------------------ #
def widedeep_pallas(x, kp):
    """x: [B, NFEAT] f32 (dense ++ sparse-index columns).  Returns [B, 1]."""
    batch = x.shape[0]
    b_pad = pl.cdiv(batch, TILE_B) * TILE_B
    if b_pad != batch:
        x = jnp.pad(x, ((0, b_pad - batch), (0, 0)))     # padded rows sliced off below
    grid_b = b_pad // TILE_B

    weights = (kp["w1d_t"], *kp["tfold_t"], kp["b1_col"], kp["w2_t"], kp["b2_col"],
               kp["head_w_deep"], kp["head_w_wide"], kp["head_b"])

    in_specs = [pl.BlockSpec((TILE_B, NFEAT), lambda i: (i, 0))]          # streamed
    in_specs += [pl.BlockSpec(w.shape, lambda i: (0, 0)) for w in weights]  # resident

    out = pl.pallas_call(
        widedeep_kernel,
        out_shape=jax.ShapeDtypeStruct((grid_b, 1, TILE_B), jnp.float32),
        grid=(grid_b,),
        in_specs=in_specs,
        out_specs=pl.BlockSpec((1, 1, TILE_B), lambda i: (i, 0, 0)),
        compiler_params=pltpu.CompilerParams(dimension_semantics=("parallel",)),
    )(x, *weights)

    return out.reshape(b_pad, 1)[:batch]


# ------------------------------ JAX-side glue ------------------------------ #
def init_params(key):
    """Deterministic synthetic parameters in PyTorch-equivalent layout
    (Linear weights stored as [in, out]); values synthetic, not a checkpoint."""
    keys = jax.random.split(key, 8 + NUM_SPARSE)
    params = {}
    params["embeddings"] = [
        0.1 * jax.random.normal(keys[i], (vocab, EMBED_DIM), jnp.float32)
        for i, vocab in enumerate(SPARSE_FEATURES_COLS)
    ]
    k = NUM_SPARSE
    params["w_wide"] = 0.1 * jax.random.normal(keys[k + 0], (NUM_DENSE, 1), jnp.float32)
    params["b_wide"] = 0.1 * jax.random.normal(keys[k + 1], (1, 1), jnp.float32)
    params["w1"] = 0.1 * jax.random.normal(keys[k + 2], (HIDDEN[0], HIDDEN[1]), jnp.float32)
    params["b1"] = 0.1 * jax.random.normal(keys[k + 3], (1, HIDDEN[1]), jnp.float32)
    params["w2"] = 0.1 * jax.random.normal(keys[k + 4], (HIDDEN[1], HIDDEN[2]), jnp.float32)
    params["b2"] = 0.1 * jax.random.normal(keys[k + 5], (1, HIDDEN[2]), jnp.float32)
    params["wf"] = 0.1 * jax.random.normal(keys[k + 6], (HIDDEN[2], 1), jnp.float32)
    params["bf"] = 0.1 * jax.random.normal(keys[k + 7], (1, 1), jnp.float32)
    return params


def prepare_kernel_params(params):
    """One-time (init-time) re-parameterisation for the kernel.  Mathematically
    identical to the PyTorch forward: embedding tables are folded with the
    matching rows of W1 (gather commutes with the first matmul), wide/final
    biases are combined, head weights are transposed + padded to 8 rows."""
    w1 = params["w1"]                                        # [DEEP_IN, H1]
    tfold_t = []
    for i in range(NUM_SPARSE):
        w1_slice = w1[i * EMBED_DIM:(i + 1) * EMBED_DIM, :]  # [8, H1]
        tfold_t.append((params["embeddings"][i] @ w1_slice).T)   # [H1, vocab_i]
    w1d_t = w1[NUM_SPARSE * EMBED_DIM:, :].T                 # [H1, 8]

    head_w_deep = jnp.zeros((HEAD_PAD, HIDDEN[2]), jnp.float32)
    head_w_deep = head_w_deep.at[0, :].set(params["wf"][:, 0])
    head_w_wide = jnp.zeros((HEAD_PAD, NUM_DENSE), jnp.float32)
    head_w_wide = head_w_wide.at[0, :].set(params["w_wide"][:, 0])

    return {
        "w1d_t": w1d_t,
        "tfold_t": tuple(tfold_t),
        "b1_col": params["b1"].reshape(HIDDEN[1], 1),
        "w2_t": params["w2"].T,
        "b2_col": params["b2"].reshape(HIDDEN[2], 1),
        "head_w_deep": head_w_deep,
        "head_w_wide": head_w_wide,
        "head_b": params["bf"] + params["b_wide"],           # [1, 1]
    }


def wide_deep_forward(x, kernel_params):
    """Mirrors WideDeep.forward: x = [dense cols | sparse index cols]."""
    return widedeep_pallas(x.astype(jnp.float32), kernel_params)


# ------------------------------ reference impl ----------------------------- #
def wide_deep_reference(x, params):
    dense_input = x[:, :NUM_DENSE].astype(jnp.float32)
    sparse_input = x[:, NUM_DENSE:].astype(jnp.int32)
    sparse_embeds = jnp.concatenate(
        [jnp.take(params["embeddings"][i], sparse_input[:, i], axis=0)
         for i in range(NUM_SPARSE)], axis=-1)
    deep_input = jnp.concatenate([sparse_embeds, dense_input], axis=-1)

    wide_out = dense_input @ params["w_wide"] + params["b_wide"]
    h = jnp.maximum(deep_input @ params["w1"] + params["b1"], 0.0)
    h = jnp.maximum(h @ params["w2"] + params["b2"], 0.0)
    deep_out = h @ params["wf"] + params["bf"]
    return jax.nn.sigmoid(0.5 * (wide_out + deep_out))


# ----------------------------------- main ---------------------------------- #
if __name__ == "__main__":
    key = jax.random.PRNGKey(0)
    k_params, k_dense, k_sparse = jax.random.split(key, 3)

    params = init_params(k_params)
    kp = prepare_kernel_params(params)

    batch = 600    # exercises batch padding (-> 1024) and a 2-step batch grid
    dense_part = jax.random.normal(k_dense, (batch, NUM_DENSE), jnp.float32)
    sparse_idx = jnp.stack(
        [jax.random.randint(jax.random.fold_in(k_sparse, i), (batch,), 0, vocab)
         for i, vocab in enumerate(SPARSE_FEATURES_COLS)],
        axis=1,
    ).astype(jnp.float32)                       # indices ride in x as floats, like torch
    x = jnp.concatenate([dense_part, sparse_idx], axis=1)   # [batch, 12]

    out = wide_deep_forward(x, kp)
    out = jax.block_until_ready(out)

    ref = wide_deep_reference(x, params)
    assert out.shape == (batch, 1)
    assert jnp.allclose(out, ref, atol=1e-5, rtol=1e-5), (out, ref)

    print("KERNEL_OK")
</pallas_src>

<mosaic_0001>
module attributes {stable_mosaic.version = 11 : i64} {
  func.func @widedeep_kernel(%arg0: i32, %arg1: memref<512x12xf32, #tpu.memory_space<vmem>>, %arg2: memref<32x8xf32, #tpu.memory_space<vmem>>, %arg3: memref<32x10xf32, #tpu.memory_space<vmem>>, %arg4: memref<32x20xf32, #tpu.memory_space<vmem>>, %arg5: memref<32x30xf32, #tpu.memory_space<vmem>>, %arg6: memref<32x40xf32, #tpu.memory_space<vmem>>, %arg7: memref<32x1xf32, #tpu.memory_space<vmem>>, %arg8: memref<16x32xf32, #tpu.memory_space<vmem>>, %arg9: memref<16x1xf32, #tpu.memory_space<vmem>>, %arg10: memref<8x16xf32, #tpu.memory_space<vmem>>, %arg11: memref<8x8xf32, #tpu.memory_space<vmem>>, %arg12: memref<1x1xf32, #tpu.memory_space<vmem>>, %arg13: memref<1x1x512xf32, #tpu.memory_space<vmem>>) attributes {dimension_semantics = [#tpu.dimension_semantics<parallel>], iteration_bounds = array<i64: 2>, scalar_prefetch = 0 : i64, scratch_operands = 0 : i64, tpu.core_type = #tpu.core_type<tc>, window_params = [{transform_indices = @transform_0, window_bounds = array<i64: 512, 12>}, {pipeline_mode = #tpu.pipeline_mode<synchronous>, transform_indices = @transform_1, window_bounds = array<i64: 32, 8>}, {pipeline_mode = #tpu.pipeline_mode<synchronous>, transform_indices = @transform_2, window_bounds = array<i64: 32, 10>}, {pipeline_mode = #tpu.pipeline_mode<synchronous>, transform_indices = @transform_3, window_bounds = array<i64: 32, 20>}, {pipeline_mode = #tpu.pipeline_mode<synchronous>, transform_indices = @transform_4, window_bounds = array<i64: 32, 30>}, {pipeline_mode = #tpu.pipeline_mode<synchronous>, transform_indices = @transform_5, window_bounds = array<i64: 32, 40>}, {pipeline_mode = #tpu.pipeline_mode<synchronous>, transform_indices = @transform_6, window_bounds = array<i64: 32, 1>}, {pipeline_mode = #tpu.pipeline_mode<synchronous>, transform_indices = @transform_7, window_bounds = array<i64: 16, 32>}, {pipeline_mode = #tpu.pipeline_mode<synchronous>, transform_indices = @transform_8, window_bounds = array<i64: 16, 1>}, {pipeline_mode = #tpu.pipeline_mode<synchronous>, transform_indices = @transform_9, window_bounds = array<i64: 8, 16>}, {pipeline_mode = #tpu.pipeline_mode<synchronous>, transform_indices = @transform_10, window_bounds = array<i64: 8, 8>}, {pipeline_mode = #tpu.pipeline_mode<synchronous>, transform_indices = @transform_11, window_bounds = array<i64: 1, 1>}, {transform_indices = @transform_12, window_bounds = array<i64: 1, 1, 512>}]} {
    %c0 = arith.constant 0 : index
    %c0_0 = arith.constant 0 : index
    %0 = vector.load %arg1[%c0, %c0_0] : memref<512x12xf32, #tpu.memory_space<vmem>>, vector<512x12xf32>
    %1 = vector.extract_strided_slice %0 {offsets = [0, 0], sizes = [512, 8], strides = [1, 1]} : vector<512x12xf32> to vector<512x8xf32>
    %2 = vector.extract_strided_slice %0 {offsets = [0, 8], sizes = [512, 4], strides = [1, 1]} : vector<512x12xf32> to vector<512x4xf32>
    %3 = arith.fptosi %2 : vector<512x4xf32> to vector<512x4xi32>
    %c0_1 = arith.constant 0 : index
    %c0_2 = arith.constant 0 : index
    %4 = vector.load %arg2[%c0_1, %c0_2] : memref<32x8xf32, #tpu.memory_space<vmem>>, vector<32x8xf32>
    %cst = arith.constant dense<0.000000e+00> : vector<32x512xf32>
    %5 = tpu.matmul %4, %1, %cst {dimension_numbers = #tpu.dot_dimension_numbers<[1], [1], [0], [0], [0, 0, 1, 0], [], []>} : vector<32x8xf32>, vector<512x8xf32>, vector<32x512xf32> -> vector<32x512xf32>
    %6 = tpu.iota {dimensions = array<i32: 1>} : vector<512x10xi32>
    %7 = vector.extract_strided_slice %3 {offsets = [0, 0], sizes = [512, 1], strides = [1, 1]} : vector<512x4xi32> to vector<512x1xi32>
    %8 = vector.broadcast %7 : vector<512x1xi32> to vector<512x10xi32>
    %9 = arith.cmpi eq, %8, %6 : vector<512x10xi32>
    %10 = arith.extui %9 : vector<512x10xi1> to vector<512x10xi32>
    %11 = arith.sitofp %10 : vector<512x10xi32> to vector<512x10xf32>
    %c0_3 = arith.constant 0 : index
    %c0_4 = arith.constant 0 : index
    %12 = vector.load %arg3[%c0_3, %c0_4] : memref<32x10xf32, #tpu.memory_space<vmem>>, vector<32x10xf32>
    %cst_5 = arith.constant dense<0.000000e+00> : vector<32x512xf32>
    %13 = tpu.matmul %12, %11, %cst_5 {dimension_numbers = #tpu.dot_dimension_numbers<[1], [1], [0], [0], [0, 0, 1, 0], [], []>} : vector<32x10xf32>, vector<512x10xf32>, vector<32x512xf32> -> vector<32x512xf32>
    %14 = arith.addf %5, %13 : vector<32x512xf32>
    %15 = tpu.iota {dimensions = array<i32: 1>} : vector<512x20xi32>
    %16 = vector.extract_strided_slice %3 {offsets = [0, 1], sizes = [512, 1], strides = [1, 1]} : vector<512x4xi32> to vector<512x1xi32>
    %17 = vector.broadcast %16 : vector<512x1xi32> to vector<512x20xi32>
    %18 = arith.cmpi eq, %17, %15 : vector<512x20xi32>
    %19 = arith.extui %18 : vector<512x20xi1> to vector<512x20xi32>
    %20 = arith.sitofp %19 : vector<512x20xi32> to vector<512x20xf32>
    %c0_6 = arith.constant 0 : index
    %c0_7 = arith.constant 0 : index
    %21 = vector.load %arg4[%c0_6, %c0_7] : memref<32x20xf32, #tpu.memory_space<vmem>>, vector<32x20xf32>
    %cst_8 = arith.constant dense<0.000000e+00> : vector<32x512xf32>
    %22 = tpu.matmul %21, %20, %cst_8 {dimension_numbers = #tpu.dot_dimension_numbers<[1], [1], [0], [0], [0, 0, 1, 0], [], []>} : vector<32x20xf32>, vector<512x20xf32>, vector<32x512xf32> -> vector<32x512xf32>
    %23 = arith.addf %14, %22 : vector<32x512xf32>
    %24 = tpu.iota {dimensions = array<i32: 1>} : vector<512x30xi32>
    %25 = vector.extract_strided_slice %3 {offsets = [0, 2], sizes = [512, 1], strides = [1, 1]} : vector<512x4xi32> to vector<512x1xi32>
    %26 = vector.broadcast %25 : vector<512x1xi32> to vector<512x30xi32>
    %27 = arith.cmpi eq, %26, %24 : vector<512x30xi32>
    %28 = arith.extui %27 : vector<512x30xi1> to vector<512x30xi32>
    %29 = arith.sitofp %28 : vector<512x30xi32> to vector<512x30xf32>
    %c0_9 = arith.constant 0 : index
    %c0_10 = arith.constant 0 : index
    %30 = vector.load %arg5[%c0_9, %c0_10] : memref<32x30xf32, #tpu.memory_space<vmem>>, vector<32x30xf32>
    %cst_11 = arith.constant dense<0.000000e+00> : vector<32x512xf32>
    %31 = tpu.matmul %30, %29, %cst_11 {dimension_numbers = #tpu.dot_dimension_numbers<[1], [1], [0], [0], [0, 0, 1, 0], [], []>} : vector<32x30xf32>, vector<512x30xf32>, vector<32x512xf32> -> vector<32x512xf32>
    %32 = arith.addf %23, %31 : vector<32x512xf32>
    %33 = tpu.iota {dimensions = array<i32: 1>} : vector<512x40xi32>
    %34 = vector.extract_strided_slice %3 {offsets = [0, 3], sizes = [512, 1], strides = [1, 1]} : vector<512x4xi32> to vector<512x1xi32>
    %35 = vector.broadcast %34 : vector<512x1xi32> to vector<512x40xi32>
    %36 = arith.cmpi eq, %35, %33 : vector<512x40xi32>
    %37 = arith.extui %36 : vector<512x40xi1> to vector<512x40xi32>
    %38 = arith.sitofp %37 : vector<512x40xi32> to vector<512x40xf32>
    %c0_12 = arith.constant 0 : index
    %c0_13 = arith.constant 0 : index
    %39 = vector.load %arg6[%c0_12, %c0_13] : memref<32x40xf32, #tpu.memory_space<vmem>>, vector<32x40xf32>
    %cst_14 = arith.constant dense<0.000000e+00> : vector<32x512xf32>
    %40 = tpu.matmul %39, %38, %cst_14 {dimension_numbers = #tpu.dot_dimension_numbers<[1], [1], [0], [0], [0, 0, 1, 0], [], []>} : vector<32x40xf32>, vector<512x40xf32>, vector<32x512xf32> -> vector<32x512xf32>
    %41 = arith.addf %32, %40 : vector<32x512xf32>
    %c0_15 = arith.constant 0 : index
    %c0_16 = arith.constant 0 : index
    %42 = vector.load %arg7[%c0_15, %c0_16] : memref<32x1xf32, #tpu.memory_space<vmem>>, vector<32x1xf32>
    %43 = vector.broadcast %42 : vector<32x1xf32> to vector<32x512xf32>
    %44 = arith.addf %41, %43 : vector<32x512xf32>
    %cst_17 = arith.constant 0.000000e+00 : f32
    %45 = vector.broadcast %cst_17 : f32 to vector<32x512xf32>
    %46 = arith.maximumf %44, %45 : vector<32x512xf32>
    %c0_18 = arith.constant 0 : index
    %c0_19 = arith.constant 0 : index
    %47 = vector.load %arg8[%c0_18, %c0_19] : memref<16x32xf32, #tpu.memory_space<vmem>>, vector<16x32xf32>
    %cst_20 = arith.constant dense<0.000000e+00> : vector<16x512xf32>
    %48 = tpu.matmul %47, %46, %cst_20 {dimension_numbers = #tpu.dot_dimension_numbers<[1], [0], [0], [1], [0, 0, 1, 1], [], []>} : vector<16x32xf32>, vector<32x512xf32>, vector<16x512xf32> -> vector<16x512xf32>
    %c0_21 = arith.constant 0 : index
    %c0_22 = arith.constant 0 : index
    %49 = vector.load %arg9[%c0_21, %c0_22] : memref<16x1xf32, #tpu.memory_space<vmem>>, vector<16x1xf32>
    %50 = vector.broadcast %49 : vector<16x1xf32> to vector<16x512xf32>
    %51 = arith.addf %48, %50 : vector<16x512xf32>
    %cst_23 = arith.constant 0.000000e+00 : f32
    %52 = vector.broadcast %cst_23 : f32 to vector<16x512xf32>
    %53 = arith.maximumf %51, %52 : vector<16x512xf32>
    %c0_24 = arith.constant 0 : index
    %c0_25 = arith.constant 0 : index
    %54 = vector.load %arg10[%c0_24, %c0_25] : memref<8x16xf32, #tpu.memory_space<vmem>>, vector<8x16xf32>
    %cst_26 = arith.constant dense<0.000000e+00> : vector<8x512xf32>
    %55 = tpu.matmul %54, %53, %cst_26 {dimension_numbers = #tpu.dot_dimension_numbers<[1], [0], [0], [1], [0, 0, 1, 1], [], []>} : vector<8x16xf32>, vector<16x512xf32>, vector<8x512xf32> -> vector<8x512xf32>
    %c0_27 = arith.constant 0 : index
    %c0_28 = arith.constant 0 : index
    %56 = vector.load %arg11[%c0_27, %c0_28] : memref<8x8xf32, #tpu.memory_space<vmem>>, vector<8x8xf32>
    %cst_29 = arith.constant dense<0.000000e+00> : vector<8x512xf32>
    %57 = tpu.matmul %56, %1, %cst_29 {dimension_numbers = #tpu.dot_dimension_numbers<[1], [1], [0], [0], [0, 0, 1, 0], [], []>} : vector<8x8xf32>, vector<512x8xf32>, vector<8x512xf32> -> vector<8x512xf32>
    %58 = arith.addf %55, %57 : vector<8x512xf32>
    %59 = vector.extract_strided_slice %58 {offsets = [0, 0], sizes = [1, 512], strides = [1, 1]} : vector<8x512xf32> to vector<1x512xf32>
    %c0_30 = arith.constant 0 : index
    %c0_31 = arith.constant 0 : index
    %60 = vector.load %arg12[%c0_30, %c0_31] : memref<1x1xf32, #tpu.memory_space<vmem>>, vector<1x1xf32>
    %61 = vector.broadcast %60 : vector<1x1xf32> to vector<1x512xf32>
    %62 = arith.addf %59, %61 : vector<1x512xf32>
    %cst_32 = arith.constant 5.000000e-01 : f32
    %63 = vector.broadcast %cst_32 : f32 to vector<1x512xf32>
    %64 = arith.mulf %63, %62 : vector<1x512xf32>
    %65 = arith.negf %64 : vector<1x512xf32>
    %66 = math.exp %65 : vector<1x512xf32>
    %cst_33 = arith.constant 1.000000e+00 : f32
    %67 = vector.broadcast %cst_33 : f32 to vector<1x512xf32>
    %68 = arith.addf %67, %66 : vector<1x512xf32>
    %69 = arith.divf %67, %68 : vector<1x512xf32>
    %c0_34 = arith.constant 0 : index
    %c0_35 = arith.constant 0 : index
    %c0_36 = arith.constant 0 : index
    %70 = vector.load %arg13[%c0_34, %c0_35, %c0_36] : memref<1x1x512xf32, #tpu.memory_space<vmem>>, vector<1x1x512xf32>
    %71 = vector.shape_cast %70 : vector<1x1x512xf32> to vector<1x512xf32>
    %72 = vector.shape_cast %69 : vector<1x512xf32> to vector<1x1x512xf32>
    tpu.vector_store %arg13[%c0_34, %c0_35, %c0_36], %72 {strides = array<i32>} : memref<1x1x512xf32, #tpu.memory_space<vmem>>, vector<1x1x512xf32>,
    return
  }
  func.func @transform_0(%arg0: i32) -> (i32, i32) {
    %c0_i32 = arith.constant 0 : i32
    %c0_i32_0 = arith.constant 0 : i32
    return %arg0, %c0_i32 : i32, i32
  }
  func.func @transform_1(%arg0: i32) -> (i32, i32) {
    %c0_i32 = arith.constant 0 : i32
    %c0_i32_0 = arith.constant 0 : i32
    %c0_i32_1 = arith.constant 0 : i32
    return %c0_i32, %c0_i32_0 : i32, i32
  }
  func.func @transform_2(%arg0: i32) -> (i32, i32) {
    %c0_i32 = arith.constant 0 : i32
    %c0_i32_0 = arith.constant 0 : i32
    %c0_i32_1 = arith.constant 0 : i32
    return %c0_i32, %c0_i32_0 : i32, i32
  }
  func.func @transform_3(%arg0: i32) -> (i32, i32) {
    %c0_i32 = arith.constant 0 : i32
    %c0_i32_0 = arith.constant 0 : i32
    %c0_i32_1 = arith.constant 0 : i32
    return %c0_i32, %c0_i32_0 : i32, i32
  }
  func.func @transform_4(%arg0: i32) -> (i32, i32) {
    %c0_i32 = arith.constant 0 : i32
    %c0_i32_0 = arith.constant 0 : i32
    %c0_i32_1 = arith.constant 0 : i32
    return %c0_i32, %c0_i32_0 : i32, i32
  }
  func.func @transform_5(%arg0: i32) -> (i32, i32) {
    %c0_i32 = arith.constant 0 : i32
    %c0_i32_0 = arith.constant 0 : i32
    %c0_i32_1 = arith.constant 0 : i32
    return %c0_i32, %c0_i32_0 : i32, i32
  }
  func.func @transform_6(%arg0: i32) -> (i32, i32) {
    %c0_i32 = arith.constant 0 : i32
    %c0_i32_0 = arith.constant 0 : i32
    %c0_i32_1 = arith.constant 0 : i32
    return %c0_i32, %c0_i32_0 : i32, i32
  }
  func.func @transform_7(%arg0: i32) -> (i32, i32) {
    %c0_i32 = arith.constant 0 : i32
    %c0_i32_0 = arith.constant 0 : i32
    %c0_i32_1 = arith.constant 0 : i32
    return %c0_i32, %c0_i32_0 : i32, i32
  }
  func.func @transform_8(%arg0: i32) -> (i32, i32) {
    %c0_i32 = arith.constant 0 : i32
    %c0_i32_0 = arith.constant 0 : i32
    %c0_i32_1 = arith.constant 0 : i32
    return %c0_i32, %c0_i32_0 : i32, i32
  }
  func.func @transform_9(%arg0: i32) -> (i32, i32) {
    %c0_i32 = arith.constant 0 : i32
    %c0_i32_0 = arith.constant 0 : i32
    %c0_i32_1 = arith.constant 0 : i32
    return %c0_i32, %c0_i32_0 : i32, i32
  }
  func.func @transform_10(%arg0: i32) -> (i32, i32) {
    %c0_i32 = arith.constant 0 : i32
    %c0_i32_0 = arith.constant 0 : i32
    %c0_i32_1 = arith.constant 0 : i32
    return %c0_i32, %c0_i32_0 : i32, i32
  }
  func.func @transform_11(%arg0: i32) -> (i32, i32) {
    %c0_i32 = arith.constant 0 : i32
    %c0_i32_0 = arith.constant 0 : i32
    %c0_i32_1 = arith.constant 0 : i32
    return %c0_i32, %c0_i32_0 : i32, i32
  }
  func.func @transform_12(%arg0: i32) -> (i32, i32, i32) {
    %c0_i32 = arith.constant 0 : i32
    %c0_i32_0 = arith.constant 0 : i32
    %c0_i32_1 = arith.constant 0 : i32
    return %arg0, %c0_i32, %c0_i32_0 : i32, i32, i32
  }
}

</mosaic_0001>

<bundles_post_ra>
// kernel: tpu_custom_call.1
= control target key start
LH: loop header
LB: loop body
LE: loop exit
PB: predicated region body
PF: predicated region fallthrough
CT: control target
= control target key end

     0   :  { %s9070_s0 = inlined_call_operand.vmem [shape: f32[1024,12], index: 0, kind: input, shape index: {}]   ;;  %s9071_s1 = inlined_call_operand.vmem [shape: f32[32,8], index: 1, kind: input, shape index: {}]   ;;  %s9072_s2 = inlined_call_operand.vmem [shape: f32[32,10], index: 2, kind: input, shape index: {}]   ;;  %s9073_s3 = inlined_call_operand.vmem [shape: f32[32,20], index: 3, kind: input, shape index: {}]   ;;  %s9074_s4 = inlined_call_operand.vmem [shape: f32[32,30], index: 4, kind: input, shape index: {}]   ;;  %s9075_s5 = inlined_call_operand.vmem [shape: f32[32,40], index: 5, kind: input, shape index: {}]   ;;  %s9076_s6 = inlined_call_operand.vmem [shape: f32[32,1], index: 6, kind: input, shape index: {}]   ;;  %s9077_s7 = inlined_call_operand.vmem [shape: f32[16,32], index: 7, kind: input, shape index: {}]   ;;  %s9078_s8 = inlined_call_operand.vmem [shape: f32[16,1], index: 8, kind: input, shape index: {}]   ;;  %s9079_s9 = inlined_call_operand.vmem [shape: f32[8,16], index: 9, kind: input, shape index: {}]   ;;  %s9080_s10 = inlined_call_operand.vmem [shape: f32[8,8], index: 10, kind: input, shape index: {}]   ;;  %s9081_s11 = inlined_call_operand.<no memory space> [shape: f32[1,1], index: 11, kind: input, shape index: {}]   ;;  %s9082_s12 = inlined_call_operand.hbm [shape: f32[2,1,512], index: 12, kind: output, shape index: {}]  }
   0x1   :  { %9193 = sst [smem:[#allocation83_spill]] %s9070_s0  ;;  %v17_v0 = vstv %s9081_s11 }
   0x2   :  { %18 = vst [vmem:[#allocation2] sm:$0x1] %v17_v0 }
   0x3   :  { %19 = vsyncpa [#allocation4], 0 }
   0x4   :  { %21 = vsyncpa [#allocation4 + $0x1], 0  ;;  %s6948_s23 = smov 0   ;;  %s6950_s24 = smov 0  }
   0x5   :  { %s6952_s25 = smov 0   ;;  %s6954_s26 = smov 0  }
   0x6 LB: > { %s4746_s11 = sadd.s32 4294967295, %s6870_s26   ;;  %s4747_s27 = sadd.s32 4294967294, %s6870_s26   ;;  %s6870_s26 = sphi %s6954_s26, %s9410_s26   ;;  %s6866_s25 = sphi %s6952_s25, %s9409_s25   ;;  %s6862_s24 = sphi %s6950_s24, %s9408_s24   ;;  %s6858_s23 = sphi %s6948_s23, %s9407_s23  }
   0x7   : > { %s6971_s28 = sadd.s32 1, %s6870_s26   ;;  %s291_s29 = sadd.s32 1, %s6866_s25 }
   0x8   : > { %s288_s30 = ssub.s32 %s6870_s26, %s6971_s28  ;;  %p301_p0 = scmp.ne.s32.totalorder %s6866_s25, %s6862_s24 }
   0x9   : > { %p289_p1 = scmp.eq.s32.totalorder %s288_s30, 0  ;;  %p302_p2 = scmp.eq.s32.totalorder %s4746_s11, 1 }
   0xa   : > { %p307_p3 = scmp.ne.s32.totalorder %s6862_s24, %s6858_s23  ;;  %p308_p4 = scmp.eq.s32.totalorder %s4747_s27, 1 }
   0xb   : > { %s6981_s13 = scalar_select %p289_p1, %s6866_s25, %s291_s29  }
   0xc   : > { %p6983_p5 = por %p302_p2, %p301_p0  ;;  %p6987_p6 = por %p308_p4, %p307_p3 }
   0xd   : > { %p4750_p7 = scmp.ge.s32.totalorder %s6870_s26, 1  ;;  %p368_p8 = scmp.lt.s32.totalorder %s6870_s26, 3 }
   0xf   : > { %p369_p9 = pnand %p4750_p7, %p368_p8 }
  0x11   : > { %372 = sbr.rel (%p369_p9) target bundleno = 1418 (0x58a), region = 68 }
  0x18   : > { %s6993_s16 = sshll.u32 %s4746_s11, 6  ;;  %v6872_v1 = vmov 8   ;;  %s9196_s0 = sld [smem:[#allocation83_spill]]  ;;  %vm938_vm2 = vcmask 80896  }
  0x19   : > { %6763 = vset.pattern.permute.xlu1 %v6872_v1  ;;  %6762 = vset.pattern.permute.xlu0 %v6872_v1  ;;  %p411_p10 = scmp.lt.s32.totalorder %s6993_s16, 127  ;;  %vm7455_vm5 = vmpackc.low %vm938_vm2, %vm938_vm2  ;;  %s6879_s22 = smov [#allocation3]  }
  0x1b   : > { %s412_s17 = scalar_select %p411_p10, %s6993_s16, 127 }
  0x1d   : > { %s4753_s18 = sshll.u32 %s412_s17, 3 }
  0x1e   : > { %s7000_s21 = scalar_lea.vmem %s9196_s0, %s4753_s18  ;;  %s9028_s18 = scalar_lea.hbm %s9082_s12, %s6993_s16 }
  0x1f   : > { %v464_v2 = vld [vmem:[%s7000_s21 + $0x180] sm:$0xff]  ;;  %v465_v4 = vld [vmem:[%s7000_s21 + $0x188] sm:$0xff]  ;;  %v419_v22 = vld [vmem:[%s7000_s21 + $0x18] sm:$0xff] }
  0x20   : > { %v432_v3 = vld [vmem:[%s7000_s21 + $0x80] sm:$0xff]  ;;  %v6684_v5 = vtrunc.f32 %v464_v2  ;;  %v6686_v7 = vtrunc.f32 %v465_v4  ;;  %v433_v8 = vld [vmem:[%s7000_s21 + $0x88] sm:$0xff]  ;;  %v418_v23 = vld [vmem:[%s7000_s21 + $0x10] sm:$0xff]  ;;  %v6594_v56 = vtrunc.f32 %v419_v22 }
  0x21   : > { %v6620_v6 = vtrunc.f32 %v432_v3  ;;  %v417_v9 = vld [vmem:[%s7000_s21 + $0x8] sm:$0xff]  ;;  %v416_v10 = vld [vmem:[%s7000_s21] sm:$0xff]  ;;  %v6622_v11 = vtrunc.f32 %v433_v8  ;;  %v7026_v24 = vpack.c.bf16 %v419_v22, %v418_v23  ;;  %v7029_v26 = vld [vmem:[%s7000_s21 + $0x118] sm:$0xff]  ;;  %v6592_v61 = vtrunc.f32 %v418_v23 }
  0x22   : > { %v7008_v12 = vpack.c.bf16 %v417_v9, %v416_v10  ;;  %v7010_v13 = vcvt.f32.s32 %v6684_v5  ;;  %v6590_v15 = vtrunc.f32 %v417_v9  ;;  %v449_v16 = vld [vmem:[%s7000_s21 + $0x108] sm:$0xff]  ;;  %v448_v17 = vld [vmem:[%s7000_s21 + $0x100] sm:$0xff]  ;;  %v7018_v18 = vcvt.f32.s32 %v6686_v7  ;;  %v7032_v27 = vld [vmem:[%s7000_s21 + $0x110] sm:$0xff] }
  0x23   : > { %v7012_v14 = vcvt.f32.s32 %v6620_v6  ;;  %v7020_v19 = vcvt.f32.s32 %v6622_v11  ;;  %v6588_v20 = vtrunc.f32 %v416_v10  ;;  %v7022_v21 = vpack.c.bf16 %v449_v16, %v448_v17  ;;  %9203 = vst [vmem:[#allocation12_spill] sm:$0xff] %v7026_v24  ;;  %v435_v32 = vld [vmem:[%s7000_s21 + $0x98] sm:$0xff]  ;;  %v434_v33 = vld [vmem:[%s7000_s21 + $0x90] sm:$0xff]  ;;  %v7047_v34 = vld [vmem:[%s7000_s21 + $0x28] sm:$0xff] }
  0x24   : > { %9197 = vst [vmem:[#allocation6_spill] sm:$0xff] %v7008_v12  ;;  %9198 = vst [vmem:[#allocation7_spill] sm:$0xff] %v7010_v13  ;;  %695 = vperm.xlu1 %6763, %v7010_v13   ;;  %v6654_v25 = vtrunc.f32 %v449_v16  ;;  %v7036_v28 = vcvt.f32.s32 %v6590_v15  ;;  %v6652_v30 = vtrunc.f32 %v448_v17  ;;  %v7042_v31 = vpack.c.bf16 %v7029_v26, %v7032_v27  ;;  %v7050_v35 = vld [vmem:[%s7000_s21 + $0x20] sm:$0xff]  ;;  %v467_v41 = vld [vmem:[%s7000_s21 + $0x198] sm:$0xff] }
  0x25   : > { %9199 = vst [vmem:[#allocation8_spill] sm:$0xff] %v7012_v14  ;;  %599 = vperm.xlu0 %6762, %v7012_v14   ;;  %9200 = vst [vmem:[#allocation9_spill] sm:$0xff] %v7018_v18  ;;  %v7038_v29 = vcvt.f32.s32 %v6588_v20  ;;  %v7054_v36 = vpack.c.bf16 %v7047_v34, %v7050_v35  ;;  %v6626_v39 = vtrunc.f32 %v435_v32  ;;  %v6624_v40 = vtrunc.f32 %v434_v33  ;;  %v7064_v42 = vld [vmem:[%s7000_s21 + $0x128] sm:$0xff]  ;;  %v7067_v43 = vld [vmem:[%s7000_s21 + $0x120] sm:$0xff] }
  0x26   : > { %9201 = vst [vmem:[#allocation10_spill] sm:$0xff] %v7020_v19  ;;  %9202 = vst [vmem:[#allocation11_spill] sm:$0xff] %v7022_v21  ;;  %v7058_v37 = vcvt.f32.s32 %v6654_v25  ;;  %v7060_v38 = vcvt.f32.s32 %v6652_v30  ;;  %v466_v44 = vld [vmem:[%s7000_s21 + $0x190] sm:$0xff]  ;;  %v7072_v45 = vpack.c.bf16 %v7064_v42, %v7067_v43  ;;  %v6690_v46 = vtrunc.f32 %v467_v41  ;;  %v7075_v47 = vld [vmem:[%s7000_s21 + $0x38] sm:$0xff] }
  0x27   : > { %9204 = vst [vmem:[#allocation13_spill] sm:$0xff] %v7036_v28  ;;  %9205 = vst [vmem:[#allocation14_spill] sm:$0xff] %v7038_v29  ;;  %v7078_v48 = vld [vmem:[%s7000_s21 + $0x30] sm:$0xff]  ;;  %v7082_v49 = vcvt.f32.s32 %v6626_v39  ;;  %v7084_v50 = vcvt.f32.s32 %v6624_v40  ;;  %v6688_v51 = vtrunc.f32 %v466_v44  ;;  %v7091_v53 = vld [vmem:[%s7000_s21 + $0x138] sm:$0xff]  ;;  %v7128_v2 = vcvt.f32.s32 %v6594_v56 }
  0x28   : > { %698 = vperm.xlu1 %6763, %v7018_v18   ;;  %9206 = vst [vmem:[#allocation15_spill] sm:$0xff] %v7042_v31  ;;  %9207 = vst [vmem:[#allocation16_spill] sm:$0xff] %v7054_v36  ;;  %v7088_v52 = vpack.c.bf16 %v7075_v47, %v7078_v48  ;;  %v7094_v54 = vld [vmem:[%s7000_s21 + $0x130] sm:$0xff]  ;;  %v7101_v57 = vld [vmem:[%s7000_s21 + $0x48] sm:$0xff]  ;;  %v7108_v59 = vcvt.f32.s32 %v6690_v46  ;;  %v7130_v3 = vcvt.f32.s32 %v6592_v61  ;;  %v6658_v4 = vtrunc.f32 %v7029_v26 }
  0x29   : > { %602 = vperm.xlu0 %6762, %v7020_v19   ;;  %9208 = vst [vmem:[#allocation17_spill] sm:$0xff] %v7058_v37  ;;  %9209 = vst [vmem:[#allocation18_spill] sm:$0xff] %v7060_v38  ;;  %v7098_v55 = vpack.c.bf16 %v7091_v53, %v7094_v54  ;;  %v7104_v58 = vld [vmem:[%s7000_s21 + $0x40] sm:$0xff]  ;;  %v7110_v60 = vcvt.f32.s32 %v6688_v51  ;;  %v7117_v63 = vld [vmem:[%s7000_s21 + $0x148] sm:$0xff]  ;;  %v6656_v5 = vtrunc.f32 %v7032_v27 }
  0x2a   : > { %9210 = vst [vmem:[#allocation19_spill] sm:$0xff] %v7072_v45  ;;  %9211 = vst [vmem:[#allocation20_spill] sm:$0xff] %v7082_v49  ;;  %v7114_v62 = vpack.c.bf16 %v7101_v57, %v7104_v58  ;;  %v7120_v0 = vld [vmem:[%s7000_s21 + $0x140] sm:$0xff]  ;;  %v437_v6 = vld [vmem:[%s7000_s21 + $0xa8] sm:$0xff]  ;;  %v7158_v17 = vcvt.f32.s32 %v6658_v4 }
  0x2b   : > { %9212 = vst [vmem:[#allocation21_spill] sm:$0xff] %v7084_v50  ;;  %9213 = vst [vmem:[#allocation22_spill] sm:$0xff] %v7088_v52  ;;  %v7124_v1 = vpack.c.bf16 %v7117_v63, %v7120_v0  ;;  %v7136_v7 = vld [vmem:[%s7000_s21 + $0x58] sm:$0xff]  ;;  %v7139_v8 = vld [vmem:[%s7000_s21 + $0x50] sm:$0xff]  ;;  %v7160_v20 = vcvt.f32.s32 %v6656_v5  ;;  %v6630_v22 = vtrunc.f32 %v437_v6 }
  0x2c   : > { %554 = vperm.xlu1 %6763, %v7036_v28   ;;  %9214 = vst [vmem:[#allocation23_spill] sm:$0xff] %v7098_v55  ;;  %9215 = vst [vmem:[#allocation24_spill] sm:$0xff] %v7108_v59  ;;  %v436_v9 = vld [vmem:[%s7000_s21 + $0xa0] sm:$0xff]  ;;  %v7144_v10 = vpack.c.bf16 %v7136_v7, %v7139_v8  ;;  %v7147_v11 = vld [vmem:[%s7000_s21 + $0x158] sm:$0xff]  ;;  %v6610_v21 = vtrunc.f32 %v7136_v7 }
  0x2d   : > { %551 = vperm.xlu0 %6762, %v7038_v29   ;;  %9216 = vst [vmem:[#allocation25_spill] sm:$0xff] %v7110_v60  ;;  %9217 = vst [vmem:[#allocation26_spill] sm:$0xff] %v7114_v62  ;;  %v7150_v15 = vld [vmem:[%s7000_s21 + $0x150] sm:$0xff]  ;;  %v6628_v23 = vtrunc.f32 %v436_v9  ;;  %v7163_v25 = vld [vmem:[%s7000_s21 + $0x68] sm:$0xff]  ;;  %v7186_v41 = vcvt.f32.s32 %v6630_v22 }
  0x2e   : > { %9218 = vst [vmem:[#allocation27_spill] sm:$0xff] %v7124_v1  ;;  %9219 = vst [vmem:[#allocation28_spill] sm:$0xff] %v7128_v2  ;;  %v7154_v16 = vpack.c.bf16 %v7147_v11, %v7150_v15  ;;  %v7166_v26 = vld [vmem:[%s7000_s21 + $0x60] sm:$0xff]  ;;  %v469_v27 = vld [vmem:[%s7000_s21 + $0x1a8] sm:$0xff] }
  0x2f   : > { %9220 = vst [vmem:[#allocation29_spill] sm:$0xff] %v7130_v3  ;;  %9221 = vst [vmem:[#allocation30_spill] sm:$0xff] %v7144_v10  ;;  %v468_v30 = vld [vmem:[%s7000_s21 + $0x1a0] sm:$0xff]  ;;  %v7172_v32 = vpack.c.bf16 %v7163_v25, %v7166_v26  ;;  %v7175_v33 = vld [vmem:[%s7000_s21 + $0x168] sm:$0xff]  ;;  %v7188_v44 = vcvt.f32.s32 %v6628_v23  ;;  %v6694_v46 = vtrunc.f32 %v469_v27  ;;  %v6598_v27 = vtrunc.f32 %v7047_v34 }
  0x30   : > { %650 = vperm.xlu1 %6763, %v7058_v37   ;;  %9222 = vst [vmem:[#allocation31_spill] sm:$0xff] %v7154_v16  ;;  %9223 = vst [vmem:[#allocation32_spill] sm:$0xff] %v7158_v17  ;;  %v7178_v39 = vld [vmem:[%s7000_s21 + $0x160] sm:$0xff]  ;;  %v6692_v51 = vtrunc.f32 %v468_v30  ;;  %v7191_v56 = vld [vmem:[%s7000_s21 + $0x78] sm:$0xff]  ;;  %v6596_v30 = vtrunc.f32 %v7050_v35 }
  0x31   : > { %647 = vperm.xlu0 %6762, %v7060_v38   ;;  %9224 = vst [vmem:[#allocation33_spill] sm:$0xff] %v7160_v20  ;;  %9225 = vst [vmem:[#allocation34_spill] sm:$0xff] %v7172_v32  ;;  %v7182_v40 = vpack.c.bf16 %v7175_v33, %v7178_v39  ;;  %v7194_v61 = vld [vmem:[%s7000_s21 + $0x70] sm:$0xff]  ;;  %v7201_v5 = vld [vmem:[%s7000_s21 + $0x178] sm:$0xff]  ;;  %v7212_v22 = vcvt.f32.s32 %v6694_v46  ;;  %v6660_v46 = vtrunc.f32 %v7067_v43 }
  0x32   : > { %9227 = vst [vmem:[#allocation36_spill] sm:$0xff] %v7186_v41  ;;  %9228 = vst [vmem:[#allocation37_spill] sm:$0xff] %v7188_v44  ;;  %v7198_v4 = vpack.c.bf16 %v7191_v56, %v7194_v61  ;;  %v7204_v6 = vld [vmem:[%s7000_s21 + $0x170] sm:$0xff]  ;;  %v7214_v23 = vcvt.f32.s32 %v6692_v51  ;;  %v439_v51 = vld [vmem:[%s7000_s21 + $0xb8] sm:$0xff] }
  0x33   : > { %9226 = vst [vmem:[#allocation35_spill] sm:$0xff] %v7182_v40  ;;  %v7208_v9 = vpack.c.bf16 %v7201_v5, %v7204_v6  ;;  %9231 = vst [vmem:[#allocation40_spill] sm:$0xff] %v7212_v22  ;;  %v6662_v40 = vtrunc.f32 %v7064_v42  ;;  %v438_v32 = vld [vmem:[%s7000_s21 + $0xb0] sm:$0xff]  ;;  %v7232_v35 = vcvt.f32.s32 %v6660_v46  ;;  %v6634_v16 = vtrunc.f32 %v439_v51  ;;  %v472_v45 = vld [vmem:[%s7000_s21 + $0x1c0] sm:$0xff] }
  0x34   : > { %608 = vperm.xlu1 %6763, %v7082_v49   ;;  %9229 = vst [vmem:[#allocation38_spill] sm:$0xff] %v7198_v4  ;;  %9232 = vst [vmem:[#allocation41_spill] sm:$0xff] %v7214_v23  ;;  %v7220_v4 = vcvt.f32.s32 %v6598_v27  ;;  %v6632_v10 = vtrunc.f32 %v438_v32  ;;  %v471_v27 = vld [vmem:[%s7000_s21 + $0x1b8] sm:$0xff]  ;;  %v470_v1 = vld [vmem:[%s7000_s21 + $0x1b0] sm:$0xff]  ;;  %v6602_v46 = vtrunc.f32 %v7075_v47  ;;  %v6666_v51 = vtrunc.f32 %v7091_v53 }
  0x35   : > { %605 = vperm.xlu0 %6762, %v7084_v50   ;;  %9230 = vst [vmem:[#allocation39_spill] sm:$0xff] %v7208_v9  ;;  %v7222_v9 = vcvt.f32.s32 %v6596_v30  ;;  %v7230_v34 = vcvt.f32.s32 %v6662_v40  ;;  %9235 = vst [vmem:[#allocation44_spill] sm:$0xff] %v7232_v35  ;;  %v7238_v42 = vcvt.f32.s32 %v6634_v16  ;;  %v6698_v30 = vtrunc.f32 %v471_v27  ;;  %v7305_v31 = vld [vmem:[%s7000_s21 + $0x1d8] sm:$0xff]  ;;  %v7338_v12 = vld [vmem:[%s7000_s21 + $0xe0] sm:$0xff] }
  0x36   : > { %v7240_v43 = vcvt.f32.s32 %v6632_v10  ;;  %v6696_v62 = vtrunc.f32 %v470_v1  ;;  %v6600_v16 = vtrunc.f32 %v7078_v48  ;;  %v7252_v10 = vcvt.f32.s32 %v6602_v46  ;;  %v473_v46 = vld [vmem:[%s7000_s21 + $0x1c8] sm:$0xff]  ;;  %9241 = vst [vmem:[#allocation50_spill] sm:$0xff] %v7305_v31  ;;  %9246 = vst [vmem:[#allocation55_spill] sm:$0xff] %v7338_v12 }
  0x37   : > { %9233 = vst [vmem:[#allocation42_spill] sm:$0xff] %v7222_v9  ;;  %9234 = vst [vmem:[#allocation43_spill] sm:$0xff] %v7230_v34  ;;  %v7244_v40 = vcvt.f32.s32 %v6698_v30  ;;  %v6664_v27 = vtrunc.f32 %v7094_v54  ;;  %v440_v30 = vld [vmem:[%s7000_s21 + $0xc0] sm:$0xff]  ;;  %v7262_v47 = vcvt.f32.s32 %v6666_v51  ;;  %v6700_v36 = vtrunc.f32 %v472_v45 }
  0x38   : > { %704 = vperm.xlu1 %6763, %v7108_v59   ;;  %9236 = vst [vmem:[#allocation45_spill] sm:$0xff] %v7240_v43  ;;  %v7246_v32 = vcvt.f32.s32 %v6696_v62  ;;  %v7254_v1 = vcvt.f32.s32 %v6600_v16  ;;  %v441_v62 = vld [vmem:[%s7000_s21 + $0xc8] sm:$0xff]  ;;  %v6636_v52 = vtrunc.f32 %v440_v30  ;;  %v6702_v16 = vtrunc.f32 %v473_v46 }
  0x39   : > { %701 = vperm.xlu0 %6762, %v7110_v60   ;;  %v7264_v48 = vcvt.f32.s32 %v6664_v27  ;;  %v6638_v55 = vtrunc.f32 %v441_v62  ;;  %v7278_v27 = vcvt.f32.s32 %v6700_v36  ;;  %v6606_v62 = vtrunc.f32 %v7101_v57  ;;  %v7291_v36 = vld [vmem:[%s7000_s21 + $0xd8] sm:$0xff] }
  0x3a   : > { %9237 = vst [vmem:[#allocation46_spill] sm:$0xff] %v7246_v32  ;;  %v7272_v54 = vcvt.f32.s32 %v6636_v52  ;;  %v7276_v51 = vcvt.f32.s32 %v6702_v16  ;;  %v6670_v30 = vtrunc.f32 %v7117_v63  ;;  %v6668_v46 = vtrunc.f32 %v7120_v0  ;;  %9239 = vst [vmem:[#allocation48_spill] sm:$0xff] %v7291_v36  ;;  %v7294_v16 = vld [vmem:[%s7000_s21 + $0xd0] sm:$0xff] }
  0x3b   : > { %9238 = vst [vmem:[#allocation47_spill] sm:$0xff] %v7264_v48  ;;  %v7270_v53 = vcvt.f32.s32 %v6638_v55  ;;  %v6604_v55 = vtrunc.f32 %v7104_v58  ;;  %v7284_v52 = vcvt.f32.s32 %v6606_v62  ;;  %9240 = vst [vmem:[#allocation49_spill] sm:$0xff] %v7294_v16  ;;  %v6642_v62 = vtrunc.f32 %v7291_v36  ;;  %v7308_v63 = vld [vmem:[%s7000_s21 + $0x1d0] sm:$0xff] }
  0x3c   : > { %560 = vperm.xlu1 %6763, %v7128_v2   ;;  %v7298_v57 = vcvt.f32.s32 %v6670_v30  ;;  %v7300_v58 = vcvt.f32.s32 %v6668_v46  ;;  %9242 = vst [vmem:[#allocation51_spill] sm:$0xff] %v7308_v63  ;;  %v6706_v30 = vtrunc.f32 %v7305_v31  ;;  %v6704_v46 = vtrunc.f32 %v7308_v63 }
  0x3d   : > { %557 = vperm.xlu0 %6762, %v7130_v3   ;;  %v7286_v45 = vcvt.f32.s32 %v6604_v55  ;;  %v6640_v55 = vtrunc.f32 %v7294_v16  ;;  %v7312_v0 = vcvt.f32.s32 %v6642_v62  ;;  %v6608_v62 = vtrunc.f32 %v7139_v8 }
  0x3e   : > { %v7320_v36 = vcvt.f32.s32 %v6706_v30  ;;  %v7322_v16 = vcvt.f32.s32 %v6704_v46  ;;  %v6674_v63 = vtrunc.f32 %v7147_v11  ;;  %v6672_v30 = vtrunc.f32 %v7150_v15  ;;  %v7335_v46 = vld [vmem:[%s7000_s21 + $0xe8] sm:$0xff]  ;;  %v7352_v11 = vld [vmem:[%s7000_s21 + $0x1e0] sm:$0xff] }
  0x3f   : > { %v7314_v24 = vcvt.f32.s32 %v6640_v55  ;;  %v7328_v55 = vcvt.f32.s32 %v6610_v21  ;;  %v7330_v31 = vcvt.f32.s32 %v6608_v62  ;;  %9245 = vst [vmem:[#allocation54_spill] sm:$0xff] %v7335_v46  ;;  %v6646_v21 = vtrunc.f32 %v7335_v46  ;;  %9249 = vst [vmem:[#allocation58_spill] sm:$0xff] %v7352_v11 }
  0x40   : > { %656 = vperm.xlu1 %6763, %v7158_v17   ;;  %9243 = vst [vmem:[#allocation52_spill] sm:$0xff] %v7320_v36  ;;  %v7342_v7 = vcvt.f32.s32 %v6674_v63  ;;  %v7344_v8 = vcvt.f32.s32 %v6672_v30  ;;  %v6644_v62 = vtrunc.f32 %v7338_v12  ;;  %v6708_v30 = vtrunc.f32 %v7352_v11 }
  0x41   : > { %653 = vperm.xlu0 %6762, %v7160_v20   ;;  %9244 = vst [vmem:[#allocation53_spill] sm:$0xff] %v7328_v55  ;;  %v7356_v15 = vcvt.f32.s32 %v6646_v21  ;;  %v6612_v21 = vtrunc.f32 %v7166_v26  ;;  %v6678_v11 = vtrunc.f32 %v7175_v33  ;;  %v7396_v33 = vld [vmem:[%s7000_s21 + $0x1f0] sm:$0xff] }
  0x42   : > { %9247 = vst [vmem:[#allocation56_spill] sm:$0xff] %v7342_v7  ;;  %v7366_v12 = vcvt.f32.s32 %v6708_v30  ;;  %v7379_v30 = vld [vmem:[%s7000_s21 + $0xf8] sm:$0xff]  ;;  %9259 = vst [vmem:[#allocation68_spill] sm:$0xff] %v7396_v33 }
  0x43   : > { %9250 = vst [vmem:[#allocation59_spill] sm:$0xff] %v7356_v15  ;;  %9254 = vst [vmem:[#allocation63_spill] sm:$0xff] %v7379_v30 }
  0x44   : > { %614 = vperm.xlu1 %6763, %v7186_v41  }
  0x45   : > { %611 = vperm.xlu0 %6762, %v7188_v44  }
  0x48   : > { %710 = vperm.xlu1 %6763, %v7212_v22  }
  0x49   : > { %707 = vperm.xlu0 %6762, %v7214_v23  }
  0x4c   : > { %566 = vperm.xlu1 %6763, %v7220_v4  }
  0x4d   : > { %563 = vperm.xlu0 %6762, %v7222_v9  }
  0x50   : > { %662 = vperm.xlu1 %6763, %v7230_v34  }
  0x51   : > { %659 = vperm.xlu0 %6762, %v7232_v35  }
  0x54   : > { %620 = vperm.xlu1 %6763, %v7238_v42  }
  0x55   : > { %617 = vperm.xlu0 %6762, %v7240_v43  }
  0x58   : > { %716 = vperm.xlu1 %6763, %v7244_v40  }
  0x59   : > { %713 = vperm.xlu0 %6762, %v7246_v32  }
  0x5c   : > { %572 = vperm.xlu1 %6763, %v7252_v10  }
  0x5d   : > { %569 = vperm.xlu0 %6762, %v7254_v1  }
  0x60   : > { %668 = vperm.xlu1 %6763, %v7262_v47  }
  0x61   : > { %665 = vperm.xlu0 %6762, %v7264_v48  }
  0x64   : > { %626 = vperm.xlu1 %6763, %v7270_v53  }
  0x65   : > { %623 = vperm.xlu0 %6762, %v7272_v54  }
  0x68   : > { %722 = vperm.xlu1 %6763, %v7276_v51  }
  0x69   : > { %719 = vperm.xlu0 %6762, %v7278_v27  }
  0x6c   : > { %578 = vperm.xlu1 %6763, %v7284_v52  }
  0x6d   : > { %575 = vperm.xlu0 %6762, %v7286_v45  }
  0x70   : > { %674 = vperm.xlu1 %6763, %v7298_v57  }
  0x71   : > { %671 = vperm.xlu0 %6762, %v7300_v58  }
  0x74   : > { %632 = vperm.xlu1 %6763, %v7312_v0  }
  0x75   : > { %629 = vperm.xlu0 %6762, %v7314_v24  }
  0x78   : > { %728 = vperm.xlu1 %6763, %v7320_v36   ;;  %v7349_v36 = vld [vmem:[%s7000_s21 + $0x1e8] sm:$0xff] }
  0x79   : > { %725 = vperm.xlu0 %6762, %v7322_v16   ;;  %9248 = vst [vmem:[#allocation57_spill] sm:$0xff] %v7349_v36  ;;  %v6710_v63 = vtrunc.f32 %v7349_v36  ;;  %v7374_v36 = vcvt.f32.s32 %v6612_v21 }
  0x7b   : > { %v7364_v46 = vcvt.f32.s32 %v6710_v63  ;;  %9253 = vst [vmem:[#allocation62_spill] sm:$0xff] %v7374_v36  ;;  %v6676_v63 = vtrunc.f32 %v7178_v39 }
  0x7c   : > { %584 = vperm.xlu1 %6763, %v7328_v55   ;;  %v7358_v55 = vcvt.f32.s32 %v6644_v62 }
  0x7d   : > { %581 = vperm.xlu0 %6762, %v7330_v31   ;;  %9251 = vst [vmem:[#allocation60_spill] sm:$0xff] %v7364_v46  ;;  %v7388_v26 = vcvt.f32.s32 %v6676_v63  ;;  %v6712_v63 = vtrunc.f32 %v7396_v33  ;;  %v6680_v33 = vtrunc.f32 %v7204_v6  ;;  %v6873_v6 = vmov 9  }
  0x7f   : > { %9257 = vst [vmem:[#allocation66_spill] sm:$0xff] %v7388_v26 }
  0x80   : > { %680 = vperm.xlu1 %6763, %v7342_v7   ;;  %v6614_v7 = vtrunc.f32 %v7163_v25  ;;  %v7386_v25 = vcvt.f32.s32 %v6678_v11 }
  0x81   : > { %677 = vperm.xlu0 %6762, %v7344_v8  }
  0x82   : > { %v7372_v62 = vcvt.f32.s32 %v6614_v7  ;;  %9256 = vst [vmem:[#allocation65_spill] sm:$0xff] %v7386_v25  ;;  %v6650_v7 = vtrunc.f32 %v7379_v30 }
  0x84   : > { %638 = vperm.xlu1 %6763, %v7356_v15   ;;  %9252 = vst [vmem:[#allocation61_spill] sm:$0xff] %v7372_v62  ;;  %v7382_v15 = vld [vmem:[%s7000_s21 + $0xf0] sm:$0xff]  ;;  %v7400_v39 = vcvt.f32.s32 %v6650_v7 }
  0x85   : > { %635 = vperm.xlu0 %6762, %v7358_v55   ;;  %9255 = vst [vmem:[#allocation64_spill] sm:$0xff] %v7382_v15  ;;  %v6648_v21 = vtrunc.f32 %v7382_v15  ;;  %v7410_v15 = vcvt.f32.s32 %v6712_v63 }
  0x86   : > { %9260 = vst [vmem:[#allocation69_spill] sm:$0xff] %v7400_v39 }
  0x88   : > { %734 = vperm.xlu1 %6763, %v7364_v46   ;;  %v7393_v46 = vld [vmem:[%s7000_s21 + $0x1f8] sm:$0xff] }
  0x89   : > { %731 = vperm.xlu0 %6762, %v7366_v12   ;;  %9258 = vst [vmem:[#allocation67_spill] sm:$0xff] %v7393_v46  ;;  %v6714_v11 = vtrunc.f32 %v7393_v46  ;;  %v6682_v46 = vtrunc.f32 %v7201_v5 }
  0x8b   : > { %v7408_v30 = vcvt.f32.s32 %v6714_v11  ;;  %v7424_v11 = vcvt.f32.s32 %v6682_v46  ;;  %v7440_v46 = vld [vmem:[%s9072_s2] sm:$0xff] }
  0x8c   : > { %590 = vperm.xlu1 %6763, %v7372_v62   ;;  %v7402_v62 = vcvt.f32.s32 %v6648_v21  ;;  %9266 = vst [vmem:[#allocation75_spill] sm:$0xff] %v7440_v46  ;;  %5484 = vmatprep.mubr.msk.f32.mxu0 %vm938_vm2, %v7440_v46 }
  0x8d   : > { %587 = vperm.xlu0 %6762, %v7374_v36   ;;  %9261 = vst [vmem:[#allocation70_spill] sm:$0xff] %v7408_v30  ;;  %9264 = vst [vmem:[#allocation73_spill] sm:$0xff] %v7424_v11  ;;  %5524 = vmatprep.mubr.msk.f32.mxu1 %vm938_vm2, %v7440_v46 }
  0x90   : > { %686 = vperm.xlu1 %6763, %v7386_v25   ;;  %v6618_v25 = vtrunc.f32 %v7191_v56  ;;  %v7426_v56 = vcvt.f32.s32 %v6680_v33 }
  0x91   : > { %683 = vperm.xlu0 %6762, %v7388_v26   ;;  %v6616_v26 = vtrunc.f32 %v7194_v61  ;;  %v9127_v61 = vlaneseq }
  0x92   : > { %v7416_v7 = vcvt.f32.s32 %v6618_v25  ;;  %9265 = vst [vmem:[#allocation74_spill] sm:$0xff] %v7426_v56 }
  0x93   : > { %v7418_v21 = vcvt.f32.s32 %v6616_v26  ;;  %v7431_v25 = vand.u32 127, %v9127_v61  ;;  %v9147_v61 = vmov 0.0  }
  0x94   : > { %644 = vperm.xlu1 %6763, %v7400_v39   ;;  %9262 = vst [vmem:[#allocation71_spill] sm:$0xff] %v7416_v7 }
  0x95   : > { %641 = vperm.xlu0 %6762, %v7402_v62   ;;  %9263 = vst [vmem:[#allocation72_spill] sm:$0xff] %v7418_v21 }
  0x98   : > { %740 = vperm.xlu1 %6763, %v7408_v30  }
  0x99   : > { %737 = vperm.xlu0 %6762, %v7410_v15  }
  0x9c   : > { %596 = vperm.xlu1 %6763, %v7416_v7  }
  0x9d   : > { %593 = vperm.xlu0 %6762, %v7418_v21  }
  0xa0   : > { %692 = vperm.xlu1 %6763, %v7424_v11  }
  0xa1   : > { %689 = vperm.xlu0 %6762, %v7426_v56  }
  0xa3   : > { %v696_v26 = vpop.permute.xlu1 %695 }
  0xa4   : > { %v600_v5 = vpop.permute.xlu0 %599  ;;  %6765 = vset.pattern.permute.xlu1 %v6873_v6  ;;  %vm790_vm1 = vcmp.eq.s32.totalorder %v696_v26, %v7431_v25 }
  0xa5   : > { %vm758_vm0 = vcmp.eq.s32.totalorder %v600_v5, %v7431_v25  ;;  %6764 = vset.pattern.permute.xlu0 %v6873_v6  ;;  %1756 = vperm.xlu1 %6765, %v7020_v19   ;;  %v4802_v26 = vsel %vm790_vm1, 1.0, %v9147_v61  ;;  %v9285_v19 = vld [vmem:[#allocation75_spill] sm:$0xff] }
  0xa6   : > { %1753 = vperm.xlu0 %6764, %v7012_v14   ;;  %v4770_v5 = vsel %vm758_vm0, 1.0, %v9147_v61 }
  0xa7   : > { %v699_v33 = vpop.permute.xlu1 %698 }
  0xa8   : > { %v603_v63 = vpop.permute.xlu0 %602  ;;  %vm791_vm3 = vcmp.eq.s32.totalorder %v699_v33, %v7431_v25 }
  0xa9   : > { %vm759_vm4 = vcmp.eq.s32.totalorder %v603_v63, %v7431_v25  ;;  %1849 = vperm.xlu1 %6765, %v7010_v13   ;;  %v4803_v6 = vsel %vm791_vm3, 1.0, %v9147_v61 }
  0xaa   : > { %1852 = vperm.xlu0 %6764, %v7018_v18   ;;  %v4771_v46 = vsel %vm759_vm4, 1.0, %v9147_v61  ;;  %v5968_v14 = vpack.c.bf16 %v4803_v6, %v4802_v26 }
  0xab   : > { %v5920_v33 = vpack.c.bf16 %v4771_v46, %v4770_v5  ;;  %v555_v11 = vpop.permute.xlu1 %554 }
  0xac   : > { %v552_v63 = vpop.permute.xlu0 %551  ;;  %vm743_vm6 = vcmp.eq.s32.totalorder %v555_v11, %v7431_v25  ;;  %5970 = vmatprep.subr.msk.bf16.mxu1 %vm7455_vm5, %v5968_v14 }
  0xad   : > { %vm742_vm7 = vcmp.eq.s32.totalorder %v552_v63, %v7431_v25  ;;  %5922 = vmatprep.subr.msk.bf16.mxu0 %vm7455_vm5, %v5920_v33  ;;  %v4755_v18 = vsel %vm743_vm6, 1.0, %v9147_v61  ;;  %1705 = vperm.xlu1 %6765, %v7038_v29  }
  0xae   : > { %v4754_v13 = vsel %vm742_vm7, 1.0, %v9147_v61  ;;  %1708 = vperm.xlu0 %6764, %v7036_v28  }
  0xaf   : > { %v5923_v46 = vpack.c.bf16 %v4755_v18, %v4754_v13  ;;  %v651_v5 = vpop.permute.xlu1 %650 }
  0xb0   : > { %v648_v26 = vpop.permute.xlu0 %647  ;;  %vm775_vm8 = vcmp.eq.s32.totalorder %v651_v5, %v7431_v25 }
  0xb1   : > { %vm774_vm9 = vcmp.eq.s32.totalorder %v648_v26, %v7431_v25  ;;  %5925 = vmatpush3.bf16.xpose.msk.msra.mxu0 %vm7455_vm5, %v5923_v46  ;;  %v4787_v14 = vsel %vm775_vm8, 1.0, %v9147_v61  ;;  %1801 = vperm.xlu1 %6765, %v7060_v38  }
  0xb2   : > { %v4786_v11 = vsel %vm774_vm9, 1.0, %v9147_v61  ;;  %1804 = vperm.xlu0 %6764, %v7058_v37  }
  0xb3   : > { %v5971_v6 = vpack.c.bf16 %v4787_v14, %v4786_v11  ;;  %v609_v33 = vpop.permute.xlu1 %608 }
  0xb4   : > { %v606_v13 = vpop.permute.xlu0 %605  ;;  %vm761_vm10 = vcmp.eq.s32.totalorder %v609_v33, %v7431_v25 }
  0xb5   : > { %vm760_vm11 = vcmp.eq.s32.totalorder %v606_v13, %v7431_v25  ;;  %5973 = vmatpush3.bf16.xpose.msk.msra.mxu1 %vm7455_vm5, %v5971_v6  ;;  %v4773_v18 = vsel %vm761_vm10, 1.0, %v9147_v61  ;;  %1759 = vperm.xlu1 %6765, %v7084_v50  }
  0xb6   : > { %v4772_v63 = vsel %vm760_vm11, 1.0, %v9147_v61  ;;  %1762 = vperm.xlu0 %6764, %v7082_v49  }
  0xb7   : > { %v5926_v46 = vpack.c.bf16 %v4773_v18, %v4772_v63  ;;  %v705_v5 = vpop.permute.xlu1 %704 }
  0xb8   : > { %v702_v26 = vpop.permute.xlu0 %701  ;;  %vm793_vm12 = vcmp.eq.s32.totalorder %v705_v5, %v7431_v25 }
  0xb9   : > { %vm792_vm13 = vcmp.eq.s32.totalorder %v702_v26, %v7431_v25  ;;  %5928 = vmatprep.subr.msk.bf16.mxu0 %vm7455_vm5, %v5926_v46  ;;  %v4805_v14 = vsel %vm793_vm12, 1.0, %v9147_v61  ;;  %1855 = vperm.xlu1 %6765, %v7110_v60  }
  0xba   : > { %v4804_v11 = vsel %vm792_vm13, 1.0, %v9147_v61  ;;  %1858 = vperm.xlu0 %6764, %v7108_v59  }
  0xbb   : > { %v5974_v6 = vpack.c.bf16 %v4805_v14, %v4804_v11  ;;  %v561_v33 = vpop.permute.xlu1 %560 }
  0xbc   : > { %v558_v13 = vpop.permute.xlu0 %557  ;;  %vm745_vm14 = vcmp.eq.s32.totalorder %v561_v33, %v7431_v25 }
  0xbd   : > { %vm744_vm15 = vcmp.eq.s32.totalorder %v558_v13, %v7431_v25  ;;  %5976 = vmatprep.subr.msk.bf16.mxu1 %vm7455_vm5, %v5974_v6  ;;  %v4757_v18 = vsel %vm745_vm14, 1.0, %v9147_v61  ;;  %1711 = vperm.xlu1 %6765, %v7130_v3  }
  0xbe   : > { %v4756_v63 = vsel %vm744_vm15, 1.0, %v9147_v61  ;;  %1714 = vperm.xlu0 %6764, %v7128_v2  }
  0xbf   : > { %v5929_v46 = vpack.c.bf16 %v4757_v18, %v4756_v63  ;;  %v657_v5 = vpop.permute.xlu1 %656 }
  0xc0   : > { %v654_v26 = vpop.permute.xlu0 %653  ;;  %vm777_vm0 = vcmp.eq.s32.totalorder %v657_v5, %v7431_v25 }
  0xc1   : > { %vm776_vm1 = vcmp.eq.s32.totalorder %v654_v26, %v7431_v25  ;;  %5931 = vmatpush3.bf16.xpose.msk.msra.mxu0 %vm7455_vm5, %v5929_v46  ;;  %v4789_v14 = vsel %vm777_vm0, 1.0, %v9147_v61  ;;  %1807 = vperm.xlu1 %6765, %v7160_v20  }
  0xc2   : > { %v4788_v11 = vsel %vm776_vm1, 1.0, %v9147_v61  ;;  %1810 = vperm.xlu0 %6764, %v7158_v17  }
  0xc3   : > { %v5977_v6 = vpack.c.bf16 %v4789_v14, %v4788_v11  ;;  %v615_v33 = vpop.permute.xlu1 %614 }
  0xc4   : > { %v612_v13 = vpop.permute.xlu0 %611  ;;  %vm763_vm3 = vcmp.eq.s32.totalorder %v615_v33, %v7431_v25 }
  0xc5   : > { %vm762_vm4 = vcmp.eq.s32.totalorder %v612_v13, %v7431_v25  ;;  %5979 = vmatpush3.bf16.xpose.msk.msra.mxu1 %vm7455_vm5, %v5977_v6  ;;  %v4775_v18 = vsel %vm763_vm3, 1.0, %v9147_v61  ;;  %1765 = vperm.xlu1 %6765, %v7188_v44  }
  0xc6   : > { %v4774_v63 = vsel %vm762_vm4, 1.0, %v9147_v61  ;;  %1768 = vperm.xlu0 %6764, %v7186_v41  }
  0xc7   : > { %v5932_v46 = vpack.c.bf16 %v4775_v18, %v4774_v63  ;;  %v711_v5 = vpop.permute.xlu1 %710 }
  0xc8   : > { %v708_v26 = vpop.permute.xlu0 %707  ;;  %vm795_vm6 = vcmp.eq.s32.totalorder %v711_v5, %v7431_v25 }
  0xc9   : > { %vm794_vm7 = vcmp.eq.s32.totalorder %v708_v26, %v7431_v25  ;;  %5934 = vmatprep.subr.msk.bf16.mxu0 %vm7455_vm5, %v5932_v46  ;;  %v4807_v14 = vsel %vm795_vm6, 1.0, %v9147_v61  ;;  %1861 = vperm.xlu1 %6765, %v7214_v23  }
  0xca   : > { %v4806_v11 = vsel %vm794_vm7, 1.0, %v9147_v61  ;;  %1864 = vperm.xlu0 %6764, %v7212_v22  }
  0xcb   : > { %v5980_v6 = vpack.c.bf16 %v4807_v14, %v4806_v11  ;;  %v567_v33 = vpop.permute.xlu1 %566 }
  0xcc   : > { %v564_v13 = vpop.permute.xlu0 %563  ;;  %vm747_vm8 = vcmp.eq.s32.totalorder %v567_v33, %v7431_v25 }
  0xcd   : > { %vm746_vm9 = vcmp.eq.s32.totalorder %v564_v13, %v7431_v25  ;;  %5982 = vmatprep.subr.msk.bf16.mxu1 %vm7455_vm5, %v5980_v6  ;;  %v4759_v18 = vsel %vm747_vm8, 1.0, %v9147_v61  ;;  %1717 = vperm.xlu1 %6765, %v7222_v9  }
  0xce   : > { %v4758_v63 = vsel %vm746_vm9, 1.0, %v9147_v61  ;;  %1720 = vperm.xlu0 %6764, %v7220_v4  }
  0xcf   : > { %v5935_v46 = vpack.c.bf16 %v4759_v18, %v4758_v63  ;;  %v663_v5 = vpop.permute.xlu1 %662 }
  0xd0   : > { %v660_v26 = vpop.permute.xlu0 %659  ;;  %vm779_vm10 = vcmp.eq.s32.totalorder %v663_v5, %v7431_v25 }
  0xd1   : > { %vm778_vm11 = vcmp.eq.s32.totalorder %v660_v26, %v7431_v25  ;;  %5937 = vmatpush3.bf16.xpose.msk.msra.mxu0 %vm7455_vm5, %v5935_v46  ;;  %v4791_v14 = vsel %vm779_vm10, 1.0, %v9147_v61  ;;  %1813 = vperm.xlu1 %6765, %v7232_v35  }
  0xd2   : > { %v4790_v11 = vsel %vm778_vm11, 1.0, %v9147_v61  ;;  %1816 = vperm.xlu0 %6764, %v7230_v34  }
  0xd3   : > { %v5983_v6 = vpack.c.bf16 %v4791_v14, %v4790_v11  ;;  %v621_v33 = vpop.permute.xlu1 %620 }
  0xd4   : > { %v618_v13 = vpop.permute.xlu0 %617  ;;  %vm765_vm12 = vcmp.eq.s32.totalorder %v621_v33, %v7431_v25 }
  0xd5   : > { %vm764_vm13 = vcmp.eq.s32.totalorder %v618_v13, %v7431_v25  ;;  %5985 = vmatpush3.bf16.xpose.msk.msra.mxu1 %vm7455_vm5, %v5983_v6  ;;  %v4777_v18 = vsel %vm765_vm12, 1.0, %v9147_v61  ;;  %1771 = vperm.xlu1 %6765, %v7240_v43  }
  0xd6   : > { %v4776_v63 = vsel %vm764_vm13, 1.0, %v9147_v61  ;;  %1774 = vperm.xlu0 %6764, %v7238_v42  }
  0xd7   : > { %v5938_v46 = vpack.c.bf16 %v4777_v18, %v4776_v63  ;;  %v717_v5 = vpop.permute.xlu1 %716 }
  0xd8   : > { %v714_v26 = vpop.permute.xlu0 %713  ;;  %vm797_vm14 = vcmp.eq.s32.totalorder %v717_v5, %v7431_v25 }
  0xd9   : > { %vm796_vm15 = vcmp.eq.s32.totalorder %v714_v26, %v7431_v25  ;;  %5940 = vmatprep.subr.msk.bf16.mxu0 %vm7455_vm5, %v5938_v46  ;;  %v4809_v14 = vsel %vm797_vm14, 1.0, %v9147_v61  ;;  %1867 = vperm.xlu1 %6765, %v7246_v32  }
  0xda   : > { %v4808_v11 = vsel %vm796_vm15, 1.0, %v9147_v61  ;;  %1870 = vperm.xlu0 %6764, %v7244_v40  }
  0xdb   : > { %v5986_v6 = vpack.c.bf16 %v4809_v14, %v4808_v11  ;;  %v573_v33 = vpop.permute.xlu1 %572 }
  0xdc   : > { %v570_v13 = vpop.permute.xlu0 %569  ;;  %vm749_vm0 = vcmp.eq.s32.totalorder %v573_v33, %v7431_v25 }
  0xdd   : > { %vm748_vm1 = vcmp.eq.s32.totalorder %v570_v13, %v7431_v25  ;;  %5988 = vmatprep.subr.msk.bf16.mxu1 %vm7455_vm5, %v5986_v6  ;;  %v4761_v18 = vsel %vm749_vm0, 1.0, %v9147_v61  ;;  %1723 = vperm.xlu1 %6765, %v7254_v1  }
  0xde   : > { %v4760_v63 = vsel %vm748_vm1, 1.0, %v9147_v61  ;;  %1726 = vperm.xlu0 %6764, %v7252_v10  }
  0xdf   : > { %v5941_v46 = vpack.c.bf16 %v4761_v18, %v4760_v63  ;;  %v669_v5 = vpop.permute.xlu1 %668 }
  0xe0   : > { %v666_v26 = vpop.permute.xlu0 %665  ;;  %vm781_vm3 = vcmp.eq.s32.totalorder %v669_v5, %v7431_v25 }
  0xe1   : > { %vm780_vm4 = vcmp.eq.s32.totalorder %v666_v26, %v7431_v25  ;;  %5943 = vmatpush3.bf16.xpose.msk.msra.mxu0 %vm7455_vm5, %v5941_v46  ;;  %v4793_v14 = vsel %vm781_vm3, 1.0, %v9147_v61  ;;  %1819 = vperm.xlu1 %6765, %v7264_v48  }
  0xe2   : > { %v4792_v11 = vsel %vm780_vm4, 1.0, %v9147_v61  ;;  %1822 = vperm.xlu0 %6764, %v7262_v47  }
  0xe3   : > { %v5989_v6 = vpack.c.bf16 %v4793_v14, %v4792_v11  ;;  %v627_v33 = vpop.permute.xlu1 %626 }
  0xe4   : > { %v624_v13 = vpop.permute.xlu0 %623  ;;  %vm767_vm6 = vcmp.eq.s32.totalorder %v627_v33, %v7431_v25 }
  0xe5   : > { %vm766_vm7 = vcmp.eq.s32.totalorder %v624_v13, %v7431_v25  ;;  %5991 = vmatpush3.bf16.xpose.msk.msra.mxu1 %vm7455_vm5, %v5989_v6  ;;  %v4779_v18 = vsel %vm767_vm6, 1.0, %v9147_v61  ;;  %1777 = vperm.xlu1 %6765, %v7272_v54  }
  0xe6   : > { %v4778_v63 = vsel %vm766_vm7, 1.0, %v9147_v61  ;;  %1780 = vperm.xlu0 %6764, %v7270_v53  }
  0xe7   : > { %v5944_v46 = vpack.c.bf16 %v4779_v18, %v4778_v63  ;;  %v723_v5 = vpop.permute.xlu1 %722 }
  0xe8   : > { %v720_v26 = vpop.permute.xlu0 %719  ;;  %vm799_vm8 = vcmp.eq.s32.totalorder %v723_v5, %v7431_v25 }
  0xe9   : > { %vm798_vm9 = vcmp.eq.s32.totalorder %v720_v26, %v7431_v25  ;;  %5946 = vmatprep.subr.msk.bf16.mxu0 %vm7455_vm5, %v5944_v46  ;;  %v4811_v14 = vsel %vm799_vm8, 1.0, %v9147_v61  ;;  %1873 = vperm.xlu1 %6765, %v7278_v27  }
  0xea   : > { %v4810_v11 = vsel %vm798_vm9, 1.0, %v9147_v61  ;;  %1876 = vperm.xlu0 %6764, %v7276_v51  }
  0xeb   : > { %v5992_v6 = vpack.c.bf16 %v4811_v14, %v4810_v11  ;;  %v579_v33 = vpop.permute.xlu1 %578 }
  0xec   : > { %v576_v13 = vpop.permute.xlu0 %575  ;;  %vm751_vm10 = vcmp.eq.s32.totalorder %v579_v33, %v7431_v25 }
  0xed   : > { %vm750_vm11 = vcmp.eq.s32.totalorder %v576_v13, %v7431_v25  ;;  %5994 = vmatprep.subr.msk.bf16.mxu1 %vm7455_vm5, %v5992_v6  ;;  %v4763_v18 = vsel %vm751_vm10, 1.0, %v9147_v61  ;;  %1729 = vperm.xlu1 %6765, %v7286_v45  }
  0xee   : > { %v4762_v63 = vsel %vm750_vm11, 1.0, %v9147_v61  ;;  %1732 = vperm.xlu0 %6764, %v7284_v52  }
  0xef   : > { %v5947_v46 = vpack.c.bf16 %v4763_v18, %v4762_v63  ;;  %v675_v5 = vpop.permute.xlu1 %674 }
  0xf0   : > { %v672_v26 = vpop.permute.xlu0 %671  ;;  %vm783_vm12 = vcmp.eq.s32.totalorder %v675_v5, %v7431_v25 }
  0xf1   : > { %vm782_vm13 = vcmp.eq.s32.totalorder %v672_v26, %v7431_v25  ;;  %5949 = vmatpush3.bf16.xpose.msk.msra.mxu0 %vm7455_vm5, %v5947_v46  ;;  %v4795_v14 = vsel %vm783_vm12, 1.0, %v9147_v61  ;;  %1825 = vperm.xlu1 %6765, %v7300_v58  }
  0xf2   : > { %v4794_v11 = vsel %vm782_vm13, 1.0, %v9147_v61  ;;  %1828 = vperm.xlu0 %6764, %v7298_v57  }
  0xf3   : > { %v5995_v6 = vpack.c.bf16 %v4795_v14, %v4794_v11  ;;  %v633_v33 = vpop.permute.xlu1 %632 }
  0xf4   : > { %v630_v13 = vpop.permute.xlu0 %629  ;;  %vm769_vm14 = vcmp.eq.s32.totalorder %v633_v33, %v7431_v25 }
  0xf5   : > { %vm768_vm15 = vcmp.eq.s32.totalorder %v630_v13, %v7431_v25  ;;  %5997 = vmatpush3.bf16.xpose.msk.msra.mxu1 %vm7455_vm5, %v5995_v6  ;;  %v4781_v18 = vsel %vm769_vm14, 1.0, %v9147_v61  ;;  %1783 = vperm.xlu1 %6765, %v7314_v24   ;;  %v9269_v6 = vld [vmem:[#allocation52_spill] sm:$0xff] }
  0xf6   : > { %v4780_v63 = vsel %vm768_vm15, 1.0, %v9147_v61  ;;  %1786 = vperm.xlu0 %6764, %v7312_v0  }
  0xf7   : > { %v5950_v46 = vpack.c.bf16 %v4781_v18, %v4780_v63  ;;  %v729_v5 = vpop.permute.xlu1 %728 }
  0xf8   : > { %v726_v26 = vpop.permute.xlu0 %725  ;;  %vm801_vm0 = vcmp.eq.s32.totalorder %v729_v5, %v7431_v25  ;;  %v9270_v5 = vld [vmem:[#allocation53_spill] sm:$0xff] }
  0xf9   : > { %vm800_vm1 = vcmp.eq.s32.totalorder %v726_v26, %v7431_v25  ;;  %5952 = vmatprep.subr.msk.bf16.mxu0 %vm7455_vm5, %v5950_v46  ;;  %v4813_v14 = vsel %vm801_vm0, 1.0, %v9147_v61  ;;  %1879 = vperm.xlu1 %6765, %v7322_v16  }
  0xfa   : > { %v4812_v11 = vsel %vm800_vm1, 1.0, %v9147_v61  ;;  %1882 = vperm.xlu0 %6764, %v9269_v6  }
  0xfb   : > { %v5998_v33 = vpack.c.bf16 %v4813_v14, %v4812_v11  ;;  %v585_v13 = vpop.permute.xlu1 %584 }
  0xfc   : > { %v582_v18 = vpop.permute.xlu0 %581  ;;  %vm753_vm3 = vcmp.eq.s32.totalorder %v585_v13, %v7431_v25  ;;  %v9271_v13 = vld [vmem:[#allocation56_spill] sm:$0xff] }
  0xfd   : > { %vm752_vm4 = vcmp.eq.s32.totalorder %v582_v18, %v7431_v25  ;;  %6000 = vmatprep.subr.msk.bf16.mxu1 %vm7455_vm5, %v5998_v33  ;;  %v4765_v63 = vsel %vm753_vm3, 1.0, %v9147_v61  ;;  %1735 = vperm.xlu1 %6765, %v7330_v31  }
  0xfe   : > { %v4764_v46 = vsel %vm752_vm4, 1.0, %v9147_v61  ;;  %1738 = vperm.xlu0 %6764, %v9270_v5  }
  0xff   : > { %v5953_v26 = vpack.c.bf16 %v4765_v63, %v4764_v46  ;;  %v681_v6 = vpop.permute.xlu1 %680 }
 0x100   : > { %v678_v14 = vpop.permute.xlu0 %677  ;;  %vm785_vm6 = vcmp.eq.s32.totalorder %v681_v6, %v7431_v25 }
 0x101   : > { %vm784_vm7 = vcmp.eq.s32.totalorder %v678_v14, %v7431_v25  ;;  %5955 = vmatpush3.bf16.xpose.msk.msra.mxu0 %vm7455_vm5, %v5953_v26  ;;  %v4797_v11 = vsel %vm785_vm6, 1.0, %v9147_v61  ;;  %1831 = vperm.xlu1 %6765, %v7344_v8   ;;  %v9272_v26 = vld [vmem:[#allocation59_spill] sm:$0xff] }
 0x102   : > { %v4796_v33 = vsel %vm784_vm7, 1.0, %v9147_v61  ;;  %1834 = vperm.xlu0 %6764, %v9271_v13  }
 0x103   : > { %v6001_v18 = vpack.c.bf16 %v4797_v11, %v4796_v33  ;;  %v639_v5 = vpop.permute.xlu1 %638 }
 0x104   : > { %v636_v63 = vpop.permute.xlu0 %635  ;;  %vm771_vm8 = vcmp.eq.s32.totalorder %v639_v5, %v7431_v25 }
 0x105   : > { %vm770_vm9 = vcmp.eq.s32.totalorder %v636_v63, %v7431_v25  ;;  %6003 = vmatpush3.bf16.xpose.msk.msra.mxu1 %vm7455_vm5, %v6001_v18  ;;  %v4783_v6 = vsel %vm771_vm8, 1.0, %v9147_v61  ;;  %1789 = vperm.xlu1 %6765, %v7358_v55   ;;  %v9273_v18 = vld [vmem:[#allocation60_spill] sm:$0xff]  ;;  %vm1321_vm8 = vcmask 64512  }
 0x106   : > { %v4782_v46 = vsel %vm770_vm9, 1.0, %v9147_v61  ;;  %1792 = vperm.xlu0 %6764, %v9272_v26   ;;  %vm7700_vm9 = vmpackc.low %vm1321_vm8, %vm1321_vm8 }
 0x107   : > { %v5956_v14 = vpack.c.bf16 %v4783_v6, %v4782_v46  ;;  %v735_v13 = vpop.permute.xlu1 %734 }
 0x108   : > { %v732_v11 = vpop.permute.xlu0 %731  ;;  %vm803_vm10 = vcmp.eq.s32.totalorder %v735_v13, %v7431_v25 }
 0x109   : > { %vm802_vm11 = vcmp.eq.s32.totalorder %v732_v11, %v7431_v25  ;;  %5958 = vmatprep.subr.msk.bf16.mxu0 %vm7455_vm5, %v5956_v14  ;;  %v4815_v5 = vsel %vm803_vm10, 1.0, %v9147_v61  ;;  %1885 = vperm.xlu1 %6765, %v7366_v12   ;;  %v9274_v14 = vld [vmem:[#allocation61_spill] sm:$0xff] }
 0x10a   : > { %v4814_v33 = vsel %vm802_vm11, 1.0, %v9147_v61  ;;  %1888 = vperm.xlu0 %6764, %v9273_v18  }
 0x10b   : > { %v6004_v63 = vpack.c.bf16 %v4815_v5, %v4814_v33  ;;  %v591_v26 = vpop.permute.xlu1 %590 }
 0x10c   : > { %v588_v6 = vpop.permute.xlu0 %587  ;;  %vm755_vm12 = vcmp.eq.s32.totalorder %v591_v26, %v7431_v25 }
 0x10d   : > { %vm754_vm13 = vcmp.eq.s32.totalorder %v588_v6, %v7431_v25  ;;  %6006 = vmatprep.subr.msk.bf16.mxu1 %vm7455_vm5, %v6004_v63  ;;  %v4767_v13 = vsel %vm755_vm12, 1.0, %v9147_v61  ;;  %1741 = vperm.xlu1 %6765, %v7374_v36   ;;  %v9275_v63 = vld [vmem:[#allocation66_spill] sm:$0xff]  ;;  %v9276_v6 = vld [vmem:[#allocation65_spill] sm:$0xff]  ;;  %vm2092_vm12 = vcmask 162816  }
 0x10e   : > { %v4766_v46 = vsel %vm754_vm13, 1.0, %v9147_v61  ;;  %1744 = vperm.xlu0 %6764, %v9274_v14  }
 0x10f   : > { %v5959_v11 = vpack.c.bf16 %v4767_v13, %v4766_v46  ;;  %v687_v18 = vpop.permute.xlu1 %686 }
 0x110   : > { %v684_v5 = vpop.permute.xlu0 %683  ;;  %vm787_vm14 = vcmp.eq.s32.totalorder %v687_v18, %v7431_v25 }
 0x111   : > { %vm786_vm15 = vcmp.eq.s32.totalorder %v684_v5, %v7431_v25  ;;  %5961 = vmatpush3.bf16.xpose.msk.msra.mxu0 %vm7455_vm5, %v5959_v11  ;;  %v4799_v26 = vsel %vm787_vm14, 1.0, %v9147_v61  ;;  %1837 = vperm.xlu1 %6765, %v9275_v63  }
 0x112   : > { %v4798_v33 = vsel %vm786_vm15, 1.0, %v9147_v61  ;;  %1840 = vperm.xlu0 %6764, %v9276_v6   ;;  %vm8000_vm15 = vmpackc.low %vm2092_vm12, %vm2092_vm12 }
 0x113   : > { %v6007_v36 = vpack.c.bf16 %v4799_v26, %v4798_v33  ;;  %v645_v14 = vpop.permute.xlu1 %644 }
 0x114   : > { %v642_v13 = vpop.permute.xlu0 %641  ;;  %vm773_vm0 = vcmp.eq.s32.totalorder %v645_v14, %v7431_v25 }
 0x115   : > { %vm772_vm1 = vcmp.eq.s32.totalorder %v642_v13, %v7431_v25  ;;  %6009 = vmatpush3.bf16.xpose.msk.msra.mxu1 %vm7455_vm5, %v6007_v36  ;;  %v4785_v18 = vsel %vm773_vm0, 1.0, %v9147_v61  ;;  %1795 = vperm.xlu1 %6765, %v7402_v62  }
 0x116   : > { %v4784_v46 = vsel %vm772_vm1, 1.0, %v9147_v61  ;;  %1798 = vperm.xlu0 %6764, %v7400_v39   ;;  %v6807_v39 = vld [vmem:[%s7000_s21 + $0x1c0] sm:$0xff] }
 0x117   : > { %v5962_v11 = vpack.c.bf16 %v4785_v18, %v4784_v46  ;;  %v741_v5 = vpop.permute.xlu1 %740 }
 0x118   : > { %v738_v26 = vpop.permute.xlu0 %737  ;;  %vm805_vm3 = vcmp.eq.s32.totalorder %v741_v5, %v7431_v25 }
 0x119   : > { %vm804_vm4 = vcmp.eq.s32.totalorder %v738_v26, %v7431_v25  ;;  %5964 = vmatprep.subr.msk.bf16.mxu0 %vm7455_vm5, %v5962_v11  ;;  %v4817_v36 = vsel %vm805_vm3, 1.0, %v9147_v61  ;;  %1891 = vperm.xlu1 %6765, %v7410_v15   ;;  %v6788_v26 = vld [vmem:[%s7000_s21 + $0x80] sm:$0xff] }
 0x11a   : > { %v4816_v14 = vsel %vm804_vm4, 1.0, %v9147_v61  ;;  %1894 = vperm.xlu0 %6764, %v7408_v30  }
 0x11b   : > { %v6010_v33 = vpack.c.bf16 %v4817_v36, %v4816_v14  ;;  %v597_v13 = vpop.permute.xlu1 %596  ;;  %v6789_v36 = vld [vmem:[%s7000_s21 + $0x88] sm:$0xff] }
 0x11c   : > { %v594_v18 = vpop.permute.xlu0 %593  ;;  %vm757_vm6 = vcmp.eq.s32.totalorder %v597_v13, %v7431_v25  ;;  %v7696_v14 = vpack.c.bf16 %v6789_v36, %v6788_v26  ;;  %v9280_v26 = vld [vmem:[#allocation73_spill] sm:$0xff] }
 0x11d   : > { %vm756_vm7 = vcmp.eq.s32.totalorder %v594_v18, %v7431_v25  ;;  %6012 = vmatprep.subr.msk.bf16.mxu1 %vm7455_vm5, %v6010_v33  ;;  %v4769_v46 = vsel %vm757_vm6, 1.0, %v9147_v61  ;;  %1747 = vperm.xlu1 %6765, %v7418_v21   ;;  %v9292_v21 = vld [vmem:[#allocation12_spill] sm:$0xff] }
 0x11e   : > { %v4768_v11 = vsel %vm756_vm7, 1.0, %v9147_v61  ;;  %1750 = vperm.xlu0 %6764, %v7416_v7   ;;  %9277 = vst [vmem:[#allocation66_spill] sm:$0xff] %v7696_v14 }
 0x11f   : > { %v5965_v5 = vpack.c.bf16 %v4769_v46, %v4768_v11  ;;  %v693_v13 = vpop.permute.xlu1 %692 }
 0x120   : > { %v690_v18 = vpop.permute.xlu0 %689  ;;  %vm789_vm10 = vcmp.eq.s32.totalorder %v693_v13, %v7431_v25  ;;  %v6790_v13 = vld [vmem:[%s7000_s21 + $0x180] sm:$0xff] }
 0x121   : > { %vm788_vm11 = vcmp.eq.s32.totalorder %v690_v18, %v7431_v25  ;;  %5967 = vmatpush3.bf16.xpose.msk.msra.mxu0 %vm7455_vm5, %v5965_v5  ;;  %v4801_v46 = vsel %vm789_vm10, 1.0, %v9147_v61  ;;  %1843 = vperm.xlu1 %6765, %v7426_v56   ;;  %v6791_v18 = vld [vmem:[%s7000_s21 + $0x188] sm:$0xff]  ;;  %v9288_v56 = vld [vmem:[#allocation7_spill] sm:$0xff] }
 0x122   : > { %v4800_v11 = vsel %vm788_vm11, 1.0, %v9147_v61  ;;  %1846 = vperm.xlu0 %6764, %v9280_v26   ;;  %6018 = vmatprep.subr.msk.bf16.mxu0 %vm7700_vm9, %v7696_v14  ;;  %v7717_v7 = vpack.c.bf16 %v6791_v18, %v6790_v13  ;;  %v6875_v61 = vmov 10   ;;  %v935_v13 = vld [vmem:[%s9072_s2 + $0x8] sm:$0xff]  ;;  %v9283_v18 = vld [vmem:[#allocation8_spill] sm:$0xff] }
 0x123   : > { %v6013_v36 = vpack.c.bf16 %v4801_v46, %v4800_v11  ;;  %v6792_v46 = vld [vmem:[%s7000_s21 + $0x98] sm:$0xff]  ;;  %v6793_v11 = vld [vmem:[%s7000_s21 + $0x90] sm:$0xff] }
 0x124   : > { %9281 = vst [vmem:[#allocation65_spill] sm:$0xff] %v7717_v7  ;;  %v7719_v5 = vpop.permute.xlu1 %1756  ;;  %v7727_v26 = vpack.c.bf16 %v6792_v46, %v6793_v11  ;;  %v9284_v14 = vld [vmem:[#allocation10_spill] sm:$0xff]  ;;  %v6794_v11 = vld [vmem:[%s7000_s21 + $0x198] sm:$0xff] }
 0x125   : > { %6015 = vmatpush3.bf16.xpose.msk.msra.mxu1 %vm7455_vm5, %v6013_v36  ;;  %v7723_v30 = vpop.permute.xlu0 %1753  ;;  %6766 = vset.pattern.permute.xlu1 %v6875_v61  ;;  %v9286_v36 = vld [vmem:[#allocation6_spill] sm:$0xff] }
 0x126   : > { %6767 = vset.pattern.permute.xlu0 %v6875_v61  ;;  %9282 = vst [vmem:[#allocation76_spill] sm:$0xff] %v7727_v26  ;;  %2540 = vperm.xlu1 %6766, %v9283_v18   ;;  %vm1912_vm5 = vcmp.eq.s32.totalorder %v7723_v30, %v7431_v25  ;;  %v9327_v30 = vld [vmem:[#allocation35_spill] sm:$0xff] }
 0x127   : > { %2543 = vperm.xlu0 %6767, %v9284_v14   ;;  %6066 = vmatprep.subr.msk.bf16.mxu1 %vm7700_vm9, %v7717_v7  ;;  %v6795_v14 = vld [vmem:[%s7000_s21 + $0x190] sm:$0xff] }
 0x128   : > { %5485 = vmatmul.mubr.msk.f32.vlgmr.msra.gmra.mrb[0].mxu0 %vm938_vm2, %v9285_v19  ;;  %v7739_v61 = vpop.permute.xlu1 %1849  ;;  %v7752_v18 = vpack.c.bf16 %v6794_v11, %v6795_v14  ;;  %v936_v7 = vld [vmem:[%s9072_s2 + $0x10] sm:$0xff]  ;;  %v6796_v11 = vld [vmem:[%s7000_s21 + $0xa8] sm:$0xff] }
 0x129   : > { %6021 = vmatpush3.bf16.xpose.msk.msra.mxu0 %vm7700_vm9, %v9286_v36  ;;  %v7744_v46 = vpop.permute.xlu0 %1852  ;;  %5486 = vmatprep.mubr.msk.f32.mxu0 %vm938_vm2, %v935_v13  ;;  %vm1944_vm13 = vcmp.eq.s32.totalorder %v7739_v61, %v7431_v25 }
 0x12a   : > { %6024 = vmatprep.subr.msk.bf16.mxu0 %vm7700_vm9, %v7727_v26  ;;  %9287 = vst [vmem:[#allocation75_spill] sm:$0xff] %v7752_v18  ;;  %2636 = vperm.xlu1 %6766, %v9288_v56   ;;  %v9289_v26 = vld [vmem:[#allocation11_spill] sm:$0xff]  ;;  %v9291_v56 = vld [vmem:[#allocation9_spill] sm:$0xff]  ;;  %vm1945_vm14 = vcmp.eq.s32.totalorder %v7744_v46, %v7431_v25 }
 0x12b   : > { %2492 = vperm.xlu0 %6767, %v7038_v29  }
 0x12c   : > { %5525 = vmatmul.mubr.msk.f32.vlgmr.msra.gmra.mrb[0].mxu1 %vm938_vm2, %v9285_v19  ;;  %5487 = vmatmul.mubr.msk.f32.gmra.mrb[2].mxu0 %vm938_vm2, %v935_v13  ;;  %v7762_v36 = vpop.permute.xlu1 %1705  ;;  %v6797_v19 = vld [vmem:[%s7000_s21 + $0xa0] sm:$0xff] }
 0x12d   : > { %6069 = vmatpush3.bf16.xpose.msk.msra.mxu1 %vm7700_vm9, %v9289_v26  ;;  %v7767_v14 = vpop.permute.xlu0 %1708  ;;  %5488 = vmatprep.mubr.msk.f32.mxu0 %vm938_vm2, %v936_v7  ;;  %v7775_v29 = vpack.c.bf16 %v6796_v11, %v6797_v19  ;;  %v937_v26 = vld [vmem:[%s9072_s2 + $0x18] sm:$0xff]  ;;  %v6798_v19 = vld [vmem:[%s7000_s21 + $0x1a8] sm:$0xff]  ;;  %vm1896_vm0 = vcmp.eq.s32.totalorder %v7762_v36, %v7431_v25 }
 0x12e   : > { %6072 = vmatprep.subr.msk.bf16.mxu1 %vm7700_vm9, %v7752_v18  ;;  %5526 = vmatprep.mubr.msk.f32.mxu1 %vm938_vm2, %v935_v13  ;;  %vm1897_vm1 = vcmp.eq.s32.totalorder %v7767_v14, %v7431_v25 }
 0x12f   : > { %9290 = vst [vmem:[#allocation77_spill] sm:$0xff] %v7775_v29  ;;  %2639 = vperm.xlu1 %6766, %v9291_v56   ;;  %2588 = vperm.xlu0 %6767, %v7060_v38   ;;  %v6799_v38 = vld [vmem:[%s7000_s21 + $0x1a0] sm:$0xff] }
 0x130   : > { %5489 = vmatmul.mubr.msk.f32.gmra.mrb[4].mxu0 %vm938_vm2, %v936_v7  ;;  %5527 = vmatmul.mubr.msk.f32.gmra.mrb[2].mxu1 %vm938_vm2, %v935_v13  ;;  %v7785_v18 = vpop.permute.xlu1 %1801  ;;  %v7798_v56 = vpack.c.bf16 %v6798_v19, %v6799_v38  ;;  %v7806_v13 = vld [vmem:[%s9071_s1] sm:$0xff]  ;;  %v6800_v19 = vld [vmem:[%s7000_s21 + $0xb8] sm:$0xff] }
 0x131   : > { %6027 = vmatpush3.bf16.xpose.msk.msra.mxu0 %vm7700_vm9, %v9292_v21  ;;  %v7790_v11 = vpop.permute.xlu0 %1804  ;;  %5490 = vmatprep.mubr.msk.f32.mxu0 %vm938_vm2, %v937_v26  ;;  %v9294_v21 = vld [vmem:[#allocation15_spill] sm:$0xff]  ;;  %vm1928_vm6 = vcmp.eq.s32.totalorder %v7785_v18, %v7431_v25  ;;  %v545_v18 = vld [vmem:[%s9071_s1 + $0x8] sm:$0xff] }
 0x132   : > { %6030 = vmatprep.subr.msk.bf16.mxu0 %vm7700_vm9, %v7775_v29  ;;  %9293 = vst [vmem:[#allocation78_spill] sm:$0xff] %v7798_v56  ;;  %5528 = vmatprep.mubr.msk.f32.mxu1 %vm938_vm2, %v936_v7  ;;  %vm1929_vm7 = vcmp.eq.s32.totalorder %v7790_v11, %v7431_v25 }
 0x133   : > { %2495 = vperm.xlu1 %6766, %v7036_v28   ;;  %2546 = vperm.xlu0 %6767, %v7084_v50   ;;  %v6801_v50 = vld [vmem:[%s7000_s21 + $0xb0] sm:$0xff] }
 0x134   : > { %5491 = vmatmul.mubr.msk.f32.gmra.mrb[6].mxu0 %vm938_vm2, %v937_v26  ;;  %5529 = vmatmul.mubr.msk.f32.gmra.mrb[4].mxu1 %vm938_vm2, %v936_v7  ;;  %v7810_v29 = vpop.permute.xlu1 %1759  ;;  %v7823_v28 = vpack.c.bf16 %v6800_v19, %v6801_v50  ;;  %v6802_v50 = vld [vmem:[%s7000_s21 + $0x1b8] sm:$0xff]  ;;  %v6803_v19 = vld [vmem:[%s7000_s21 + $0x1b0] sm:$0xff] }
 0x135   : > { %6075 = vmatpush3.bf16.xpose.msk.msra.mxu1 %vm7700_vm9, %v9294_v21  ;;  %v7815_v38 = vpop.permute.xlu0 %1762  ;;  %5530 = vmatprep.mubr.msk.f32.mxu1 %vm938_vm2, %v937_v26  ;;  %v9296_v21 = vld [vmem:[#allocation16_spill] sm:$0xff]  ;;  %vm1914_vm3 = vcmp.eq.s32.totalorder %v7810_v29, %v7431_v25 }
 0x136   : > { %6078 = vmatprep.subr.msk.bf16.mxu1 %vm7700_vm9, %v7798_v56  ;;  %9295 = vst [vmem:[#allocation79_spill] sm:$0xff] %v7823_v28  ;;  %5564 = vmatprep.mubr.msk.f32.mxu0 %vm1321_vm8, %v7806_v13  ;;  %vm1915_vm4 = vcmp.eq.s32.totalorder %v7815_v38, %v7431_v25 }
 0x137   : > { %2591 = vperm.xlu1 %6766, %v7058_v37   ;;  %2642 = vperm.xlu0 %6767, %v7110_v60   ;;  %v7844_v60 = vpack.c.bf16 %v6802_v50, %v6803_v19  ;;  %v6804_v50 = vld [vmem:[%s7000_s21 + $0xc8] sm:$0xff]  ;;  %v6805_v19 = vld [vmem:[%s7000_s21 + $0xc0] sm:$0xff] }
 0x138   : > { %5531 = vmatmul.mubr.msk.f32.gmra.mrb[6].mxu1 %vm938_vm2, %v937_v26  ;;  %v7830_v7 = vpop.permute.xlu1 %1855  ;;  %vm1913_vm2 = vcmp.eq.s32.totalorder %v7719_v5, %v7431_v25 }
 0x139   : > { %6033 = vmatpush3.bf16.xpose.msk.msra.mxu0 %vm7700_vm9, %v9296_v21  ;;  %v7835_v56 = vpop.permute.xlu0 %1858  ;;  %5604 = vmatprep.mubr.msk.f32.mxu1 %vm1321_vm8, %v7806_v13  ;;  %9297 = vst [vmem:[#allocation80_spill] sm:$0xff] %v7844_v60  ;;  %v9298_v21 = vld [vmem:[#allocation19_spill] sm:$0xff]  ;;  %vm1946_vm10 = vcmp.eq.s32.totalorder %v7830_v7, %v7431_v25 }
 0x13a   : > { %6036 = vmatprep.subr.msk.bf16.mxu0 %vm7700_vm9, %v7823_v28  ;;  %v7860_v28 = vpack.c.bf16 %v6804_v50, %v6805_v19  ;;  %vm1947_vm11 = vcmp.eq.s32.totalorder %v7835_v56, %v7431_v25 }
 0x13b   : > { %2549 = vperm.xlu1 %6766, %v7082_v49   ;;  %2498 = vperm.xlu0 %6767, %v7130_v3   ;;  %v9300_v49 = vld [vmem:[#allocation22_spill] sm:$0xff] }
 0x13c   : > { %v7848_v26 = vpop.permute.xlu1 %1711  ;;  %9299 = vst [vmem:[#allocation81_spill] sm:$0xff] %v7860_v28 }
 0x13d   : > { %6081 = vmatpush3.bf16.xpose.msk.msra.mxu1 %vm7700_vm9, %v9298_v21  ;;  %v7853_v37 = vpop.permute.xlu0 %1714 }
 0x13e   : > { %6084 = vmatprep.subr.msk.bf16.mxu1 %vm7700_vm9, %v7844_v60  ;;  %v6806_v60 = vld [vmem:[%s7000_s21 + $0x1c8] sm:$0xff]  ;;  %s407_s21 = sand.u32 1, %s6862_s24  }
 0x13f   : > { %2645 = vperm.xlu1 %6766, %v7108_v59   ;;  %2594 = vperm.xlu0 %6767, %v7160_v20   ;;  %v7876_v50 = vpack.c.bf16 %v6806_v60, %v6807_v39  ;;  %v9302_v20 = vld [vmem:[#allocation23_spill] sm:$0xff]  ;;  %v9304_v59 = vld [vmem:[#allocation48_spill] sm:$0xff]  ;;  %s4751_s11 = sshll.u32 %s407_s21, 2  ;;  %s4674_s19 = scalar_lea.sflag [#allocation4], %s407_s21 }
 0x140   : > { %v7864_v3 = vpop.permute.xlu1 %1807  ;;  %s409_s27 = scalar_lea.vmem [#allocation3], %s4751_s11  ;;  %s6812_s11 = sshll.u32 %s6879_s22, 4  ;;  %s6813_s11 = int_to_ptr.vmem [resolvable:$false] %s6812_s11 }
 0x141   : > { %6039 = vmatpush3.bf16.xpose.msk.msra.mxu0 %vm7700_vm9, %v9300_v49  ;;  %v7869_v21 = vpop.permute.xlu0 %1810  ;;  %9301 = vst [vmem:[#allocation82_spill] sm:$0xff] %v7876_v50  ;;  %s4688_s29 = sshll.u32 %s409_s27, 4  ;;  %s6814_s0 = scalar_lea.vmem %s6813_s11, 128  ;;  %s9030_s29 = int_to_ptr.vmem [resolvable:$true] %s4688_s29 }
 0x142   : > { %6042 = vmatprep.subr.msk.bf16.mxu0 %vm7700_vm9, %v7860_v28  ;;  %v9303_v28 = vld [vmem:[#allocation49_spill] sm:$0xff]  ;;  %s6808_s20 = scalar_lea.vmem %s9030_s29, 64  ;;  %p6815_p0 = scmp.lt.s32.totalorder %s9030_s29, %s6813_s11 }
 0x143   : > { %2501 = vperm.xlu1 %6766, %v7128_v2   ;;  %2552 = vperm.xlu0 %6767, %v7188_v44   ;;  %v7892_v60 = vpack.c.bf16 %v9304_v59, %v9303_v28  ;;  %v9306_v44 = vld [vmem:[#allocation26_spill] sm:$0xff]  ;;  %p6809_p11 = scmp.ne.s32.totalorder %s9030_s29, %s6808_s20  ;;  %p6816_p1 = scmp.lt.s32.totalorder %s6814_s0, %s6808_s20 }
 0x144   : > { %v7880_v19 = vpop.permute.xlu1 %1765  ;;  %v9308_v2 = vld [vmem:[#allocation50_spill] sm:$0xff] }
 0x145   : > { %6087 = vmatpush3.bf16.xpose.msk.msra.mxu1 %vm7700_vm9, %v9302_v20  ;;  %v7885_v49 = vpop.permute.xlu0 %1768  ;;  %9305 = vst [vmem:[#allocation49_spill] sm:$0xff] %v7892_v60  ;;  %p6810_p12 = pnand %p6809_p11, %p6983_p5  ;;  %p6817_p2 = por %p6816_p1, %p6815_p0 }
 0x146   : > { %6090 = vmatprep.subr.msk.bf16.mxu1 %vm7700_vm9, %v7876_v50  ;;  %v9307_v50 = vld [vmem:[#allocation51_spill] sm:$0xff] }
 0x147   : > { %2597 = vperm.xlu1 %6766, %v7158_v17   ;;  %2648 = vperm.xlu0 %6767, %v7214_v23   ;;  %v7908_v28 = vpack.c.bf16 %v9308_v2, %v9307_v50  ;;  %v9310_v23 = vld [vmem:[#allocation27_spill] sm:$0xff]  ;;  %v9312_v17 = vld [vmem:[#allocation54_spill] sm:$0xff]  ;;  %p6811_p13 = pneg %p6810_p12 }
 0x148   : > { %v7896_v39 = vpop.permute.xlu1 %1861 }
 0x149   : > { %6045 = vmatpush3.bf16.xpose.msk.msra.mxu0 %vm7700_vm9, %v9306_v44  ;;  %v7901_v20 = vpop.permute.xlu0 %1864  ;;  %9309 = vst [vmem:[#allocation48_spill] sm:$0xff] %v7908_v28  ;;  %p6818_p3 = pnand %p6817_p2, %p6811_p13 }
 0x14a   : > { %6048 = vmatprep.subr.msk.bf16.mxu0 %vm7700_vm9, %v7892_v60  ;;  %v9311_v60 = vld [vmem:[#allocation55_spill] sm:$0xff] }
 0x14b   : > { %2555 = vperm.xlu1 %6766, %v7186_v41   ;;  %2504 = vperm.xlu0 %6767, %v7222_v9   ;;  %v7924_v2 = vpack.c.bf16 %v9312_v17, %v9311_v60  ;;  %v9314_v9 = vld [vmem:[#allocation30_spill] sm:$0xff]  ;;  %v9316_v41 = vld [vmem:[#allocation57_spill] sm:$0xff] }
 0x14c   : > { %v7912_v59 = vpop.permute.xlu1 %1717 }
 0x14d   : > { %6093 = vmatpush3.bf16.xpose.msk.msra.mxu1 %vm7700_vm9, %v9310_v23  ;;  %v7917_v44 = vpop.permute.xlu0 %1720  ;;  %9313 = vst [vmem:[#allocation51_spill] sm:$0xff] %v7924_v2 }
 0x14e   : > { %6096 = vmatprep.subr.msk.bf16.mxu1 %vm7700_vm9, %v7908_v28  ;;  %v9315_v28 = vld [vmem:[#allocation58_spill] sm:$0xff] }
 0x14f   : > { %2651 = vperm.xlu1 %6766, %v7212_v22   ;;  %2600 = vperm.xlu0 %6767, %v7232_v35   ;;  %v7940_v17 = vpack.c.bf16 %v9316_v41, %v9315_v28  ;;  %v9318_v35 = vld [vmem:[#allocation31_spill] sm:$0xff] }
 0x150   : > { %v7928_v50 = vpop.permute.xlu1 %1813  ;;  %v9320_v22 = vld [vmem:[#allocation63_spill] sm:$0xff] }
 0x151   : > { %6051 = vmatpush3.bf16.xpose.msk.msra.mxu0 %vm7700_vm9, %v9314_v9  ;;  %v7933_v23 = vpop.permute.xlu0 %1816  ;;  %9317 = vst [vmem:[#allocation50_spill] sm:$0xff] %v7940_v17 }
 0x152   : > { %6054 = vmatprep.subr.msk.bf16.mxu0 %vm7700_vm9, %v7924_v2  ;;  %v9319_v2 = vld [vmem:[#allocation64_spill] sm:$0xff] }
 0x153   : > { %2507 = vperm.xlu1 %6766, %v7220_v4   ;;  %2558 = vperm.xlu0 %6767, %v7240_v43   ;;  %v7956_v41 = vpack.c.bf16 %v9320_v22, %v9319_v2  ;;  %v9322_v43 = vld [vmem:[#allocation34_spill] sm:$0xff]  ;;  %v9323_v22 = vld [vmem:[#allocation68_spill] sm:$0xff]  ;;  %v9324_v2 = vld [vmem:[#allocation67_spill] sm:$0xff] }
 0x154   : > { %v7944_v60 = vpop.permute.xlu1 %1771 }
 0x155   : > { %6099 = vmatpush3.bf16.xpose.msk.msra.mxu1 %vm7700_vm9, %v9318_v35  ;;  %v7949_v9 = vpop.permute.xlu0 %1774  ;;  %9321 = vst [vmem:[#allocation55_spill] sm:$0xff] %v7956_v41 }
 0x156   : > { %6102 = vmatprep.subr.msk.bf16.mxu1 %vm7700_vm9, %v7940_v17  ;;  %v7976_v17 = vpack.c.bf16 %v9324_v2, %v9323_v22 }
 0x157   : > { %2603 = vperm.xlu1 %6766, %v7230_v34   ;;  %2654 = vperm.xlu0 %6767, %v7246_v32  }
 0x158   : > { %v7960_v28 = vpop.permute.xlu1 %1867  ;;  %9325 = vst [vmem:[#allocation54_spill] sm:$0xff] %v7976_v17 }
 0x159   : > { %6057 = vmatpush3.bf16.xpose.msk.msra.mxu0 %vm7700_vm9, %v9322_v43  ;;  %v7965_v35 = vpop.permute.xlu0 %1870  ;;  %v9326_v43 = vmov 0.0  }
 0x15a   : > { %6060 = vmatprep.subr.msk.bf16.mxu0 %vm7700_vm9, %v7956_v41  ;;  %v4979_v32 = vsel %vm1913_vm2, 1.0, %v9326_v43  ;;  %v4978_v5 = vsel %vm1912_vm5, 1.0, %v9326_v43  ;;  %v5010_v61 = vsel %vm1944_vm13, 1.0, %v9326_v43  ;;  %v4962_v36 = vsel %vm1896_vm0, 1.0, %v9326_v43 }
 0x15b   : > { %2561 = vperm.xlu1 %6766, %v7238_v42   ;;  %2510 = vperm.xlu0 %6767, %v7254_v1   ;;  %v6112_v2 = vpack.c.bf16 %v4979_v32, %v4978_v5  ;;  %v4963_v14 = vsel %vm1897_vm1, 1.0, %v9326_v43  ;;  %v4980_v29 = vsel %vm1914_vm3, 1.0, %v9326_v43  ;;  %v4981_v38 = vsel %vm1915_vm4, 1.0, %v9326_v43 }
 0x15c   : > { %v7982_v34 = vpop.permute.xlu1 %1723  ;;  %v6115_v11 = vpack.c.bf16 %v4963_v14, %v4962_v36  ;;  %v6118_v7 = vpack.c.bf16 %v4981_v38, %v4980_v29  ;;  %v5012_v56 = vsel %vm1946_vm10, 1.0, %v9326_v43  ;;  %vm1898_vm2 = vcmp.eq.s32.totalorder %v7848_v26, %v7431_v25 }
 0x15d   : > { %6105 = vmatpush3.bf16.xpose.msk.msra.mxu1 %vm7700_vm9, %v9327_v30  ;;  %v7987_v41 = vpop.permute.xlu0 %1726  ;;  %v5011_v30 = vsel %vm1945_vm14, 1.0, %v9326_v43  ;;  %vm1899_vm5 = vcmp.eq.s32.totalorder %v7853_v37, %v7431_v25  ;;  %vm1916_vm13 = vcmp.eq.s32.totalorder %v7880_v19, %v7431_v25  ;;  %vm1917_vm14 = vcmp.eq.s32.totalorder %v7885_v49, %v7431_v25  ;;  %v546_v37 = vld [vmem:[%s9071_s1 + $0x10] sm:$0xff] }
 0x15e   : > { %6108 = vmatprep.subr.msk.bf16.mxu1 %vm7700_vm9, %v7976_v17  ;;  %v9330_v17 = vld [vmem:[#allocation38_spill] sm:$0xff]  ;;  %v6160_v32 = vpack.c.bf16 %v5011_v30, %v5010_v61  ;;  %v4994_v61 = vsel %vm1928_vm6, 1.0, %v9326_v43  ;;  %v4964_v38 = vsel %vm1898_vm2, 1.0, %v9326_v43  ;;  %v4965_v19 = vsel %vm1899_vm5, 1.0, %v9326_v43 }
 0x15f   : > { %2657 = vperm.xlu1 %6766, %v7244_v40   ;;  %2606 = vperm.xlu0 %6767, %v7264_v48   ;;  %vm1930_vm0 = vcmp.eq.s32.totalorder %v7864_v3, %v7431_v25  ;;  %vm1931_vm1 = vcmp.eq.s32.totalorder %v7869_v21, %v7431_v25  ;;  %v4982_v49 = vsel %vm1916_vm13, 1.0, %v9326_v43  ;;  %vm1948_vm3 = vcmp.eq.s32.totalorder %v7896_v39, %v7431_v25 }
 0x160   : > { %v8010_v46 = vpop.permute.xlu1 %1819  ;;  %vm1949_vm4 = vcmp.eq.s32.totalorder %v7901_v20, %v7431_v25  ;;  %v4996_v39 = vsel %vm1930_vm0, 1.0, %v9326_v43  ;;  %v4997_v20 = vsel %vm1931_vm1, 1.0, %v9326_v43  ;;  %vm1900_vm6 = vcmp.eq.s32.totalorder %v7912_v59, %v7431_v25  ;;  %v8144_v59 = vld [vmem:[%s9073_s3] sm:$0xff] }
 0x161   : > { %6063 = vmatpush3.bf16.xpose.msk.msra.mxu0 %vm7700_vm9, %v9330_v17  ;;  %v8015_v48 = vpop.permute.xlu0 %1822  ;;  %vm1918_vm10 = vcmp.eq.s32.totalorder %v7944_v60, %v7431_v25  ;;  %v4966_v60 = vsel %vm1900_vm6, 1.0, %v9326_v43  ;;  %vm1932_vm2 = vcmp.eq.s32.totalorder %v7928_v50, %v7431_v25  ;;  %vm1933_vm5 = vcmp.eq.s32.totalorder %v7933_v23, %v7431_v25 }
 0x162   : > { %6114 = vmatprep.subr.msk.bf16.mxu0 %vm8000_vm15, %v6112_v2  ;;  %v9331_v2 = vld [vmem:[#allocation39_spill] sm:$0xff]  ;;  %vm1950_vm13 = vcmp.eq.s32.totalorder %v7960_v28, %v7431_v25  ;;  %v4998_v50 = vsel %vm1932_vm2, 1.0, %v9326_v43  ;;  %vm1902_vm0 = vcmp.eq.s32.totalorder %v7982_v34, %v7431_v25  ;;  %vm1903_vm1 = vcmp.eq.s32.totalorder %v7987_v41, %v7431_v25 }
 0x163   : > { %2513 = vperm.xlu1 %6766, %v7252_v10   ;;  %2564 = vperm.xlu0 %6767, %v7272_v54   ;;  %vm1934_vm6 = vcmp.eq.s32.totalorder %v8010_v46, %v7431_v25 }
 0x164   : > { %v8033_v5 = vpop.permute.xlu1 %1777 }
 0x165   : > { %6111 = vmatpush3.bf16.xpose.msk.msra.mxu1 %vm7700_vm9, %v9331_v2  ;;  %v8038_v30 = vpop.permute.xlu0 %1780  ;;  %v4995_v2 = vsel %vm1929_vm7, 1.0, %v9326_v43  ;;  %vm1901_vm7 = vcmp.eq.s32.totalorder %v7917_v44, %v7431_v25  ;;  %v6169_v44 = vpack.c.bf16 %v4997_v20, %v4996_v39  ;;  %v4969_v20 = vsel %vm1903_vm1, 1.0, %v9326_v43 }
 0x166   : > { %6162 = vmatprep.subr.msk.bf16.mxu1 %vm8000_vm15, %v6160_v32  ;;  %v5013_v32 = vsel %vm1947_vm11, 1.0, %v9326_v43  ;;  %v6163_v26 = vpack.c.bf16 %v4995_v2, %v4994_v61  ;;  %v4983_v2 = vsel %vm1917_vm14, 1.0, %v9326_v43  ;;  %vm1919_vm11 = vcmp.eq.s32.totalorder %v7949_v9, %v7431_v25 }
 0x167   : > { %2609 = vperm.xlu1 %6766, %v7262_v47   ;;  %2660 = vperm.xlu0 %6767, %v7278_v27   ;;  %v6166_v29 = vpack.c.bf16 %v5013_v32, %v5012_v56  ;;  %v6124_v56 = vpack.c.bf16 %v4983_v2, %v4982_v49  ;;  %v5014_v32 = vsel %vm1948_vm3, 1.0, %v9326_v43  ;;  %v4967_v9 = vsel %vm1901_vm7, 1.0, %v9326_v43 }
 0x168   : > { %5565 = vmatmul.mubr.msk.f32.vlgmr.msra.gmra.mrb[0].mxu0 %vm1321_vm8, %v7806_v13  ;;  %v8061_v36 = vpop.permute.xlu1 %1873  ;;  %vm1951_vm14 = vcmp.eq.s32.totalorder %v7965_v35, %v7431_v25  ;;  %v6127_v23 = vpack.c.bf16 %v4967_v9, %v4966_v60  ;;  %v5016_v35 = vsel %vm1950_vm13, 1.0, %v9326_v43  ;;  %vm1920_vm3 = vcmp.eq.s32.totalorder %v8033_v5, %v7431_v25 }
 0x169   : > { %6117 = vmatpush3.bf16.xpose.msk.msra.mxu0 %vm8000_vm15, %v6115_v11  ;;  %v8065_v14 = vpop.permute.xlu0 %1876  ;;  %5566 = vmatprep.mubr.msk.f32.mxu0 %vm1321_vm8, %v545_v18  ;;  %v5017_v28 = vsel %vm1951_vm14, 1.0, %v9326_v43  ;;  %vm1935_vm7 = vcmp.eq.s32.totalorder %v8015_v48, %v7431_v25  ;;  %v4986_v5 = vsel %vm1920_vm3, 1.0, %v9326_v43  ;;  %v9332_v48 = vld [vmem:[#allocation52_spill] sm:$0xff] }
 0x16a   : > { %6120 = vmatprep.subr.msk.bf16.mxu0 %vm8000_vm15, %v6118_v7  ;;  %v6121_v7 = vpack.c.bf16 %v4965_v19, %v4964_v38  ;;  %v4985_v38 = vsel %vm1919_vm11, 1.0, %v9326_v43  ;;  %v6178_v41 = vpack.c.bf16 %v5017_v28, %v5016_v35  ;;  %vm1953_vm11 = vcmp.eq.s32.totalorder %v8065_v14, %v7431_v25 }
 0x16b   : > { %2567 = vperm.xlu1 %6766, %v7270_v53   ;;  %2516 = vperm.xlu0 %6767, %v7286_v45  }
 0x16c   : > { %5605 = vmatmul.mubr.msk.f32.vlgmr.msra.gmra.mrb[0].mxu1 %vm1321_vm8, %v7806_v13  ;;  %5567 = vmatmul.mubr.msk.f32.gmra.mrb[2].mxu0 %vm1321_vm8, %v545_v18  ;;  %v8090_v11 = vpop.permute.xlu1 %1729  ;;  %v547_v13 = vld [vmem:[%s9071_s1 + $0x18] sm:$0xff] }
 0x16d   : > { %6165 = vmatpush3.bf16.xpose.msk.msra.mxu1 %vm8000_vm15, %v6163_v26  ;;  %v8094_v61 = vpop.permute.xlu0 %1732  ;;  %5568 = vmatprep.mubr.msk.f32.mxu0 %vm1321_vm8, %v546_v37  ;;  %v5015_v26 = vsel %vm1949_vm4, 1.0, %v9326_v43  ;;  %vm1921_vm4 = vcmp.eq.s32.totalorder %v8038_v30, %v7431_v25  ;;  %vm1904_vm2 = vcmp.eq.s32.totalorder %v8090_v11, %v7431_v25 }
 0x16e   : > { %6168 = vmatprep.subr.msk.bf16.mxu1 %vm8000_vm15, %v6166_v29  ;;  %5606 = vmatprep.mubr.msk.f32.mxu1 %vm1321_vm8, %v545_v18  ;;  %v4984_v29 = vsel %vm1918_vm10, 1.0, %v9326_v43  ;;  %v4987_v30 = vsel %vm1921_vm4, 1.0, %v9326_v43  ;;  %vm1952_vm10 = vcmp.eq.s32.totalorder %v8061_v36, %v7431_v25  ;;  %v5019_v36 = vsel %vm1953_vm11, 1.0, %v9326_v43 }
 0x16f   : > { %2663 = vperm.xlu1 %6766, %v7276_v51   ;;  %2612 = vperm.xlu0 %6767, %v7300_v58   ;;  %v6130_v2 = vpack.c.bf16 %v4985_v38, %v4984_v29  ;;  %v5018_v60 = vsel %vm1952_vm10, 1.0, %v9326_v43  ;;  %v9333_v38 = vld [vmem:[#allocation53_spill] sm:$0xff] }
 0x170   : > { %5569 = vmatmul.mubr.msk.f32.gmra.mrb[4].mxu0 %vm1321_vm8, %v546_v37  ;;  %5607 = vmatmul.mubr.msk.f32.gmra.mrb[2].mxu1 %vm1321_vm8, %v545_v18  ;;  %v8125_v3 = vpop.permute.xlu1 %1825  ;;  %v6172_v18 = vpack.c.bf16 %v5015_v26, %v5014_v32  ;;  %v5000_v26 = vsel %vm1934_vm6, 1.0, %v9326_v43  ;;  %v6184_v11 = vpack.c.bf16 %v5019_v36, %v5018_v60  ;;  %v9337_v36 = vld [vmem:[#allocation60_spill] sm:$0xff] }
 0x171   : > { %6123 = vmatpush3.bf16.xpose.msk.msra.mxu0 %vm8000_vm15, %v6121_v7  ;;  %v8129_v21 = vpop.permute.xlu0 %1828  ;;  %5570 = vmatprep.mubr.msk.f32.mxu0 %vm1321_vm8, %v547_v13 }
 0x172   : > { %6126 = vmatprep.subr.msk.bf16.mxu0 %vm8000_vm15, %v6124_v56  ;;  %5608 = vmatprep.mubr.msk.f32.mxu1 %vm1321_vm8, %v546_v37  ;;  %vm1937_vm1 = vcmp.eq.s32.totalorder %v8129_v21, %v7431_v25 }
 0x173   : > { %2519 = vperm.xlu1 %6766, %v7284_v52   ;;  %2570 = vperm.xlu0 %6767, %v7314_v24   ;;  %v5003_v35 = vsel %vm1937_vm1, 1.0, %v9326_v43 }
 0x174   : > { %5571 = vmatmul.mubr.msk.f32.gmra.mrb[6].mxu0 %vm1321_vm8, %v547_v13  ;;  %5609 = vmatmul.mubr.msk.f32.gmra.mrb[4].mxu1 %vm1321_vm8, %v546_v37  ;;  %v8156_v19 = vpop.permute.xlu1 %1783  ;;  %v4999_v37 = vsel %vm1933_vm5, 1.0, %v9326_v43  ;;  %vm1905_vm5 = vcmp.eq.s32.totalorder %v8094_v61, %v7431_v25  ;;  %v4970_v61 = vsel %vm1904_vm2, 1.0, %v9326_v43 }
 0x175   : > { %6171 = vmatpush3.bf16.xpose.msk.msra.mxu1 %vm8000_vm15, %v6169_v44  ;;  %v8160_v49 = vpop.permute.xlu0 %1786  ;;  %5610 = vmatprep.mubr.msk.f32.mxu1 %vm1321_vm8, %v547_v13  ;;  %v6175_v34 = vpack.c.bf16 %v4999_v37, %v4998_v50  ;;  %v5001_v44 = vsel %vm1935_vm7, 1.0, %v9326_v43  ;;  %vm1922_vm13 = vcmp.eq.s32.totalorder %v8156_v19, %v7431_v25 }
 0x176   : > { %6174 = vmatprep.subr.msk.bf16.mxu1 %vm8000_vm15, %v6172_v18  ;;  %5644 = vmatprep.mubr.msk.f32.mxu0 %vm2092_vm12, %v8144_v59  ;;  %v6136_v18 = vpack.c.bf16 %v4987_v30, %v4986_v5  ;;  %vm1923_vm14 = vcmp.eq.s32.totalorder %v8160_v49, %v7431_v25  ;;  %v6181_v29 = vpack.c.bf16 %v5001_v44, %v5000_v26  ;;  %v4988_v19 = vsel %vm1922_vm13, 1.0, %v9326_v43  ;;  %v9336_v5 = vld [vmem:[#allocation62_spill] sm:$0xff] }
 0x177   : > { %2615 = vperm.xlu1 %6766, %v7298_v57   ;;  %2666 = vperm.xlu0 %6767, %v7322_v16   ;;  %v4989_v49 = vsel %vm1923_vm14, 1.0, %v9326_v43 }
 0x178   : > { %5611 = vmatmul.mubr.msk.f32.gmra.mrb[6].mxu1 %vm1321_vm8, %v547_v13  ;;  %v1880_v7 = vpop.permute.xlu1 %1879  ;;  %v4968_v13 = vsel %vm1902_vm0, 1.0, %v9326_v43  ;;  %vm1936_vm0 = vcmp.eq.s32.totalorder %v8125_v3, %v7431_v25  ;;  %v6142_v28 = vpack.c.bf16 %v4989_v49, %v4988_v19 }
 0x179   : > { %6129 = vmatpush3.bf16.xpose.msk.msra.mxu0 %vm8000_vm15, %v6127_v23  ;;  %v1883_v39 = vpop.permute.xlu0 %1882  ;;  %5684 = vmatprep.mubr.msk.f32.mxu1 %vm2092_vm12, %v8144_v59  ;;  %v6133_v46 = vpack.c.bf16 %v4969_v20, %v4968_v13  ;;  %v4971_v23 = vsel %vm1905_vm5, 1.0, %v9326_v43  ;;  %vm1954_vm3 = vcmp.eq.s32.totalorder %v1880_v7, %v7431_v25  ;;  %v5002_v21 = vsel %vm1936_vm0, 1.0, %v9326_v43  ;;  %v9335_v20 = vld [vmem:[#allocation59_spill] sm:$0xff] }
 0x17a   : > { %6132 = vmatprep.subr.msk.bf16.mxu0 %vm8000_vm15, %v6130_v2  ;;  %vm1955_vm4 = vcmp.eq.s32.totalorder %v1883_v39, %v7431_v25  ;;  %v6139_v3 = vpack.c.bf16 %v4971_v23, %v4970_v61  ;;  %v9334_v2 = vld [vmem:[#allocation56_spill] sm:$0xff]  ;;  %v6187_v13 = vpack.c.bf16 %v5003_v35, %v5002_v21 }
 0x17b   : > { %2573 = vperm.xlu1 %6766, %v7312_v0   ;;  %2522 = vperm.xlu0 %6767, %v7330_v31  }
 0x17c   : > { %v1736_v56 = vpop.permute.xlu1 %1735 }
 0x17d   : > { %6177 = vmatpush3.bf16.xpose.msk.msra.mxu1 %vm8000_vm15, %v6175_v34  ;;  %v1739_v32 = vpop.permute.xlu0 %1738  ;;  %v5020_v34 = vsel %vm1954_vm3, 1.0, %v9326_v43  ;;  %vm1906_vm6 = vcmp.eq.s32.totalorder %v1736_v56, %v7431_v25 }
 0x17e   : > { %6180 = vmatprep.subr.msk.bf16.mxu1 %vm8000_vm15, %v6178_v41  ;;  %v5021_v41 = vsel %vm1955_vm4, 1.0, %v9326_v43  ;;  %vm1907_vm7 = vcmp.eq.s32.totalorder %v1739_v32, %v7431_v25  ;;  %v4972_v56 = vsel %vm1906_vm6, 1.0, %v9326_v43 }
 0x17f   : > { %2669 = vperm.xlu1 %6766, %v9332_v48   ;;  %2618 = vperm.xlu0 %6767, %v7344_v8   ;;  %v6190_v30 = vpack.c.bf16 %v5021_v41, %v5020_v34  ;;  %v4973_v32 = vsel %vm1907_vm7, 1.0, %v9326_v43 }
 0x180   : > { %v1832_v14 = vpop.permute.xlu1 %1831  ;;  %v6145_v60 = vpack.c.bf16 %v4973_v32, %v4972_v56 }
 0x181   : > { %6135 = vmatpush3.bf16.xpose.msk.msra.mxu0 %vm8000_vm15, %v6133_v46  ;;  %v1835_v9 = vpop.permute.xlu0 %1834  ;;  %vm1938_vm2 = vcmp.eq.s32.totalorder %v1832_v14, %v7431_v25 }
 0x182   : > { %6138 = vmatprep.subr.msk.bf16.mxu0 %vm8000_vm15, %v6136_v18  ;;  %vm1939_vm5 = vcmp.eq.s32.totalorder %v1835_v9, %v7431_v25  ;;  %v5004_v14 = vsel %vm1938_vm2, 1.0, %v9326_v43 }
 0x183   : > { %2525 = vperm.xlu1 %6766, %v9333_v38   ;;  %2576 = vperm.xlu0 %6767, %v7358_v55   ;;  %v5005_v9 = vsel %vm1939_vm5, 1.0, %v9326_v43 }
 0x184   : > { %v1790_v50 = vpop.permute.xlu1 %1789  ;;  %v6193_v49 = vpack.c.bf16 %v5005_v9, %v5004_v14 }
 0x185   : > { %6183 = vmatpush3.bf16.xpose.msk.msra.mxu1 %vm8000_vm15, %v6181_v29  ;;  %v1793_v37 = vpop.permute.xlu0 %1792  ;;  %vm1924_vm10 = vcmp.eq.s32.totalorder %v1790_v50, %v7431_v25  ;;  %v9338_v50 = vld [vmem:[#allocation61_spill] sm:$0xff] }
 0x186   : > { %6186 = vmatprep.subr.msk.bf16.mxu1 %vm8000_vm15, %v6184_v11  ;;  %vm1925_vm11 = vcmp.eq.s32.totalorder %v1793_v37, %v7431_v25  ;;  %v4990_v46 = vsel %vm1924_vm10, 1.0, %v9326_v43 }
 0x187   : > { %2621 = vperm.xlu1 %6766, %v9334_v2   ;;  %2672 = vperm.xlu0 %6767, %v7366_v12   ;;  %v4991_v26 = vsel %vm1925_vm11, 1.0, %v9326_v43 }
 0x188   : > { %v1886_v7 = vpop.permute.xlu1 %1885  ;;  %v6148_v29 = vpack.c.bf16 %v4991_v26, %v4990_v46 }
 0x189   : > { %6141 = vmatpush3.bf16.xpose.msk.msra.mxu0 %vm8000_vm15, %v6139_v3  ;;  %v1889_v39 = vpop.permute.xlu0 %1888  ;;  %vm1956_vm13 = vcmp.eq.s32.totalorder %v1886_v7, %v7431_v25 }
 0x18a   : > { %6144 = vmatprep.subr.msk.bf16.mxu0 %vm8000_vm15, %v6142_v28  ;;  %vm1957_vm14 = vcmp.eq.s32.totalorder %v1889_v39, %v7431_v25  ;;  %v5022_v11 = vsel %vm1956_vm13, 1.0, %v9326_v43 }
 0x18b   : > { %2579 = vperm.xlu1 %6766, %v9335_v20   ;;  %2528 = vperm.xlu0 %6767, %v9336_v5   ;;  %v5023_v61 = vsel %vm1957_vm14, 1.0, %v9326_v43 }
 0x18c   : > { %v1742_v44 = vpop.permute.xlu1 %1741  ;;  %v6196_v37 = vpack.c.bf16 %v5023_v61, %v5022_v11 }
 0x18d   : > { %6189 = vmatpush3.bf16.xpose.msk.msra.mxu1 %vm8000_vm15, %v6187_v13  ;;  %v1745_v18 = vpop.permute.xlu0 %1744  ;;  %vm1908_vm0 = vcmp.eq.s32.totalorder %v1742_v44, %v7431_v25 }
 0x18e   : > { %6192 = vmatprep.subr.msk.bf16.mxu1 %vm8000_vm15, %v6190_v30  ;;  %vm1909_vm1 = vcmp.eq.s32.totalorder %v1745_v18, %v7431_v25  ;;  %v4974_v3 = vsel %vm1908_vm0, 1.0, %v9326_v43  ;;  %v9339_v18 = vld [vmem:[#allocation69_spill] sm:$0xff]  ;;  %vm2879_vm0 = vcmask 244736  }
 0x18f   : > { %2675 = vperm.xlu1 %6766, %v9337_v36   ;;  %2624 = vperm.xlu0 %6767, %v9275_v63   ;;  %v4975_v21 = vsel %vm1909_vm1, 1.0, %v9326_v43 }
 0x190   : > { %v1838_v23 = vpop.permute.xlu1 %1837  ;;  %v6151_v34 = vpack.c.bf16 %v4975_v21, %v4974_v3 }
 0x191   : > { %6147 = vmatpush3.bf16.xpose.msk.msra.mxu0 %vm8000_vm15, %v6145_v60  ;;  %v1841_v19 = vpop.permute.xlu0 %1840  ;;  %vm1940_vm3 = vcmp.eq.s32.totalorder %v1838_v23, %v7431_v25  ;;  %v9340_v60 = vld [vmem:[#allocation72_spill] sm:$0xff]  ;;  %v9341_v23 = vld [vmem:[#allocation70_spill] sm:$0xff] }
 0x192   : > { %6150 = vmatprep.subr.msk.bf16.mxu0 %vm8000_vm15, %v6148_v29  ;;  %vm1941_vm4 = vcmp.eq.s32.totalorder %v1841_v19, %v7431_v25  ;;  %v5006_v39 = vsel %vm1940_vm3, 1.0, %v9326_v43  ;;  %v9342_v19 = vld [vmem:[#allocation74_spill] sm:$0xff] }
 0x193   : > { %2531 = vperm.xlu1 %6766, %v9338_v50   ;;  %2582 = vperm.xlu0 %6767, %v7402_v62   ;;  %v5007_v13 = vsel %vm1941_vm4, 1.0, %v9326_v43  ;;  %vm8340_vm4 = vmpackc.low %vm2879_vm0, %vm2879_vm0 }
 0x194   : > { %v1796_v35 = vpop.permute.xlu1 %1795  ;;  %v6199_v46 = vpack.c.bf16 %v5007_v13, %v5006_v39 }
 0x195   : > { %6195 = vmatpush3.bf16.xpose.msk.msra.mxu1 %vm8000_vm15, %v6193_v49  ;;  %v1799_v28 = vpop.permute.xlu0 %1798  ;;  %vm1926_vm6 = vcmp.eq.s32.totalorder %v1796_v35, %v7431_v25 }
 0x196   : > { %vm1927_vm7 = vcmp.eq.s32.totalorder %v1799_v28, %v7431_v25  ;;  %6198 = vmatprep.subr.msk.bf16.mxu1 %vm8000_vm15, %v6196_v37  ;;  %v4992_v41 = vsel %vm1926_vm6, 1.0, %v9326_v43  ;;  %v9343_v28 = vld [vmem:[#allocation71_spill] sm:$0xff] }
 0x197   : > { %v4993_v7 = vsel %vm1927_vm7, 1.0, %v9326_v43  ;;  %2627 = vperm.xlu1 %6766, %v9276_v6   ;;  %2678 = vperm.xlu0 %6767, %v7410_v15  }
 0x198   : > { %v6154_v30 = vpack.c.bf16 %v4993_v7, %v4992_v41  ;;  %v1892_v56 = vpop.permute.xlu1 %1891  ;;  %v9344_v7 = vld [vmem:[#allocation8_spill] sm:$0xff] }
 0x199   : > { %6153 = vmatpush3.bf16.xpose.msk.msra.mxu0 %vm8000_vm15, %v6151_v34  ;;  %v1895_v32 = vpop.permute.xlu0 %1894  ;;  %vm1958_vm10 = vcmp.eq.s32.totalorder %v1892_v56, %v7431_v25  ;;  %v6876_v34 = vmov 11  }
 0x19a   : > { %vm1959_vm11 = vcmp.eq.s32.totalorder %v1895_v32, %v7431_v25  ;;  %6156 = vmatprep.subr.msk.bf16.mxu0 %vm8000_vm15, %v6154_v30  ;;  %v5024_v26 = vsel %vm1958_vm10, 1.0, %v9326_v43  ;;  %v9345_v30 = vld [vmem:[#allocation73_spill] sm:$0xff] }
 0x19b   : > { %v5025_v44 = vsel %vm1959_vm11, 1.0, %v9326_v43  ;;  %2585 = vperm.xlu1 %6766, %v9339_v18   ;;  %2534 = vperm.xlu0 %6767, %v9340_v60  }
 0x19c   : > { %v6202_v14 = vpack.c.bf16 %v5025_v44, %v5024_v26  ;;  %v1748_v9 = vpop.permute.xlu1 %1747 }
 0x19d   : > { %6201 = vmatpush3.bf16.xpose.msk.msra.mxu1 %vm8000_vm15, %v6199_v46  ;;  %v1751_v29 = vpop.permute.xlu0 %1750  ;;  %vm1910_vm2 = vcmp.eq.s32.totalorder %v1748_v9, %v7431_v25  ;;  %v9346_v46 = vld [vmem:[#allocation9_spill] sm:$0xff] }
 0x19e   : > { %vm1911_vm5 = vcmp.eq.s32.totalorder %v1751_v29, %v7431_v25  ;;  %6204 = vmatprep.subr.msk.bf16.mxu1 %vm8000_vm15, %v6202_v14  ;;  %v4976_v11 = vsel %vm1910_vm2, 1.0, %v9326_v43  ;;  %v2089_v9 = vld [vmem:[%s9073_s3 + $0x8] sm:$0xff] }
 0x19f   : > { %v4977_v61 = vsel %vm1911_vm5, 1.0, %v9326_v43  ;;  %2681 = vperm.xlu1 %6766, %v9341_v23   ;;  %2630 = vperm.xlu0 %6767, %v9342_v19   ;;  %v9349_v29 = vld [vmem:[#allocation10_spill] sm:$0xff] }
 0x1a0   : > { %v6157_v49 = vpack.c.bf16 %v4977_v61, %v4976_v11  ;;  %v1844_v37 = vpop.permute.xlu1 %1843  ;;  %v9350_v11 = vld [vmem:[#allocation13_spill] sm:$0xff] }
 0x1a1   : > { %v1847_v3 = vpop.permute.xlu0 %1846  ;;  %vm1942_vm13 = vcmp.eq.s32.totalorder %v1844_v37, %v7431_v25  ;;  %v2090_v37 = vld [vmem:[%s9073_s3 + $0x10] sm:$0xff] }
 0x1a2   : > { %vm1943_vm14 = vcmp.eq.s32.totalorder %v1847_v3, %v7431_v25  ;;  %6159 = vmatpush3.bf16.xpose.msk.msra.mxu0 %vm8000_vm15, %v6157_v49  ;;  %v5008_v21 = vsel %vm1942_vm13, 1.0, %v9326_v43 }
 0x1a3   : > { %v5009_v35 = vsel %vm1943_vm14, 1.0, %v9326_v43  ;;  %2537 = vperm.xlu1 %6766, %v9343_v28   ;;  %6768 = vset.pattern.permute.xlu0 %v6876_v34 }
 0x1a4   : > { %v6205_v41 = vpack.c.bf16 %v5009_v35, %v5008_v21  ;;  %3327 = vperm.xlu0 %6768, %v9344_v7   ;;  %v9351_v21 = vld [vmem:[#allocation7_spill] sm:$0xff]  ;;  %v9352_v35 = vld [vmem:[#allocation17_spill] sm:$0xff] }
 0x1a5   : > { %v2541_v39 = vpop.permute.xlu1 %2540 }
 0x1a6   : > { %6207 = vmatpush3.bf16.xpose.msk.msra.mxu1 %vm8000_vm15, %v6205_v41  ;;  %v2544_v13 = vpop.permute.xlu0 %2543  ;;  %vm2699_vm1 = vcmp.eq.s32.totalorder %v2541_v39, %v7431_v25  ;;  %v2091_v39 = vld [vmem:[%s9073_s3 + $0x18] sm:$0xff] }
 0x1a7   : > { %vm2700_vm3 = vcmp.eq.s32.totalorder %v2544_v13, %v7431_v25  ;;  %2633 = vperm.xlu1 %6766, %v9345_v30   ;;  %v5114_v56 = vsel %vm2699_vm1, 1.0, %v9326_v43 }
 0x1a8   : > { %v5115_v32 = vsel %vm2700_vm3, 1.0, %v9326_v43  ;;  %3426 = vperm.xlu0 %6768, %v9346_v46   ;;  %v9354_v46 = vld [vmem:[#allocation20_spill] sm:$0xff] }
 0x1a9   : > { %v6208_v22 = vpack.c.bf16 %v5115_v32, %v5114_v56  ;;  %5645 = vmatmul.mubr.msk.f32.vlgmr.msra.gmra.mrb[0].mxu0 %vm2092_vm12, %v8144_v59  ;;  %v2637_v44 = vpop.permute.xlu1 %2636  ;;  %v9353_v32 = vld [vmem:[#allocation14_spill] sm:$0xff] }
 0x1aa   : > { %v2493_v14 = vpop.permute.xlu0 %2492  ;;  %vm2731_vm15 = vcmp.eq.s32.totalorder %v2637_v44, %v7431_v25  ;;  %5646 = vmatprep.mubr.msk.f32.mxu0 %vm2092_vm12, %v2089_v9 }
 0x1ab   : > { %6769 = vset.pattern.permute.xlu1 %v6876_v34  ;;  %6210 = vmatprep.subr.msk.bf16.mxu0 %vm8340_vm4, %v6208_v22  ;;  %v5146_v3 = vsel %vm2731_vm15, 1.0, %v9326_v43  ;;  %vm2683_vm7 = vcmp.eq.s32.totalorder %v2493_v14, %v7431_v25 }
 0x1ac   : > { %3330 = vperm.xlu1 %6769, %v9349_v29   ;;  %3282 = vperm.xlu0 %6768, %v9350_v11   ;;  %v5098_v13 = vsel %vm2683_vm7, 1.0, %v9326_v43 }
 0x1ad   : > { %5685 = vmatmul.mubr.msk.f32.vlgmr.msra.gmra.mrb[0].mxu1 %vm2092_vm12, %v8144_v59  ;;  %5647 = vmatmul.mubr.msk.f32.gmra.mrb[2].mxu0 %vm2092_vm12, %v2089_v9 }
 0x1ae   : > { %v2640_v61 = vpop.permute.xlu1 %2639  ;;  %v2589_v49 = vpop.permute.xlu0 %2588  ;;  %5686 = vmatprep.mubr.msk.f32.mxu1 %vm2092_vm12, %v2089_v9  ;;  %5648 = vmatprep.mubr.msk.f32.mxu0 %vm2092_vm12, %v2090_v37 }
 0x1af   : > { %vm2732_vm6 = vcmp.eq.s32.totalorder %v2640_v61, %v7431_v25  ;;  %vm2715_vm11 = vcmp.eq.s32.totalorder %v2589_v49, %v7431_v25  ;;  %v9355_v61 = vld [vmem:[#allocation18_spill] sm:$0xff]  ;;  %v9356_v49 = vld [vmem:[#allocation24_spill] sm:$0xff] }
 0x1b0   : > { %v5147_v59 = vsel %vm2732_vm6, 1.0, %v9326_v43  ;;  %3423 = vperm.xlu1 %6769, %v9351_v21   ;;  %3378 = vperm.xlu0 %6768, %v9352_v35   ;;  %v5130_v29 = vsel %vm2715_vm11, 1.0, %v9326_v43 }
 0x1b1   : > { %v6256_v34 = vpack.c.bf16 %v5147_v59, %v5146_v3  ;;  %5687 = vmatmul.mubr.msk.f32.gmra.mrb[2].mxu1 %vm2092_vm12, %v2089_v9  ;;  %5649 = vmatmul.mubr.msk.f32.gmra.mrb[4].mxu0 %vm2092_vm12, %v2090_v37  ;;  %v8390_v9 = vld [vmem:[%s9074_s4] sm:$0xff] }
 0x1b2   : > { %v2496_v41 = vpop.permute.xlu1 %2495  ;;  %v2547_v7 = vpop.permute.xlu0 %2546  ;;  %5688 = vmatprep.mubr.msk.f32.mxu1 %vm2092_vm12, %v2090_v37  ;;  %5650 = vmatprep.mubr.msk.f32.mxu0 %vm2092_vm12, %v2091_v39 }
 0x1b3   : > { %vm2684_vm10 = vcmp.eq.s32.totalorder %v2496_v41, %v7431_v25  ;;  %6258 = vmatprep.subr.msk.bf16.mxu1 %vm8340_vm4, %v6256_v34  ;;  %vm2701_vm5 = vcmp.eq.s32.totalorder %v2547_v7, %v7431_v25  ;;  %v9357_v34 = vld [vmem:[#allocation21_spill] sm:$0xff]  ;;  %v9358_v41 = vld [vmem:[#allocation28_spill] sm:$0xff] }
 0x1b4   : > { %v5099_v56 = vsel %vm2684_vm10, 1.0, %v9326_v43  ;;  %3279 = vperm.xlu1 %6769, %v9353_v32   ;;  %3336 = vperm.xlu0 %6768, %v9354_v46   ;;  %v5116_v21 = vsel %vm2701_vm5, 1.0, %v9326_v43  ;;  %v9359_v46 = vld [vmem:[#allocation25_spill] sm:$0xff] }
 0x1b5   : > { %v6211_v22 = vpack.c.bf16 %v5099_v56, %v5098_v13  ;;  %5689 = vmatmul.mubr.msk.f32.gmra.mrb[4].mxu1 %vm2092_vm12, %v2090_v37  ;;  %5651 = vmatmul.mubr.msk.f32.gmra.mrb[6].mxu0 %vm2092_vm12, %v2091_v39 }
 0x1b6   : > { %v2592_v44 = vpop.permute.xlu1 %2591  ;;  %v2643_v14 = vpop.permute.xlu0 %2642  ;;  %5690 = vmatprep.mubr.msk.f32.mxu1 %vm2092_vm12, %v2091_v39  ;;  %5724 = vmatprep.mubr.msk.f32.mxu0 %vm2879_vm0, %v8390_v9 }
 0x1b7   : > { %vm2716_vm2 = vcmp.eq.s32.totalorder %v2592_v44, %v7431_v25  ;;  %6213 = vmatpush3.bf16.xpose.msk.msra.mxu0 %vm8340_vm4, %v6211_v22  ;;  %v9360_v22 = vld [vmem:[#allocation32_spill] sm:$0xff] }
 0x1b8   : > { %v5131_v11 = vsel %vm2716_vm2, 1.0, %v9326_v43  ;;  %3375 = vperm.xlu1 %6769, %v9355_v61   ;;  %3432 = vperm.xlu0 %6768, %v9356_v49   ;;  %v9361_v49 = vld [vmem:[#allocation29_spill] sm:$0xff] }
 0x1b9   : > { %v6259_v37 = vpack.c.bf16 %v5131_v11, %v5130_v29  ;;  %5691 = vmatmul.mubr.msk.f32.gmra.mrb[6].mxu1 %vm2092_vm12, %v2091_v39  ;;  %vm2733_vm12 = vcmp.eq.s32.totalorder %v2643_v14, %v7431_v25 }
 0x1ba   : > { %v2550_v3 = vpop.permute.xlu1 %2549  ;;  %v2499_v59 = vpop.permute.xlu0 %2498  ;;  %5764 = vmatprep.mubr.msk.f32.mxu1 %vm2879_vm0, %v8390_v9  ;;  %v5148_v56 = vsel %vm2733_vm12, 1.0, %v9326_v43 }
 0x1bb   : > { %vm2702_vm13 = vcmp.eq.s32.totalorder %v2550_v3, %v7431_v25  ;;  %6261 = vmatpush3.bf16.xpose.msk.msra.mxu1 %vm8340_vm4, %v6259_v37  ;;  %vm2685_vm1 = vcmp.eq.s32.totalorder %v2499_v59, %v7431_v25  ;;  %v9362_v37 = vld [vmem:[#allocation36_spill] sm:$0xff] }
 0x1bc   : > { %v5117_v35 = vsel %vm2702_vm13, 1.0, %v9326_v43  ;;  %3333 = vperm.xlu1 %6769, %v9357_v34   ;;  %3288 = vperm.xlu0 %6768, %v9358_v41   ;;  %v5100_v11 = vsel %vm2685_vm1, 1.0, %v9326_v43  ;;  %v9363_v41 = vld [vmem:[#allocation33_spill] sm:$0xff] }
 0x1bd   : > { %v6214_v7 = vpack.c.bf16 %v5117_v35, %v5116_v21 }
 0x1be   : > { %v2646_v39 = vpop.permute.xlu1 %2645  ;;  %v2595_v13 = vpop.permute.xlu0 %2594 }
 0x1bf   : > { %vm2734_vm14 = vcmp.eq.s32.totalorder %v2646_v39, %v7431_v25  ;;  %6216 = vmatprep.subr.msk.bf16.mxu0 %vm8340_vm4, %v6214_v7  ;;  %vm2717_vm15 = vcmp.eq.s32.totalorder %v2595_v13, %v7431_v25  ;;  %v9364_v7 = vld [vmem:[#allocation40_spill] sm:$0xff] }
 0x1c0   : > { %v5149_v32 = vsel %vm2734_vm14, 1.0, %v9326_v43  ;;  %3429 = vperm.xlu1 %6769, %v9359_v46   ;;  %3384 = vperm.xlu0 %6768, %v9360_v22   ;;  %v5132_v35 = vsel %vm2717_vm15, 1.0, %v9326_v43  ;;  %v9365_v22 = vld [vmem:[#allocation37_spill] sm:$0xff] }
 0x1c1   : > { %v6262_v44 = vpack.c.bf16 %v5149_v32, %v5148_v56 }
 0x1c2   : > { %v2502_v14 = vpop.permute.xlu1 %2501  ;;  %v2553_v29 = vpop.permute.xlu0 %2552 }
 0x1c3   : > { %vm2686_vm3 = vcmp.eq.s32.totalorder %v2502_v14, %v7431_v25  ;;  %6264 = vmatprep.subr.msk.bf16.mxu1 %vm8340_vm4, %v6262_v44  ;;  %vm2703_vm7 = vcmp.eq.s32.totalorder %v2553_v29, %v7431_v25 }
 0x1c4   : > { %v5101_v61 = vsel %vm2686_vm3, 1.0, %v9326_v43  ;;  %3285 = vperm.xlu1 %6769, %v9361_v49   ;;  %3342 = vperm.xlu0 %6768, %v9362_v37   ;;  %v5118_v32 = vsel %vm2703_vm7, 1.0, %v9326_v43  ;;  %v9366_v49 = vld [vmem:[#allocation41_spill] sm:$0xff]  ;;  %v9367_v37 = vld [vmem:[#allocation43_spill] sm:$0xff] }
 0x1c5   : > { %v6217_v3 = vpack.c.bf16 %v5101_v61, %v5100_v11 }
 0x1c6   : > { %v2598_v59 = vpop.permute.xlu1 %2597  ;;  %v2649_v21 = vpop.permute.xlu0 %2648 }
 0x1c7   : > { %vm2718_vm6 = vcmp.eq.s32.totalorder %v2598_v59, %v7431_v25  ;;  %6219 = vmatpush3.bf16.xpose.msk.msra.mxu0 %vm8340_vm4, %v6217_v3  ;;  %vm2735_vm11 = vcmp.eq.s32.totalorder %v2649_v21, %v7431_v25 }
 0x1c8   : > { %v5133_v34 = vsel %vm2718_vm6, 1.0, %v9326_v43  ;;  %3381 = vperm.xlu1 %6769, %v9363_v41   ;;  %3438 = vperm.xlu0 %6768, %v9364_v7   ;;  %v5150_v11 = vsel %vm2735_vm11, 1.0, %v9326_v43 }
 0x1c9   : > { %v6265_v39 = vpack.c.bf16 %v5133_v34, %v5132_v35  ;;  %v9368_v34 = vld [vmem:[#allocation42_spill] sm:$0xff] }
 0x1ca   : > { %v2556_v13 = vpop.permute.xlu1 %2555  ;;  %v2505_v56 = vpop.permute.xlu0 %2504 }
 0x1cb   : > { %vm2704_vm10 = vcmp.eq.s32.totalorder %v2556_v13, %v7431_v25  ;;  %6267 = vmatpush3.bf16.xpose.msk.msra.mxu1 %vm8340_vm4, %v6265_v39  ;;  %vm2687_vm5 = vcmp.eq.s32.totalorder %v2505_v56, %v7431_v25 }
 0x1cc   : > { %v5119_v46 = vsel %vm2704_vm10, 1.0, %v9326_v43  ;;  %3339 = vperm.xlu1 %6769, %v9365_v22   ;;  %3294 = vperm.xlu0 %6768, %v7220_v4   ;;  %v5102_v21 = vsel %vm2687_vm5, 1.0, %v9326_v43 }
 0x1cd   : > { %v6220_v44 = vpack.c.bf16 %v5119_v46, %v5118_v32  ;;  %v9369_v32 = vld [vmem:[#allocation44_spill] sm:$0xff] }
 0x1ce   : > { %v2652_v14 = vpop.permute.xlu1 %2651  ;;  %v2601_v29 = vpop.permute.xlu0 %2600 }
 0x1cf   : > { %vm2736_vm2 = vcmp.eq.s32.totalorder %v2652_v14, %v7431_v25  ;;  %6222 = vmatprep.subr.msk.bf16.mxu0 %vm8340_vm4, %v6220_v44  ;;  %vm2719_vm12 = vcmp.eq.s32.totalorder %v2601_v29, %v7431_v25  ;;  %v9370_v29 = vld [vmem:[#allocation45_spill] sm:$0xff] }
 0x1d0   : > { %v5151_v61 = vsel %vm2736_vm2, 1.0, %v9326_v43  ;;  %3435 = vperm.xlu1 %6769, %v9366_v49   ;;  %3390 = vperm.xlu0 %6768, %v9367_v37   ;;  %v5134_v13 = vsel %vm2719_vm12, 1.0, %v9326_v43 }
 0x1d1   : > { %v6268_v4 = vpack.c.bf16 %v5151_v61, %v5150_v11 }
 0x1d2   : > { %v2508_v3 = vpop.permute.xlu1 %2507  ;;  %v2559_v59 = vpop.permute.xlu0 %2558 }
 0x1d3   : > { %vm2688_vm13 = vcmp.eq.s32.totalorder %v2508_v3, %v7431_v25  ;;  %6270 = vmatprep.subr.msk.bf16.mxu1 %vm8340_vm4, %v6268_v4  ;;  %vm2705_vm1 = vcmp.eq.s32.totalorder %v2559_v59, %v7431_v25  ;;  %v9371_v4 = vld [vmem:[#allocation46_spill] sm:$0xff] }
 0x1d4   : > { %v5103_v35 = vsel %vm2688_vm13, 1.0, %v9326_v43  ;;  %3291 = vperm.xlu1 %6769, %v9368_v34   ;;  %3348 = vperm.xlu0 %6768, %v7238_v42   ;;  %v5120_v44 = vsel %vm2705_vm1, 1.0, %v9326_v43 }
 0x1d5   : > { %v6223_v41 = vpack.c.bf16 %v5103_v35, %v5102_v21 }
 0x1d6   : > { %v2604_v7 = vpop.permute.xlu1 %2603  ;;  %v2655_v39 = vpop.permute.xlu0 %2654 }
 0x1d7   : > { %vm2720_vm14 = vcmp.eq.s32.totalorder %v2604_v7, %v7431_v25  ;;  %6225 = vmatpush3.bf16.xpose.msk.msra.mxu0 %vm8340_vm4, %v6223_v41  ;;  %vm2737_vm15 = vcmp.eq.s32.totalorder %v2655_v39, %v7431_v25 }
 0x1d8   : > { %v5135_v56 = vsel %vm2720_vm14, 1.0, %v9326_v43  ;;  %3387 = vperm.xlu1 %6769, %v9369_v32   ;;  %3444 = vperm.xlu0 %6768, %v7244_v40   ;;  %v5152_v49 = vsel %vm2737_vm15, 1.0, %v9326_v43 }
 0x1d9   : > { %v6271_v42 = vpack.c.bf16 %v5135_v56, %v5134_v13  ;;  %v9372_v13 = vld [vmem:[#allocation47_spill] sm:$0xff] }
 0x1da   : > { %v2562_v46 = vpop.permute.xlu1 %2561  ;;  %v2511_v22 = vpop.permute.xlu0 %2510 }
 0x1db   : > { %vm2706_vm3 = vcmp.eq.s32.totalorder %v2562_v46, %v7431_v25  ;;  %6273 = vmatpush3.bf16.xpose.msk.msra.mxu1 %vm8340_vm4, %v6271_v42  ;;  %vm2689_vm7 = vcmp.eq.s32.totalorder %v2511_v22, %v7431_v25 }
 0x1dc   : > { %v5121_v14 = vsel %vm2706_vm3, 1.0, %v9326_v43  ;;  %3345 = vperm.xlu1 %6769, %v9370_v29   ;;  %3300 = vperm.xlu0 %6768, %v7252_v10   ;;  %v5104_v21 = vsel %vm2689_vm7, 1.0, %v9326_v43 }
 0x1dd   : > { %v6226_v40 = vpack.c.bf16 %v5121_v14, %v5120_v44 }
 0x1de   : > { %v2658_v11 = vpop.permute.xlu1 %2657  ;;  %v2607_v61 = vpop.permute.xlu0 %2606 }
 0x1df   : > { %vm2738_vm6 = vcmp.eq.s32.totalorder %v2658_v11, %v7431_v25  ;;  %6228 = vmatprep.subr.msk.bf16.mxu0 %vm8340_vm4, %v6226_v40  ;;  %vm2721_vm11 = vcmp.eq.s32.totalorder %v2607_v61, %v7431_v25 }
 0x1e0   : > { %v5153_v37 = vsel %vm2738_vm6, 1.0, %v9326_v43  ;;  %3441 = vperm.xlu1 %6769, %v9371_v4   ;;  %3396 = vperm.xlu0 %6768, %v7262_v47   ;;  %v5136_v7 = vsel %vm2721_vm11, 1.0, %v9326_v43 }
 0x1e1   : > { %v6274_v10 = vpack.c.bf16 %v5153_v37, %v5152_v49 }
 0x1e2   : > { %v2514_v3 = vpop.permute.xlu1 %2513  ;;  %v2565_v59 = vpop.permute.xlu0 %2564 }
 0x1e3   : > { %vm2690_vm10 = vcmp.eq.s32.totalorder %v2514_v3, %v7431_v25  ;;  %6276 = vmatprep.subr.msk.bf16.mxu1 %vm8340_vm4, %v6274_v10  ;;  %vm2707_vm5 = vcmp.eq.s32.totalorder %v2565_v59, %v7431_v25 }
 0x1e4   : > { %v5105_v35 = vsel %vm2690_vm10, 1.0, %v9326_v43  ;;  %3297 = vperm.xlu1 %6769, %v7254_v1   ;;  %3354 = vperm.xlu0 %6768, %v7270_v53   ;;  %v5122_v32 = vsel %vm2707_vm5, 1.0, %v9326_v43 }
 0x1e5   : > { %v6229_v47 = vpack.c.bf16 %v5105_v35, %v5104_v21 }
 0x1e6   : > { %v2610_v34 = vpop.permute.xlu1 %2609  ;;  %v2661_v41 = vpop.permute.xlu0 %2660 }
 0x1e7   : > { %vm2722_vm2 = vcmp.eq.s32.totalorder %v2610_v34, %v7431_v25  ;;  %6231 = vmatpush3.bf16.xpose.msk.msra.mxu0 %vm8340_vm4, %v6229_v47  ;;  %vm2739_vm12 = vcmp.eq.s32.totalorder %v2661_v41, %v7431_v25 }
 0x1e8   : > { %v5137_v39 = vsel %vm2722_vm2, 1.0, %v9326_v43  ;;  %3393 = vperm.xlu1 %6769, %v9372_v13   ;;  %3450 = vperm.xlu0 %6768, %v7276_v51   ;;  %v5154_v44 = vsel %vm2739_vm12, 1.0, %v9326_v43 }
 0x1e9   : > { %v6277_v1 = vpack.c.bf16 %v5137_v39, %v5136_v7 }
 0x1ea   : > { %v2568_v53 = vpop.permute.xlu1 %2567  ;;  %v2517_v56 = vpop.permute.xlu0 %2516 }
 0x1eb   : > { %vm2708_vm13 = vcmp.eq.s32.totalorder %v2568_v53, %v7431_v25  ;;  %6279 = vmatpush3.bf16.xpose.msk.msra.mxu1 %vm8340_vm4, %v6277_v1  ;;  %vm2691_vm1 = vcmp.eq.s32.totalorder %v2517_v56, %v7431_v25 }
 0x1ec   : > { %v5123_v42 = vsel %vm2708_vm13, 1.0, %v9326_v43  ;;  %3351 = vperm.xlu1 %6769, %v7272_v54   ;;  %3306 = vperm.xlu0 %6768, %v7284_v52   ;;  %v5106_v40 = vsel %vm2691_vm1, 1.0, %v9326_v43 }
 0x1ed   : > { %v6232_v51 = vpack.c.bf16 %v5123_v42, %v5122_v32 }
 0x1ee   : > { %v2664_v46 = vpop.permute.xlu1 %2663  ;;  %v2613_v22 = vpop.permute.xlu0 %2612 }
 0x1ef   : > { %vm2740_vm14 = vcmp.eq.s32.totalorder %v2664_v46, %v7431_v25  ;;  %6234 = vmatprep.subr.msk.bf16.mxu0 %vm8340_vm4, %v6232_v51  ;;  %vm2723_vm15 = vcmp.eq.s32.totalorder %v2613_v22, %v7431_v25 }
 0x1f0   : > { %v5155_v14 = vsel %vm2740_vm14, 1.0, %v9326_v43  ;;  %3447 = vperm.xlu1 %6769, %v7278_v27   ;;  %3402 = vperm.xlu0 %6768, %v7298_v57   ;;  %v5138_v49 = vsel %vm2723_vm15, 1.0, %v9326_v43 }
 0x1f1   : > { %v6280_v54 = vpack.c.bf16 %v5155_v14, %v5154_v44 }
 0x1f2   : > { %v2520_v52 = vpop.permute.xlu1 %2519  ;;  %v2571_v29 = vpop.permute.xlu0 %2570 }
 0x1f3   : > { %vm2692_vm3 = vcmp.eq.s32.totalorder %v2520_v52, %v7431_v25  ;;  %6282 = vmatprep.subr.msk.bf16.mxu1 %vm8340_vm4, %v6280_v54  ;;  %vm2709_vm7 = vcmp.eq.s32.totalorder %v2571_v29, %v7431_v25 }
 0x1f4   : > { %v5107_v11 = vsel %vm2692_vm3, 1.0, %v9326_v43  ;;  %3303 = vperm.xlu1 %6769, %v7286_v45   ;;  %3360 = vperm.xlu0 %6768, %v7312_v0   ;;  %v5124_v10 = vsel %vm2709_vm7, 1.0, %v9326_v43 }
 0x1f5   : > { %v6235_v27 = vpack.c.bf16 %v5107_v11, %v5106_v40 }
 0x1f6   : > { %v2616_v57 = vpop.permute.xlu1 %2615  ;;  %v2667_v61 = vpop.permute.xlu0 %2666 }
 0x1f7   : > { %vm2724_vm6 = vcmp.eq.s32.totalorder %v2616_v57, %v7431_v25  ;;  %6237 = vmatpush3.bf16.xpose.msk.msra.mxu0 %vm8340_vm4, %v6235_v27  ;;  %vm2741_vm11 = vcmp.eq.s32.totalorder %v2667_v61, %v7431_v25 }
 0x1f8   : > { %v5139_v37 = vsel %vm2724_vm6, 1.0, %v9326_v43  ;;  %3399 = vperm.xlu1 %6769, %v7300_v58   ;;  %3456 = vperm.xlu0 %6768, %v9332_v48   ;;  %v5156_v21 = vsel %vm2741_vm11, 1.0, %v9326_v43 }
 0x1f9   : > { %v6283_v45 = vpack.c.bf16 %v5139_v37, %v5138_v49 }
 0x1fa   : > { %v2574_v0 = vpop.permute.xlu1 %2573  ;;  %v2523_v4 = vpop.permute.xlu0 %2522 }
 0x1fb   : > { %vm2710_vm10 = vcmp.eq.s32.totalorder %v2574_v0, %v7431_v25  ;;  %6285 = vmatpush3.bf16.xpose.msk.msra.mxu1 %vm8340_vm4, %v6283_v45  ;;  %vm2693_vm5 = vcmp.eq.s32.totalorder %v2523_v4, %v7431_v25 }
 0x1fc   : > { %v5125_v3 = vsel %vm2710_vm10, 1.0, %v9326_v43  ;;  %3357 = vperm.xlu1 %6769, %v7314_v24   ;;  %3312 = vperm.xlu0 %6768, %v9333_v38   ;;  %v5108_v34 = vsel %vm2693_vm5, 1.0, %v9326_v43 }
 0x1fd   : > { %v6238_v58 = vpack.c.bf16 %v5125_v3, %v5124_v10 }
 0x1fe   : > { %v2670_v48 = vpop.permute.xlu1 %2669  ;;  %v2619_v59 = vpop.permute.xlu0 %2618 }
 0x1ff   : > { %vm2742_vm2 = vcmp.eq.s32.totalorder %v2670_v48, %v7431_v25  ;;  %6240 = vmatprep.subr.msk.bf16.mxu0 %vm8340_vm4, %v6238_v58  ;;  %vm2725_vm12 = vcmp.eq.s32.totalorder %v2619_v59, %v7431_v25  ;;  %v2876_v59 = vld [vmem:[%s9074_s4 + $0x8] sm:$0xff] }
 0x200   : > { %v5157_v35 = vsel %vm2742_vm2, 1.0, %v9326_v43  ;;  %3453 = vperm.xlu1 %6769, %v7322_v16   ;;  %3408 = vperm.xlu0 %6768, %v9334_v2   ;;  %v5140_v39 = vsel %vm2725_vm12, 1.0, %v9326_v43 }
 0x201   : > { %v6286_v24 = vpack.c.bf16 %v5157_v35, %v5156_v21 }
 0x202   : > { %v2526_v38 = vpop.permute.xlu1 %2525  ;;  %v2577_v47 = vpop.permute.xlu0 %2576 }
 0x203   : > { %vm2694_vm13 = vcmp.eq.s32.totalorder %v2526_v38, %v7431_v25  ;;  %6288 = vmatprep.subr.msk.bf16.mxu1 %vm8340_vm4, %v6286_v24  ;;  %vm2711_vm1 = vcmp.eq.s32.totalorder %v2577_v47, %v7431_v25  ;;  %v2877_v38 = vld [vmem:[%s9074_s4 + $0x10] sm:$0xff] }
 0x204   : > { %v5109_v41 = vsel %vm2694_vm13, 1.0, %v9326_v43  ;;  %3309 = vperm.xlu1 %6769, %v7330_v31   ;;  %3366 = vperm.xlu0 %6768, %v9335_v20   ;;  %v5126_v53 = vsel %vm2711_vm1, 1.0, %v9326_v43 }
 0x205   : > { %v6241_v16 = vpack.c.bf16 %v5109_v41, %v5108_v34 }
 0x206   : > { %v2622_v2 = vpop.permute.xlu1 %2621  ;;  %v2673_v7 = vpop.permute.xlu0 %2672 }
 0x207   : > { %vm2726_vm14 = vcmp.eq.s32.totalorder %v2622_v2, %v7431_v25  ;;  %6243 = vmatpush3.bf16.xpose.msk.msra.mxu0 %vm8340_vm4, %v6241_v16  ;;  %vm2743_vm15 = vcmp.eq.s32.totalorder %v2673_v7, %v7431_v25  ;;  %v2878_v7 = vld [vmem:[%s9074_s4 + $0x18] sm:$0xff] }
 0x208   : > { %v5141_v13 = vsel %vm2726_vm14, 1.0, %v9326_v43  ;;  %3405 = vperm.xlu1 %6769, %v7344_v8   ;;  %3462 = vperm.xlu0 %6768, %v9337_v36   ;;  %v5158_v42 = vsel %vm2743_vm15, 1.0, %v9326_v43 }
 0x209   : > { %v6289_v31 = vpack.c.bf16 %v5141_v13, %v5140_v39 }
 0x20a   : > { %v2580_v20 = vpop.permute.xlu1 %2579  ;;  %v2529_v1 = vpop.permute.xlu0 %2528 }
 0x20b   : > { %vm2712_vm3 = vcmp.eq.s32.totalorder %v2580_v20, %v7431_v25  ;;  %6291 = vmatpush3.bf16.xpose.msk.msra.mxu1 %vm8340_vm4, %v6289_v31  ;;  %vm2695_vm7 = vcmp.eq.s32.totalorder %v2529_v1, %v7431_v25  ;;  %v8678_v1 = vld [vmem:[%s9075_s5] sm:$0xff] }
 0x20c   : > { %v5127_v56 = vsel %vm2712_vm3, 1.0, %v9326_v43  ;;  %3363 = vperm.xlu1 %6769, %v7358_v55   ;;  %3318 = vperm.xlu0 %6768, %v9338_v50   ;;  %v5110_v22 = vsel %vm2695_vm7, 1.0, %v9326_v43 }
 0x20d   : > { %v6244_v8 = vpack.c.bf16 %v5127_v56, %v5126_v53 }
 0x20e   : > { %v2676_v36 = vpop.permute.xlu1 %2675  ;;  %v2625_v32 = vpop.permute.xlu0 %2624 }
 0x20f   : > { %vm2744_vm6 = vcmp.eq.s32.totalorder %v2676_v36, %v7431_v25  ;;  %6246 = vmatprep.subr.msk.bf16.mxu0 %vm8340_vm4, %v6244_v8  ;;  %vm2727_vm11 = vcmp.eq.s32.totalorder %v2625_v32, %v7431_v25 }
 0x210   : > { %v5159_v51 = vsel %vm2744_vm6, 1.0, %v9326_v43  ;;  %3459 = vperm.xlu1 %6769, %v7366_v12   ;;  %3414 = vperm.xlu0 %6768, %v9276_v6   ;;  %v5142_v54 = vsel %vm2727_vm11, 1.0, %v9326_v43 }
 0x211   : > { %v6292_v55 = vpack.c.bf16 %v5159_v51, %v5158_v42 }
 0x212   : > { %v2532_v50 = vpop.permute.xlu1 %2531  ;;  %v2583_v46 = vpop.permute.xlu0 %2582 }
 0x213   : > { %vm2696_vm10 = vcmp.eq.s32.totalorder %v2532_v50, %v7431_v25  ;;  %6294 = vmatprep.subr.msk.bf16.mxu1 %vm8340_vm4, %v6292_v55  ;;  %vm2713_vm5 = vcmp.eq.s32.totalorder %v2583_v46, %v7431_v25 }
 0x214   : > { %v5111_v44 = vsel %vm2696_vm10, 1.0, %v9326_v43  ;;  %3315 = vperm.xlu1 %6769, %v9336_v5   ;;  %3372 = vperm.xlu0 %6768, %v9339_v18   ;;  %v5128_v40 = vsel %vm2713_vm5, 1.0, %v9326_v43  ;;  %vm3666_vm10 = vcmask 326656  }
 0x215   : > { %v6247_v12 = vpack.c.bf16 %v5111_v44, %v5110_v22  ;;  %v4065_v22 = vld [vmem:[%s9076_s6] sm:$0xff]  ;;  %v4066_v44 = vld [vmem:[%s9076_s6 + $0x8] sm:$0xff] }
 0x216   : > { %v2628_v6 = vpop.permute.xlu1 %2627  ;;  %v2679_v14 = vpop.permute.xlu0 %2678 }
 0x217   : > { %vm2728_vm2 = vcmp.eq.s32.totalorder %v2628_v6, %v7431_v25  ;;  %6249 = vmatpush3.bf16.xpose.msk.msra.mxu0 %vm8340_vm4, %v6247_v12  ;;  %vm2745_vm12 = vcmp.eq.s32.totalorder %v2679_v14, %v7431_v25  ;;  %v6877_v12 = vmov 0  }
 0x218   : > { %v5143_v52 = vsel %vm2728_vm2, 1.0, %v9326_v43  ;;  %3411 = vperm.xlu1 %6769, %v9275_v63   ;;  %3468 = vperm.xlu0 %6768, %v9341_v23   ;;  %v5160_v57 = vsel %vm2745_vm12, 1.0, %v9326_v43  ;;  %vm8637_vm2 = vmpackc.low %vm3666_vm10, %vm3666_vm10 }
 0x219   : > { %v6295_v5 = vpack.c.bf16 %v5143_v52, %v5142_v54  ;;  %v4067_v52 = vld [vmem:[%s9076_s6 + $0x10] sm:$0xff] }
 0x21a   : > { %v2586_v18 = vpop.permute.xlu1 %2585  ;;  %v2535_v29 = vpop.permute.xlu0 %2534 }
 0x21b   : > { %vm2714_vm13 = vcmp.eq.s32.totalorder %v2586_v18, %v7431_v25  ;;  %6297 = vmatpush3.bf16.xpose.msk.msra.mxu1 %vm8340_vm4, %v6295_v5  ;;  %vm2697_vm1 = vcmp.eq.s32.totalorder %v2535_v29, %v7431_v25  ;;  %v4123_v29 = vld [vmem:[%s9078_s8] sm:$0xff] }
 0x21c   : > { %v5129_v11 = vsel %vm2714_vm13, 1.0, %v9326_v43  ;;  %3369 = vperm.xlu1 %6769, %v7402_v62   ;;  %3324 = vperm.xlu0 %6768, %v9343_v28   ;;  %v5112_v37 = vsel %vm2697_vm1, 1.0, %v9326_v43 }
 0x21d   : > { %v6250_v63 = vpack.c.bf16 %v5129_v11, %v5128_v40 }
 0x21e   : > { %v2682_v23 = vpop.permute.xlu1 %2681  ;;  %v2631_v27 = vpop.permute.xlu0 %2630 }
 0x21f   : > { %vm2746_vm14 = vcmp.eq.s32.totalorder %v2682_v23, %v7431_v25  ;;  %6252 = vmatprep.subr.msk.bf16.mxu0 %vm8340_vm4, %v6250_v63  ;;  %vm2729_vm15 = vcmp.eq.s32.totalorder %v2631_v27, %v7431_v25  ;;  %v4068_v23 = vld [vmem:[%s9076_s6 + $0x18] sm:$0xff] }
 0x220   : > { %v5161_v61 = vsel %vm2746_vm14, 1.0, %v9326_v43  ;;  %3465 = vperm.xlu1 %6769, %v7410_v15   ;;  %3420 = vperm.xlu0 %6768, %v9345_v30   ;;  %v5144_v4 = vsel %vm2729_vm15, 1.0, %v9326_v43 }
 0x221   : > { %v6298_v62 = vpack.c.bf16 %v5161_v61, %v5160_v57  ;;  %v4597_v61 = vld [vmem:[#allocation2] sm:$0x1] }
 0x222   : > { %v2538_v28 = vpop.permute.xlu1 %2537 }
 0x223   : > { %vm2698_vm3 = vcmp.eq.s32.totalorder %v2538_v28, %v7431_v25  ;;  %6300 = vmatprep.subr.msk.bf16.mxu1 %vm8340_vm4, %v6298_v62  ;;  %v3328_v49 = vpop.permute.xlu0 %3327 }
 0x224   : > { %v5113_v45 = vsel %vm2698_vm3, 1.0, %v9326_v43  ;;  %3321 = vperm.xlu1 %6769, %v9340_v60   ;;  %vm3486_vm7 = vcmp.eq.s32.totalorder %v3328_v49, %v7431_v25  ;;  %6771 = vset.pattern.permute.xlu0 %v6877_v12 }
 0x225   : > { %v6253_v15 = vpack.c.bf16 %v5113_v45, %v5112_v37  ;;  %v5250_v60 = vsel %vm3486_vm7, 1.0, %v9326_v43  ;;  %4076 = vperm.xlu0 %6771, %v4066_v44   ;;  %v4124_v37 = vld [vmem:[%s9078_s8 + $0x8] sm:$0xff] }
 0x226   : > { %v2634_v30 = vpop.permute.xlu1 %2633 }
 0x227   : > { %vm2730_vm6 = vcmp.eq.s32.totalorder %v2634_v30, %v7431_v25  ;;  %6255 = vmatpush3.bf16.xpose.msk.msra.mxu0 %vm8340_vm4, %v6253_v15  ;;  %v3427_v0 = vpop.permute.xlu0 %3426 }
 0x228   : > { %v5145_v10 = vsel %vm2730_vm6, 1.0, %v9326_v43  ;;  %3417 = vperm.xlu1 %6769, %v9342_v19   ;;  %vm3519_vm5 = vcmp.eq.s32.totalorder %v3427_v0, %v7431_v25  ;;  %v3665_v19 = vld [vmem:[%s9075_s5 + $0x18] sm:$0xff] }
 0x229   : > { %v6301_v3 = vpack.c.bf16 %v5145_v10, %v5144_v4  ;;  %v5283_v47 = vsel %vm3519_vm5, 1.0, %v9326_v43  ;;  %4127 = vperm.xlu0 %6771, %v4123_v29  }
 0x22b   : > { %v3331_v58 = vpop.permute.xlu1 %3330  ;;  %6303 = vmatpush3.bf16.xpose.msk.msra.mxu1 %vm8340_vm4, %v6301_v3  ;;  %v3283_v48 = vpop.permute.xlu0 %3282 }
 0x22c   : > { %vm3487_vm11 = vcmp.eq.s32.totalorder %v3331_v58, %v7431_v25  ;;  %vm3471_vm13 = vcmp.eq.s32.totalorder %v3283_v48, %v7431_v25  ;;  %6770 = vset.pattern.permute.xlu1 %v6877_v12 }
 0x22d   : > { %v5251_v21 = vsel %vm3487_vm11, 1.0, %v9326_v43  ;;  %v5235_v39 = vsel %vm3471_vm13, 1.0, %v9326_v43  ;;  %4071 = vperm.xlu1 %6770, %v4065_v22   ;;  %4600 = vperm.xlu0 %6771, %v4597_v61  }
 0x22e   : > { %v6304_v35 = vpack.c.bf16 %v5251_v21, %v5250_v60  ;;  %5725 = vmatmul.mubr.msk.f32.vlgmr.msra.gmra.mrb[0].mxu0 %vm2879_vm0, %v8390_v9 }
 0x22f   : > { %v3424_v26 = vpop.permute.xlu1 %3423  ;;  %v3379_v24 = vpop.permute.xlu0 %3378  ;;  %5726 = vmatprep.mubr.msk.f32.mxu0 %vm2879_vm0, %v2876_v59 }
 0x230   : > { %vm3518_vm4 = vcmp.eq.s32.totalorder %v3424_v26, %v7431_v25  ;;  %6306 = vmatprep.subr.msk.bf16.mxu0 %vm8637_vm2, %v6304_v35  ;;  %vm3503_vm14 = vcmp.eq.s32.totalorder %v3379_v24, %v7431_v25 }
 0x231   : > { %v5282_v34 = vsel %vm3518_vm4, 1.0, %v9326_v43  ;;  %v5267_v53 = vsel %vm3503_vm14, 1.0, %v9326_v43  ;;  %4081 = vperm.xlu1 %6770, %v4067_v52  }
 0x232   : > { %v6352_v41 = vpack.c.bf16 %v5283_v47, %v5282_v34  ;;  %5765 = vmatmul.mubr.msk.f32.vlgmr.msra.gmra.mrb[0].mxu1 %vm2879_vm0, %v8390_v9  ;;  %5727 = vmatmul.mubr.msk.f32.gmra.mrb[2].mxu0 %vm2879_vm0, %v2876_v59 }
 0x233   : > { %v3280_v16 = vpop.permute.xlu1 %3279  ;;  %v3337_v2 = vpop.permute.xlu0 %3336  ;;  %5728 = vmatprep.mubr.msk.f32.mxu0 %vm2879_vm0, %v2877_v38  ;;  %5766 = vmatprep.mubr.msk.f32.mxu1 %vm2879_vm0, %v2876_v59 }
 0x234   : > { %vm3470_vm12 = vcmp.eq.s32.totalorder %v3280_v16, %v7431_v25  ;;  %6354 = vmatprep.subr.msk.bf16.mxu1 %vm8637_vm2, %v6352_v41  ;;  %vm3489_vm3 = vcmp.eq.s32.totalorder %v3337_v2, %v7431_v25 }
 0x235   : > { %v5234_v9 = vsel %vm3470_vm12, 1.0, %v9326_v43  ;;  %v5253_v42 = vsel %vm3489_vm3, 1.0, %v9326_v43  ;;  %4086 = vperm.xlu1 %6770, %v4068_v23  }
 0x236   : > { %v6307_v13 = vpack.c.bf16 %v5235_v39, %v5234_v9  ;;  %5729 = vmatmul.mubr.msk.f32.gmra.mrb[4].mxu0 %vm2879_vm0, %v2877_v38  ;;  %5767 = vmatmul.mubr.msk.f32.gmra.mrb[2].mxu1 %vm2879_vm0, %v2876_v59 }
 0x237   : > { %v3376_v31 = vpop.permute.xlu1 %3375  ;;  %v3433_v20 = vpop.permute.xlu0 %3432  ;;  %5730 = vmatprep.mubr.msk.f32.mxu0 %vm2879_vm0, %v2878_v7  ;;  %5768 = vmatprep.mubr.msk.f32.mxu1 %vm2879_vm0, %v2877_v38 }
 0x238   : > { %vm3502_vm1 = vcmp.eq.s32.totalorder %v3376_v31, %v7431_v25  ;;  %6309 = vmatpush3.bf16.xpose.msk.msra.mxu0 %vm8637_vm2, %v6307_v13  ;;  %vm3521_vm6 = vcmp.eq.s32.totalorder %v3433_v20, %v7431_v25 }
 0x239   : > { %v5266_v56 = vsel %vm3502_vm1, 1.0, %v9326_v43  ;;  %v5285_v6 = vsel %vm3521_vm6, 1.0, %v9326_v43  ;;  %4132 = vperm.xlu1 %6770, %v4124_v37  }
 0x23a   : > { %v6355_v8 = vpack.c.bf16 %v5267_v53, %v5266_v56  ;;  %5731 = vmatmul.mubr.msk.f32.gmra.mrb[6].mxu0 %vm2879_vm0, %v2878_v7  ;;  %5769 = vmatmul.mubr.msk.f32.gmra.mrb[4].mxu1 %vm2879_vm0, %v2877_v38 }
 0x23b   : > { %v3334_v36 = vpop.permute.xlu1 %3333  ;;  %v3289_v32 = vpop.permute.xlu0 %3288  ;;  %5770 = vmatprep.mubr.msk.f32.mxu1 %vm2879_vm0, %v2878_v7  ;;  %5804 = vmatprep.mubr.msk.f32.mxu0 %vm3666_vm10, %v8678_v1 }
 0x23c   : > { %vm3488_vm15 = vcmp.eq.s32.totalorder %v3334_v36, %v7431_v25  ;;  %6357 = vmatpush3.bf16.xpose.msk.msra.mxu1 %vm8637_vm2, %v6355_v8 }
 0x23d   : > { %v5252_v51 = vsel %vm3488_vm15, 1.0, %v9326_v43 }
 0x23e   : > { %v6310_v55 = vpack.c.bf16 %v5253_v42, %v5252_v51  ;;  %5771 = vmatmul.mubr.msk.f32.gmra.mrb[6].mxu1 %vm2879_vm0, %v2878_v7  ;;  %vm3473_vm0 = vcmp.eq.s32.totalorder %v3289_v32, %v7431_v25 }
 0x23f   : > { %v3430_v50 = vpop.permute.xlu1 %3429  ;;  %v3385_v46 = vpop.permute.xlu0 %3384  ;;  %5844 = vmatprep.mubr.msk.f32.mxu1 %vm3666_vm10, %v8678_v1  ;;  %v5237_v40 = vsel %vm3473_vm0, 1.0, %v9326_v43 }
 0x240   : > { %vm3520_vm7 = vcmp.eq.s32.totalorder %v3430_v50, %v7431_v25  ;;  %6312 = vmatprep.subr.msk.bf16.mxu0 %vm8637_vm2, %v6310_v55  ;;  %vm3505_vm5 = vcmp.eq.s32.totalorder %v3385_v46, %v7431_v25 }
 0x241   : > { %v5284_v14 = vsel %vm3520_vm7, 1.0, %v9326_v43  ;;  %v5269_v62 = vsel %vm3505_vm5, 1.0, %v9326_v43 }
 0x242   : > { %v6358_v54 = vpack.c.bf16 %v5285_v6, %v5284_v14 }
 0x243   : > { %v3286_v5 = vpop.permute.xlu1 %3285  ;;  %v3343_v18 = vpop.permute.xlu0 %3342 }
 0x244   : > { %vm3472_vm11 = vcmp.eq.s32.totalorder %v3286_v5, %v7431_v25  ;;  %6360 = vmatprep.subr.msk.bf16.mxu1 %vm8637_vm2, %v6358_v54  ;;  %vm3491_vm13 = vcmp.eq.s32.totalorder %v3343_v18, %v7431_v25 }
 0x245   : > { %v5236_v11 = vsel %vm3472_vm11, 1.0, %v9326_v43  ;;  %v5255_v30 = vsel %vm3491_vm13, 1.0, %v9326_v43 }
 0x246   : > { %v6313_v63 = vpack.c.bf16 %v5237_v40, %v5236_v11 }
 0x247   : > { %v3382_v27 = vpop.permute.xlu1 %3381  ;;  %v3439_v57 = vpop.permute.xlu0 %3438 }
 0x248   : > { %vm3504_vm4 = vcmp.eq.s32.totalorder %v3382_v27, %v7431_v25  ;;  %6315 = vmatpush3.bf16.xpose.msk.msra.mxu0 %vm8637_vm2, %v6313_v63  ;;  %vm3523_vm14 = vcmp.eq.s32.totalorder %v3439_v57, %v7431_v25 }
 0x249   : > { %v5268_v28 = vsel %vm3504_vm4, 1.0, %v9326_v43  ;;  %v5287_v60 = vsel %vm3523_vm14, 1.0, %v9326_v43 }
 0x24a   : > { %v6361_v49 = vpack.c.bf16 %v5269_v62, %v5268_v28 }
 0x24b   : > { %v3340_v45 = vpop.permute.xlu1 %3339  ;;  %v3295_v15 = vpop.permute.xlu0 %3294 }
 0x24c   : > { %vm3490_vm12 = vcmp.eq.s32.totalorder %v3340_v45, %v7431_v25  ;;  %6363 = vmatpush3.bf16.xpose.msk.msra.mxu1 %vm8637_vm2, %v6361_v49  ;;  %vm3475_vm3 = vcmp.eq.s32.totalorder %v3295_v15, %v7431_v25 }
 0x24d   : > { %v5254_v0 = vsel %vm3490_vm12, 1.0, %v9326_v43  ;;  %v5239_v35 = vsel %vm3475_vm3, 1.0, %v9326_v43 }
 0x24e   : > { %v6316_v4 = vpack.c.bf16 %v5255_v30, %v5254_v0 }
 0x24f   : > { %v3436_v10 = vpop.permute.xlu1 %3435  ;;  %v3391_v3 = vpop.permute.xlu0 %3390 }
 0x250   : > { %vm3522_vm1 = vcmp.eq.s32.totalorder %v3436_v10, %v7431_v25  ;;  %6318 = vmatprep.subr.msk.bf16.mxu0 %vm8637_vm2, %v6316_v4  ;;  %vm3507_vm6 = vcmp.eq.s32.totalorder %v3391_v3, %v7431_v25 }
 0x251   : > { %v5286_v58 = vsel %vm3522_vm1, 1.0, %v9326_v43  ;;  %v5271_v34 = vsel %vm3507_vm6, 1.0, %v9326_v43 }
 0x252   : > { %v6364_v48 = vpack.c.bf16 %v5287_v60, %v5286_v58 }
 0x253   : > { %v3292_v59 = vpop.permute.xlu1 %3291  ;;  %v3349_v21 = vpop.permute.xlu0 %3348 }
 0x254   : > { %vm3474_vm15 = vcmp.eq.s32.totalorder %v3292_v59, %v7431_v25  ;;  %6366 = vmatprep.subr.msk.bf16.mxu1 %vm8637_vm2, %v6364_v48  ;;  %vm3493_vm0 = vcmp.eq.s32.totalorder %v3349_v21, %v7431_v25 }
 0x255   : > { %v5238_v26 = vsel %vm3474_vm15, 1.0, %v9326_v43  ;;  %v5257_v39 = vsel %vm3493_vm0, 1.0, %v9326_v43 }
 0x256   : > { %v6319_v24 = vpack.c.bf16 %v5239_v35, %v5238_v26 }
 0x257   : > { %v3388_v38 = vpop.permute.xlu1 %3387  ;;  %v3445_v47 = vpop.permute.xlu0 %3444 }
 0x258   : > { %vm3506_vm7 = vcmp.eq.s32.totalorder %v3388_v38, %v7431_v25  ;;  %6321 = vmatpush3.bf16.xpose.msk.msra.mxu0 %vm8637_vm2, %v6319_v24  ;;  %vm3525_vm5 = vcmp.eq.s32.totalorder %v3445_v47, %v7431_v25 }
 0x259   : > { %v5270_v41 = vsel %vm3506_vm7, 1.0, %v9326_v43  ;;  %v5289_v53 = vsel %vm3525_vm5, 1.0, %v9326_v43 }
 0x25a   : > { %v6367_v16 = vpack.c.bf16 %v5271_v34, %v5270_v41 }
 0x25b   : > { %v3346_v2 = vpop.permute.xlu1 %3345  ;;  %v3301_v7 = vpop.permute.xlu0 %3300 }
 0x25c   : > { %vm3492_vm11 = vcmp.eq.s32.totalorder %v3346_v2, %v7431_v25  ;;  %6369 = vmatpush3.bf16.xpose.msk.msra.mxu1 %vm8637_vm2, %v6367_v16  ;;  %vm3477_vm13 = vcmp.eq.s32.totalorder %v3301_v7, %v7431_v25 }
 0x25d   : > { %v5256_v9 = vsel %vm3492_vm11, 1.0, %v9326_v43  ;;  %v5241_v42 = vsel %vm3477_vm13, 1.0, %v9326_v43 }
 0x25e   : > { %v6322_v13 = vpack.c.bf16 %v5257_v39, %v5256_v9 }
 0x25f   : > { %v3442_v31 = vpop.permute.xlu1 %3441  ;;  %v3397_v20 = vpop.permute.xlu0 %3396 }
 0x260   : > { %vm3524_vm4 = vcmp.eq.s32.totalorder %v3442_v31, %v7431_v25  ;;  %6324 = vmatprep.subr.msk.bf16.mxu0 %vm8637_vm2, %v6322_v13  ;;  %vm3509_vm14 = vcmp.eq.s32.totalorder %v3397_v20, %v7431_v25 }
 0x261   : > { %v5288_v56 = vsel %vm3524_vm4, 1.0, %v9326_v43  ;;  %v5273_v22 = vsel %vm3509_vm14, 1.0, %v9326_v43 }
 0x262   : > { %v6370_v8 = vpack.c.bf16 %v5289_v53, %v5288_v56 }
 0x263   : > { %v3298_v36 = vpop.permute.xlu1 %3297  ;;  %v3355_v32 = vpop.permute.xlu0 %3354 }
 0x264   : > { %vm3476_vm12 = vcmp.eq.s32.totalorder %v3298_v36, %v7431_v25  ;;  %6372 = vmatprep.subr.msk.bf16.mxu1 %vm8637_vm2, %v6370_v8  ;;  %vm3495_vm3 = vcmp.eq.s32.totalorder %v3355_v32, %v7431_v25 }
 0x265   : > { %v5240_v51 = vsel %vm3476_vm12, 1.0, %v9326_v43  ;;  %v5259_v54 = vsel %vm3495_vm3, 1.0, %v9326_v43 }
 0x266   : > { %v6325_v55 = vpack.c.bf16 %v5241_v42, %v5240_v51 }
 0x267   : > { %v3394_v50 = vpop.permute.xlu1 %3393  ;;  %v3451_v46 = vpop.permute.xlu0 %3450 }
 0x268   : > { %vm3508_vm1 = vcmp.eq.s32.totalorder %v3394_v50, %v7431_v25  ;;  %6327 = vmatpush3.bf16.xpose.msk.msra.mxu0 %vm8637_vm2, %v6325_v55  ;;  %vm3527_vm6 = vcmp.eq.s32.totalorder %v3451_v46, %v7431_v25 }
 0x269   : > { %v5272_v44 = vsel %vm3508_vm1, 1.0, %v9326_v43  ;;  %v5291_v40 = vsel %vm3527_vm6, 1.0, %v9326_v43 }
 0x26a   : > { %v6373_v12 = vpack.c.bf16 %v5273_v22, %v5272_v44 }
 0x26b   : > { %v3352_v6 = vpop.permute.xlu1 %3351  ;;  %v3307_v14 = vpop.permute.xlu0 %3306 }
 0x26c   : > { %vm3494_vm15 = vcmp.eq.s32.totalorder %v3352_v6, %v7431_v25  ;;  %6375 = vmatpush3.bf16.xpose.msk.msra.mxu1 %vm8637_vm2, %v6373_v12  ;;  %vm3479_vm0 = vcmp.eq.s32.totalorder %v3307_v14, %v7431_v25 }
 0x26d   : > { %v5258_v52 = vsel %vm3494_vm15, 1.0, %v9326_v43  ;;  %v5243_v57 = vsel %vm3479_vm0, 1.0, %v9326_v43 }
 0x26e   : > { %v6328_v5 = vpack.c.bf16 %v5259_v54, %v5258_v52 }
 0x26f   : > { %v3448_v18 = vpop.permute.xlu1 %3447  ;;  %v3403_v29 = vpop.permute.xlu0 %3402 }
 0x270   : > { %vm3526_vm7 = vcmp.eq.s32.totalorder %v3448_v18, %v7431_v25  ;;  %6330 = vmatprep.subr.msk.bf16.mxu0 %vm8637_vm2, %v6328_v5  ;;  %vm3511_vm5 = vcmp.eq.s32.totalorder %v3403_v29, %v7431_v25 }
 0x271   : > { %v5290_v11 = vsel %vm3526_vm7, 1.0, %v9326_v43  ;;  %v5275_v37 = vsel %vm3511_vm5, 1.0, %v9326_v43 }
 0x272   : > { %v6376_v63 = vpack.c.bf16 %v5291_v40, %v5290_v11 }
 0x273   : > { %v3304_v23 = vpop.permute.xlu1 %3303  ;;  %v3361_v27 = vpop.permute.xlu0 %3360 }
 0x274   : > { %vm3478_vm11 = vcmp.eq.s32.totalorder %v3304_v23, %v7431_v25  ;;  %6378 = vmatprep.subr.msk.bf16.mxu1 %vm8637_vm2, %v6376_v63  ;;  %vm3497_vm13 = vcmp.eq.s32.totalorder %v3361_v27, %v7431_v25 }
 0x275   : > { %v5242_v61 = vsel %vm3478_vm11, 1.0, %v9326_v43  ;;  %v5261_v4 = vsel %vm3497_vm13, 1.0, %v9326_v43 }
 0x276   : > { %v6331_v62 = vpack.c.bf16 %v5243_v57, %v5242_v61 }
 0x277   : > { %v3400_v28 = vpop.permute.xlu1 %3399  ;;  %v3457_v49 = vpop.permute.xlu0 %3456 }
 0x278   : > { %vm3510_vm4 = vcmp.eq.s32.totalorder %v3400_v28, %v7431_v25  ;;  %6333 = vmatpush3.bf16.xpose.msk.msra.mxu0 %vm8637_vm2, %v6331_v62  ;;  %vm3529_vm14 = vcmp.eq.s32.totalorder %v3457_v49, %v7431_v25 }
 0x279   : > { %v5274_v45 = vsel %vm3510_vm4, 1.0, %v9326_v43  ;;  %v5293_v48 = vsel %vm3529_vm14, 1.0, %v9326_v43 }
 0x27a   : > { %v6379_v15 = vpack.c.bf16 %v5275_v37, %v5274_v45 }
 0x27b   : > { %v3358_v30 = vpop.permute.xlu1 %3357  ;;  %v3313_v0 = vpop.permute.xlu0 %3312 }
 0x27c   : > { %vm3496_vm12 = vcmp.eq.s32.totalorder %v3358_v30, %v7431_v25  ;;  %6381 = vmatpush3.bf16.xpose.msk.msra.mxu1 %vm8637_vm2, %v6379_v15  ;;  %vm3481_vm3 = vcmp.eq.s32.totalorder %v3313_v0, %v7431_v25  ;;  %v3663_v30 = vld [vmem:[%s9075_s5 + $0x8] sm:$0xff] }
 0x27d   : > { %v5260_v10 = vsel %vm3496_vm12, 1.0, %v9326_v43  ;;  %v5245_v24 = vsel %vm3481_vm3, 1.0, %v9326_v43 }
 0x27e   : > { %v6334_v3 = vpack.c.bf16 %v5261_v4, %v5260_v10 }
 0x27f   : > { %v3454_v60 = vpop.permute.xlu1 %3453  ;;  %v3409_v58 = vpop.permute.xlu0 %3408 }
 0x280   : > { %vm3528_vm1 = vcmp.eq.s32.totalorder %v3454_v60, %v7431_v25  ;;  %6336 = vmatprep.subr.msk.bf16.mxu0 %vm8637_vm2, %v6334_v3  ;;  %vm3513_vm6 = vcmp.eq.s32.totalorder %v3409_v58, %v7431_v25 }
 0x281   : > { %v5292_v59 = vsel %vm3528_vm1, 1.0, %v9326_v43  ;;  %v5277_v16 = vsel %vm3513_vm6, 1.0, %v9326_v43 }
 0x282   : > { %v6382_v21 = vpack.c.bf16 %v5293_v48, %v5292_v59 }
 0x283   : > { %v3310_v35 = vpop.permute.xlu1 %3309  ;;  %v3367_v26 = vpop.permute.xlu0 %3366 }
 0x284   : > { %vm3480_vm15 = vcmp.eq.s32.totalorder %v3310_v35, %v7431_v25  ;;  %6384 = vmatprep.subr.msk.bf16.mxu1 %vm8637_vm2, %v6382_v21  ;;  %vm3499_vm0 = vcmp.eq.s32.totalorder %v3367_v26, %v7431_v25 }
 0x285   : > { %v5244_v38 = vsel %vm3480_vm15, 1.0, %v9326_v43  ;;  %v5263_v13 = vsel %vm3499_vm0, 1.0, %v9326_v43 }
 0x286   : > { %v6337_v47 = vpack.c.bf16 %v5245_v24, %v5244_v38 }
 0x287   : > { %v3406_v34 = vpop.permute.xlu1 %3405  ;;  %v3463_v41 = vpop.permute.xlu0 %3462 }
 0x288   : > { %vm3512_vm7 = vcmp.eq.s32.totalorder %v3406_v34, %v7431_v25  ;;  %6339 = vmatpush3.bf16.xpose.msk.msra.mxu0 %vm8637_vm2, %v6337_v47  ;;  %vm3531_vm5 = vcmp.eq.s32.totalorder %v3463_v41, %v7431_v25 }
 0x289   : > { %v5276_v2 = vsel %vm3512_vm7, 1.0, %v9326_v43  ;;  %v5295_v8 = vsel %vm3531_vm5, 1.0, %v9326_v43 }
 0x28a   : > { %v6385_v7 = vpack.c.bf16 %v5277_v16, %v5276_v2 }
 0x28b   : > { %v3364_v39 = vpop.permute.xlu1 %3363  ;;  %v3319_v9 = vpop.permute.xlu0 %3318 }
 0x28c   : > { %vm3498_vm11 = vcmp.eq.s32.totalorder %v3364_v39, %v7431_v25  ;;  %6387 = vmatpush3.bf16.xpose.msk.msra.mxu1 %vm8637_vm2, %v6385_v7  ;;  %vm3483_vm13 = vcmp.eq.s32.totalorder %v3319_v9, %v7431_v25 }
 0x28d   : > { %v5262_v31 = vsel %vm3498_vm11, 1.0, %v9326_v43  ;;  %v5247_v55 = vsel %vm3483_vm13, 1.0, %v9326_v43 }
 0x28e   : > { %v6340_v20 = vpack.c.bf16 %v5263_v13, %v5262_v31 }
 0x28f   : > { %v3460_v53 = vpop.permute.xlu1 %3459  ;;  %v3415_v56 = vpop.permute.xlu0 %3414 }
 0x290   : > { %vm3530_vm4 = vcmp.eq.s32.totalorder %v3460_v53, %v7431_v25  ;;  %6342 = vmatprep.subr.msk.bf16.mxu0 %vm8637_vm2, %v6340_v20  ;;  %vm3515_vm14 = vcmp.eq.s32.totalorder %v3415_v56, %v7431_v25 }
 0x291   : > { %v5294_v36 = vsel %vm3530_vm4, 1.0, %v9326_v43  ;;  %v5279_v12 = vsel %vm3515_vm14, 1.0, %v9326_v43 }
 0x292   : > { %v6388_v32 = vpack.c.bf16 %v5295_v8, %v5294_v36 }
 0x293   : > { %v3316_v42 = vpop.permute.xlu1 %3315  ;;  %v3373_v51 = vpop.permute.xlu0 %3372 }
 0x294   : > { %vm3482_vm12 = vcmp.eq.s32.totalorder %v3316_v42, %v7431_v25  ;;  %6390 = vmatprep.subr.msk.bf16.mxu1 %vm8637_vm2, %v6388_v32  ;;  %vm3501_vm3 = vcmp.eq.s32.totalorder %v3373_v51, %v7431_v25 }
 0x295   : > { %v5246_v50 = vsel %vm3482_vm12, 1.0, %v9326_v43  ;;  %v5265_v52 = vsel %vm3501_vm3, 1.0, %v9326_v43 }
 0x296   : > { %v6343_v46 = vpack.c.bf16 %v5247_v55, %v5246_v50 }
 0x297   : > { %v3412_v22 = vpop.permute.xlu1 %3411  ;;  %v3469_v44 = vpop.permute.xlu0 %3468 }
 0x298   : > { %vm3514_vm1 = vcmp.eq.s32.totalorder %v3412_v22, %v7431_v25  ;;  %6345 = vmatpush3.bf16.xpose.msk.msra.mxu0 %vm8637_vm2, %v6343_v46  ;;  %vm3533_vm6 = vcmp.eq.s32.totalorder %v3469_v44, %v7431_v25 }
 0x299   : > { %v5278_v6 = vsel %vm3514_vm1, 1.0, %v9326_v43  ;;  %v5297_v11 = vsel %vm3533_vm6, 1.0, %v9326_v43 }
 0x29a   : > { %v6391_v14 = vpack.c.bf16 %v5279_v12, %v5278_v6 }
 0x29b   : > { %v3370_v54 = vpop.permute.xlu1 %3369  ;;  %v3325_v18 = vpop.permute.xlu0 %3324 }
 0x29c   : > { %vm3500_vm15 = vcmp.eq.s32.totalorder %v3370_v54, %v7431_v25  ;;  %6393 = vmatpush3.bf16.xpose.msk.msra.mxu1 %vm8637_vm2, %v6391_v14  ;;  %vm3485_vm0 = vcmp.eq.s32.totalorder %v3325_v18, %v7431_v25 }
 0x29d   : > { %v5264_v5 = vsel %vm3500_vm15, 1.0, %v9326_v43  ;;  %v5249_v61 = vsel %vm3485_vm0, 1.0, %v9326_v43 }
 0x29e   : > { %v6346_v29 = vpack.c.bf16 %v5265_v52, %v5264_v5 }
 0x29f   : > { %v3466_v40 = vpop.permute.xlu1 %3465  ;;  %v3421_v27 = vpop.permute.xlu0 %3420 }
 0x2a0   : > { %vm3532_vm7 = vcmp.eq.s32.totalorder %v3466_v40, %v7431_v25  ;;  %6348 = vmatprep.subr.msk.bf16.mxu0 %vm8637_vm2, %v6346_v29  ;;  %vm3517_vm5 = vcmp.eq.s32.totalorder %v3421_v27, %v7431_v25 }
 0x2a1   : > { %v5296_v63 = vsel %vm3532_vm7, 1.0, %v9326_v43  ;;  %v5281_v37 = vsel %vm3517_vm5, 1.0, %v9326_v43 }
 0x2a2   : > { %v6394_v23 = vpack.c.bf16 %v5297_v11, %v5296_v63 }
 0x2a3   : > { %v3322_v57 = vpop.permute.xlu1 %3321 }
 0x2a4   : > { %vm3484_vm11 = vcmp.eq.s32.totalorder %v3322_v57, %v7431_v25  ;;  %6396 = vmatprep.subr.msk.bf16.mxu1 %vm8637_vm2, %v6394_v23  ;;  %v4077_v10 = vpop.permute.xlu0 %4076 }
 0x2a5   : > { %v5248_v62 = vsel %vm3484_vm11, 1.0, %v9326_v43 }
 0x2a6   : > { %v6349_v28 = vpack.c.bf16 %v5249_v61, %v5248_v62 }
 0x2a7   : > { %v3418_v49 = vpop.permute.xlu1 %3417 }
 0x2a8   : > { %vm3516_vm4 = vcmp.eq.s32.totalorder %v3418_v49, %v7431_v25  ;;  %6351 = vmatpush3.bf16.xpose.msk.msra.mxu0 %vm8637_vm2, %v6349_v28  ;;  %v3664_v25 = vld [vmem:[%s9075_s5 + $0x10] sm:$0xff]  ;;  %v4128_v33 = vpop.permute.xlu0 %4127 }
 0x2a9   : > { %v5280_v45 = vsel %vm3516_vm4, 1.0, %v9326_v43 }
 0x2aa   : > { %v6397_v15 = vpack.c.bf16 %v5281_v37, %v5280_v45 }
 0x2ac   : > { %6399 = vmatpush3.bf16.xpose.msk.msra.mxu1 %vm8637_vm2, %v6397_v15 }
 0x2af   : > { %5805 = vmatmul.mubr.msk.f32.vlgmr.msra.gmra.mrb[0].mxu0 %vm3666_vm10, %v8678_v1 }
 0x2b0   : > { %5806 = vmatprep.mubr.msk.f32.mxu0 %vm3666_vm10, %v3663_v30 }
 0x2b3   : > { %5807 = vmatmul.mubr.msk.f32.gmra.mrb[2].mxu0 %vm3666_vm10, %v3663_v30  ;;  %5845 = vmatmul.mubr.msk.f32.vlgmr.msra.gmra.mrb[0].mxu1 %vm3666_vm10, %v8678_v1  ;;  %v4072_v1 = vpop.permute.xlu1 %4071 }
 0x2b4   : > { %5808 = vmatprep.mubr.msk.f32.mxu0 %vm3666_vm10, %v3664_v25  ;;  %5846 = vmatprep.mubr.msk.f32.mxu1 %vm3666_vm10, %v3663_v30 }
 0x2b7   : > { %5809 = vmatmul.mubr.msk.f32.gmra.mrb[4].mxu0 %vm3666_vm10, %v3664_v25  ;;  %5847 = vmatmul.mubr.msk.f32.gmra.mrb[2].mxu1 %vm3666_vm10, %v3663_v30  ;;  %v4082_v60 = vpop.permute.xlu1 %4081 }
 0x2b8   : > { %5810 = vmatprep.mubr.msk.f32.mxu0 %vm3666_vm10, %v3665_v19  ;;  %5848 = vmatprep.mubr.msk.f32.mxu1 %vm3666_vm10, %v3664_v25 }
 0x2bb   : > { %5811 = vmatmul.mubr.msk.f32.gmra.mrb[6].mxu0 %vm3666_vm10, %v3665_v19  ;;  %5849 = vmatmul.mubr.msk.f32.gmra.mrb[4].mxu1 %vm3666_vm10, %v3664_v25  ;;  %v4087_v36 = vpop.permute.xlu1 %4086  ;;  %v4121_v25 = vld [vmem:[%s9077_s7] sm:$0xff] }
 0x2bc   : > { %5850 = vmatprep.mubr.msk.f32.mxu1 %vm3666_vm10, %v3665_v19  ;;  %4206 = vmatprep.mubr.f32.mxu0 %v9326_v43 }
 0x2bf   : > { %5851 = vmatmul.mubr.msk.f32.gmra.mrb[6].mxu1 %vm3666_vm10, %v3665_v19  ;;  %vm4135_vm10 = vcmask 261120  }
 0x2c0   : > { %4283 = vmatprep.mubr.f32.mxu1 %v9326_v43 }
 0x382   : > { %v3937_v0 = vpop.f32.mrb[0].mxu0 }
 0x383   : > { %v3939_v4 = vpop.f32.mrb[1].mxu0  ;;  %v4089_v3 = vadd.f32 %v4072_v1, %v3937_v0  ;;  %v4122_v0 = vld [vmem:[%s9077_s7 + $0x8] sm:$0xff] }
 0x384   : > { %v4090_v58 = vadd.f32 %v4072_v1, %v3939_v4  ;;  %v9376_v4 = vld [vmem:[#allocation65_spill] sm:$0xff] }
 0x385   : > { %v4105_v38 = vmax.f32 %v4089_v3, 0.0  ;;  %v9378_v3 = vld [vmem:[#allocation76_spill] sm:$0xff] }
 0x386   : > { %v3943_v48 = vpop.f32.mrb[2].mxu0  ;;  %v4026_v59 = vpop.f32.mrb[0].mxu1  ;;  %v4106_v41 = vmax.f32 %v4090_v58, 0.0  ;;  %v9380_v58 = vld [vmem:[#allocation75_spill] sm:$0xff] }
 0x387   : > { %v4093_v21 = vadd.f32 %v4077_v10, %v3943_v48  ;;  %v3945_v35 = vpop.f32.mrb[3].mxu0  ;;  %v4028_v26 = vpop.f32.mrb[1].mxu1  ;;  %v4091_v34 = vadd.f32 %v4072_v1, %v4026_v59  ;;  %v9381_v48 = vld [vmem:[#allocation12_spill] sm:$0xff]  ;;  %v9382_v59 = vld [vmem:[#allocation77_spill] sm:$0xff] }
 0x388   : > { %v4094_v24 = vadd.f32 %v4077_v10, %v3945_v35  ;;  %v4092_v2 = vadd.f32 %v4072_v1, %v4028_v26  ;;  %v9375_v1 = vld [vmem:[#allocation66_spill] sm:$0xff]  ;;  %v9385_v26 = vld [vmem:[#allocation16_spill] sm:$0xff] }
 0x389   : > { %v4109_v47 = vmax.f32 %v4093_v21, 0.0  ;;  %v4107_v8 = vmax.f32 %v4091_v34, 0.0  ;;  %v9383_v21 = vld [vmem:[#allocation15_spill] sm:$0xff]  ;;  %v9384_v35 = vld [vmem:[#allocation78_spill] sm:$0xff] }
 0x38a   : > { %v4110_v16 = vmax.f32 %v4094_v24, 0.0  ;;  %v3949_v7 = vpop.f32.mrb[4].mxu0  ;;  %v4032_v39 = vpop.f32.mrb[2].mxu1  ;;  %v4108_v51 = vmax.f32 %v4092_v2, 0.0  ;;  %v9386_v24 = vld [vmem:[#allocation79_spill] sm:$0xff]  ;;  %v9389_v34 = vld [vmem:[#allocation22_spill] sm:$0xff] }
 0x38b   : > { %v6402_v9 = vpack.c.bf16 %v4109_v47, %v4105_v38  ;;  %v4095_v13 = vadd.f32 %v4077_v10, %v4032_v39  ;;  %v3951_v31 = vpop.f32.mrb[5].mxu0  ;;  %v4034_v20 = vpop.f32.mrb[3].mxu1  ;;  %v4097_v32 = vadd.f32 %v4082_v60, %v3949_v7  ;;  %v9387_v38 = vld [vmem:[#allocation19_spill] sm:$0xff]  ;;  %v9388_v47 = vld [vmem:[#allocation80_spill] sm:$0xff]  ;;  %v9392_v2 = vld [vmem:[#allocation82_spill] sm:$0xff] }
 0x38c   : > { %v6400_v53 = vpack.c.bf16 %v4110_v16, %v4106_v41  ;;  %v4096_v56 = vadd.f32 %v4077_v10, %v4034_v20  ;;  %v4098_v55 = vadd.f32 %v4082_v60, %v3951_v31  ;;  %v9377_v10 = vld [vmem:[#allocation6_spill] sm:$0xff]  ;;  %v9390_v41 = vld [vmem:[#allocation81_spill] sm:$0xff]  ;;  %v9391_v16 = vld [vmem:[#allocation23_spill] sm:$0xff] }
 0x38d   : > { %v4111_v42 = vmax.f32 %v4095_v13, 0.0  ;;  %v4113_v5 = vmax.f32 %v4097_v32, 0.0  ;;  %v9393_v7 = vld [vmem:[#allocation26_spill] sm:$0xff]  ;;  %v9394_v39 = vld [vmem:[#allocation49_spill] sm:$0xff]  ;;  %v9396_v13 = vld [vmem:[#allocation48_spill] sm:$0xff] }
 0x38e   : > { %v4112_v50 = vmax.f32 %v4096_v56, 0.0  ;;  %v3955_v46 = vpop.f32.mrb[6].mxu0  ;;  %v4038_v22 = vpop.f32.mrb[4].mxu1  ;;  %6401 = vmatprep.subr.bf16.mxu0 %v6400_v53  ;;  %v4114_v40 = vmax.f32 %v4098_v55, 0.0  ;;  %v9397_v31 = vld [vmem:[#allocation30_spill] sm:$0xff]  ;;  %v9398_v20 = vld [vmem:[#allocation51_spill] sm:$0xff] }
 0x38f   : > { %v6410_v44 = vpack.c.bf16 %v4111_v42, %v4107_v8  ;;  %v4101_v12 = vadd.f32 %v4087_v36, %v3955_v46  ;;  %v3957_v6 = vpop.f32.mrb[7].mxu0  ;;  %v4040_v14 = vpop.f32.mrb[5].mxu1  ;;  %6403 = vmatpush1.bf16.msra.mxu0 %v6402_v9  ;;  %v4099_v29 = vadd.f32 %v4082_v60, %v4038_v22  ;;  %v9395_v9 = vld [vmem:[#allocation27_spill] sm:$0xff]  ;;  %v9400_v56 = vld [vmem:[#allocation50_spill] sm:$0xff]  ;;  %v4305_v55 = vld [vmem:[%s9080_s10] sm:$0xff] }
 0x390   : > { %v6408_v54 = vpack.c.bf16 %v4112_v50, %v4108_v51  ;;  %v4102_v52 = vadd.f32 %v4087_v36, %v3957_v6  ;;  %v4100_v63 = vadd.f32 %v4082_v60, %v4040_v14  ;;  %v9379_v60 = vld [vmem:[#allocation11_spill] sm:$0xff]  ;;  %v9401_v8 = vld [vmem:[#allocation34_spill] sm:$0xff]  ;;  %v4133_v46 = vpop.permute.xlu1 %4132 }
 0x391   : > { %v4117_v18 = vmax.f32 %v4101_v12, 0.0  ;;  %v4115_v49 = vmax.f32 %v4099_v29, 0.0  ;;  %v9399_v53 = vld [vmem:[#allocation31_spill] sm:$0xff]  ;;  %v9404_v42 = vld [vmem:[#allocation54_spill] sm:$0xff] }
 0x392   : > { %v4118_v11 = vmax.f32 %v4102_v52, 0.0  ;;  %v4044_v23 = vpop.f32.mrb[6].mxu1  ;;  %6409 = vmatprep.subr.bf16.mxu1 %v6408_v54  ;;  %v4116_v45 = vmax.f32 %v4100_v63, 0.0  ;;  %v9403_v32 = vld [vmem:[#allocation35_spill] sm:$0xff] }
 0x393   : > { %v6406_v27 = vpack.c.bf16 %v4117_v18, %v4113_v5  ;;  %v4103_v57 = vadd.f32 %v4087_v36, %v4044_v23  ;;  %v4046_v61 = vpop.f32.mrb[7].mxu1  ;;  %6411 = vmatpush1.bf16.msra.mxu1 %v6410_v44  ;;  %v9405_v51 = vld [vmem:[#allocation39_spill] sm:$0xff] }
 0x394   : > { %v6404_v62 = vpack.c.bf16 %v4118_v11, %v4114_v40  ;;  %v4104_v28 = vadd.f32 %v4087_v36, %v4046_v61  ;;  %v9402_v36 = vld [vmem:[#allocation55_spill] sm:$0xff] }
 0x395   : > { %v4119_v37 = vmax.f32 %v4103_v57, 0.0 }
 0x396   : > { %v4120_v15 = vmax.f32 %v4104_v28, 0.0  ;;  %6405 = vmatprep.subr.bf16.mxu0 %v6404_v62 }
 0x397   : > { %v6414_v30 = vpack.c.bf16 %v4119_v37, %v4115_v49  ;;  %6407 = vmatpush1.bf16.msra.mxu0 %v6406_v27 }
 0x398   : > { %v6412_v19 = vpack.c.bf16 %v4120_v15, %v4116_v45  ;;  %6418 = vmatprep.subr.msk.bf16.mxu0 %vm7700_vm9, %v9375_v1  ;;  %v9406_v1 = vlaneseq }
 0x39a   : > { %5370 = vmatmul.mubr.msk.f32.vlgmr.msra.gmra.mrb[8].mxu0 %vm4135_vm10, %v4121_v25  ;;  %6413 = vmatprep.subr.bf16.mxu1 %v6412_v19 }
 0x39b   : > { %6415 = vmatpush1.bf16.msra.mxu1 %v6414_v30  ;;  %4212 = vmatprep.mubr.f32.mxu0 %v9326_v43 }
 0x39c   : > { %6466 = vmatprep.subr.msk.bf16.mxu1 %vm7700_vm9, %v9376_v4 }
 0x39e   : > { %5371 = vmatmul.mubr.msk.f32.gmra.mrb[10].mxu0 %vm4135_vm10, %v4122_v0  ;;  %5372 = vmatmul.mubr.msk.f32.vlgmr.msra.gmra.mrb[8].mxu1 %vm4135_vm10, %v4121_v25  ;;  %v4304_v25 = vld [vmem:[%s9079_s9] sm:$0xff] }
 0x39f   : > { %4289 = vmatprep.mubr.f32.mxu1 %v9326_v43  ;;  %5884 = vmatprep.mubr.msk.f32.mxu0 %vm1321_vm8, %v4305_v55 }
 0x3a0   : > { %6421 = vmatpush3.bf16.xpose.msk.msra.mxu0 %vm7700_vm9, %v9377_v10  ;;  %v4601_v10 = vpop.permute.xlu0 %4600 }
 0x3a1   : > { %6424 = vmatprep.subr.msk.bf16.mxu0 %vm7700_vm9, %v9378_v3 }
 0x3a2   : > { %5373 = vmatmul.mubr.msk.f32.gmra.mrb[10].mxu1 %vm4135_vm10, %v4122_v0  ;;  %v4604_v0 = vshrl.u32 %v9406_v1, 7 }
 0x3a3   : > { %5918 = vmatprep.mubr.msk.f32.mxu1 %vm1321_vm8, %v4305_v55 }
 0x3a4   : > { %6469 = vmatpush3.bf16.xpose.msk.msra.mxu1 %vm7700_vm9, %v9379_v60  ;;  %v4605_v4 = vsub.s32 0, %v4604_v0 }
 0x3a5   : > { %6472 = vmatprep.subr.msk.bf16.mxu1 %vm7700_vm9, %v9380_v58 }
 0x3a6   : > { %v4606_v3 = vrot.slane %v4601_v10, %v4605_v4 }
 0x3a8   : > { %6427 = vmatpush3.bf16.xpose.msk.msra.mxu0 %vm7700_vm9, %v9381_v48 }
 0x3a9   : > { %6430 = vmatprep.subr.msk.bf16.mxu0 %vm7700_vm9, %v9382_v59 }
 0x3ac   : > { %6475 = vmatpush3.bf16.xpose.msk.msra.mxu1 %vm7700_vm9, %v9383_v21 }
 0x3ad   : > { %6478 = vmatprep.subr.msk.bf16.mxu1 %vm7700_vm9, %v9384_v35 }
 0x3b0   : > { %6433 = vmatpush3.bf16.xpose.msk.msra.mxu0 %vm7700_vm9, %v9385_v26 }
 0x3b1   : > { %6436 = vmatprep.subr.msk.bf16.mxu0 %vm7700_vm9, %v9386_v24 }
 0x3b4   : > { %6481 = vmatpush3.bf16.xpose.msk.msra.mxu1 %vm7700_vm9, %v9387_v38 }
 0x3b5   : > { %6484 = vmatprep.subr.msk.bf16.mxu1 %vm7700_vm9, %v9388_v47 }
 0x3b8   : > { %6439 = vmatpush3.bf16.xpose.msk.msra.mxu0 %vm7700_vm9, %v9389_v34 }
 0x3b9   : > { %6442 = vmatprep.subr.msk.bf16.mxu0 %vm7700_vm9, %v9390_v41 }
 0x3bc   : > { %6487 = vmatpush3.bf16.xpose.msk.msra.mxu1 %vm7700_vm9, %v9391_v16 }
 0x3bd   : > { %6490 = vmatprep.subr.msk.bf16.mxu1 %vm7700_vm9, %v9392_v2 }
 0x3c0   : > { %6445 = vmatpush3.bf16.xpose.msk.msra.mxu0 %vm7700_vm9, %v9393_v7 }
 0x3c1   : > { %6448 = vmatprep.subr.msk.bf16.mxu0 %vm7700_vm9, %v9394_v39 }
 0x3c4   : > { %6493 = vmatpush3.bf16.xpose.msk.msra.mxu1 %vm7700_vm9, %v9395_v9 }
 0x3c5   : > { %6496 = vmatprep.subr.msk.bf16.mxu1 %vm7700_vm9, %v9396_v13 }
 0x3c8   : > { %6451 = vmatpush3.bf16.xpose.msk.msra.mxu0 %vm7700_vm9, %v9397_v31 }
 0x3c9   : > { %6454 = vmatprep.subr.msk.bf16.mxu0 %vm7700_vm9, %v9398_v20 }
 0x3cc   : > { %6499 = vmatpush3.bf16.xpose.msk.msra.mxu1 %vm7700_vm9, %v9399_v53 }
 0x3cd   : > { %6502 = vmatprep.subr.msk.bf16.mxu1 %vm7700_vm9, %v9400_v56 }
 0x3d0   : > { %6457 = vmatpush3.bf16.xpose.msk.msra.mxu0 %vm7700_vm9, %v9401_v8 }
 0x3d1   : > { %6460 = vmatprep.subr.msk.bf16.mxu0 %vm7700_vm9, %v9402_v36 }
 0x3d4   : > { %6505 = vmatpush3.bf16.xpose.msk.msra.mxu1 %vm7700_vm9, %v9403_v32  ;;  %v6878_v32 = vmov 1966171168  }
 0x3d5   : > { %6508 = vmatprep.subr.msk.bf16.mxu1 %vm7700_vm9, %v9404_v42  ;;  %v4646_v42 = vunpack.c.l.s4 %v6878_v32 }
 0x3d8   : > { %6463 = vmatpush3.bf16.xpose.msk.msra.mxu0 %vm7700_vm9, %v9330_v17 }
 0x3dc   : > { %6511 = vmatpush3.bf16.xpose.msk.msra.mxu1 %vm7700_vm9, %v9405_v51  ;;  %vm4670_vm9 = vcmp.lt.s32.totalorder %v9406_v1, 512 }
 0x3df   : > { %5885 = vmatmul.mubr.msk.f32.vlgmr.msra.gmra.mrb[12].mxu0 %vm1321_vm8, %v4305_v55 }
 0x3e0   : > { %4519 = vmatprep.mubr.f32.mxu0 %v9326_v43 }
 0x3e3   : > { %5919 = vmatmul.mubr.msk.f32.vlgmr.msra.gmra.mrb[12].mxu1 %vm1321_vm8, %v4305_v55  ;;  %vm4451_vm8 = vcmask 130048   ;;  %v4647_v55 = vunpack.c.0.s8 %v4646_v42 }
 0x3e4   : > { %4590 = vmatprep.mubr.f32.mxu1 %v9326_v43 }
 0x46d   : > { %v4208_v17 = vpop.f32.mrb[8].mxu0 }
 0x46e   : > { %v4210_v50 = vpop.f32.mrb[9].mxu0  ;;  %v4209_v22 = vadd.f32 %v4208_v17, %v4128_v33 }
 0x46f   : > { %v4211_v44 = vadd.f32 %v4210_v50, %v4128_v33 }
 0x470   : > { %v4296_v18 = vmax.f32 %v4209_v22, 0.0 }
 0x471   : > { %v4214_v12 = vpop.f32.mrb[10].mxu0  ;;  %v4285_v6 = vpop.f32.mrb[8].mxu1  ;;  %v4297_v11 = vmax.f32 %v4211_v44, 0.0 }
 0x472   : > { %v4215_v14 = vadd.f32 %v4214_v12, %v4133_v46  ;;  %v4216_v54 = vpop.f32.mrb[11].mxu0  ;;  %v4287_v52 = vpop.f32.mrb[9].mxu1  ;;  %v4286_v40 = vadd.f32 %v4285_v6, %v4128_v33 }
 0x473   : > { %v4217_v5 = vadd.f32 %v4216_v54, %v4133_v46  ;;  %v4288_v23 = vadd.f32 %v4287_v52, %v4128_v33 }
 0x474   : > { %v4300_v29 = vmax.f32 %v4215_v14, 0.0  ;;  %v4298_v49 = vmax.f32 %v4286_v40, 0.0 }
 0x475   : > { %v4301_v63 = vmax.f32 %v4217_v5, 0.0  ;;  %v4291_v27 = vpop.f32.mrb[10].mxu1  ;;  %v4299_v45 = vmax.f32 %v4288_v23, 0.0 }
 0x476   : > { %v6514_v43 = vpack.c.bf16 %v4300_v29, %v4296_v18  ;;  %v4292_v57 = vadd.f32 %v4291_v27, %v4133_v46  ;;  %v4293_v61 = vpop.f32.mrb[11].mxu1 }
 0x477   : > { %v6512_v62 = vpack.c.bf16 %v4301_v63, %v4297_v11  ;;  %v4294_v28 = vadd.f32 %v4293_v61, %v4133_v46  ;;  %v4650_v46 = vsub.s32 %v4647_v55, %v4604_v0 }
 0x478   : > { %v4302_v37 = vmax.f32 %v4292_v57, 0.0 }
 0x479   : > { %v4303_v15 = vmax.f32 %v4294_v28, 0.0  ;;  %6513 = vmatprep.subr.bf16.mxu0 %v6512_v62 }
 0x47a   : > { %v6518_v30 = vpack.c.bf16 %v4302_v37, %v4298_v49  ;;  %6515 = vmatpush1.bf16.msra.mxu0 %v6514_v43 }
 0x47b   : > { %v6516_v19 = vpack.c.bf16 %v4303_v15, %v4299_v45 }
 0x47d   : > { %5440 = vmatmul.mubr.msk.f32.vlgmr.msra.gmra.mrb[12].mxu0 %vm4451_vm8, %v4304_v25  ;;  %6517 = vmatprep.subr.bf16.mxu1 %v6516_v19 }
 0x47e   : > { %6519 = vmatpush1.bf16.msra.mxu1 %v6518_v30 }
 0x481   : > { %5441 = vmatmul.mubr.msk.f32.vlgmr.msra.gmra.mrb[12].mxu1 %vm4451_vm8, %v4304_v25 }
 0x550   : > { %v4521_v60 = vpop.f32.mrb[12].mxu0 }
 0x551   : > { %v4607_v58 = vadd.f32 %v4606_v3, %v4521_v60  ;;  %v4523_v48 = vpop.f32.mrb[13].mxu0 }
 0x552   : > { %v4608_v59 = vadd.f32 %v4606_v3, %v4523_v48 }
 0x553   : > { %v5442_v21 = vmul.f32 -0.5, %v4607_v58 }
 0x554   : > { %v5443_v35 = vmul.f32 -0.5, %v4608_v59  ;;  %v4592_v26 = vpop.f32.mrb[12].mxu1 }
 0x555   : > { %v4619_v24 = vmul.f32 1.442695, %v5442_v21  ;;  %v4609_v38 = vadd.f32 %v4606_v3, %v4592_v26  ;;  %v4594_v47 = vpop.f32.mrb[13].mxu1 }
 0x556   : > { %v4621_v34 = vmul.f32 1.442695, %v5443_v35  ;;  %v4610_v41 = vadd.f32 %v4606_v3, %v4594_v47 }
 0x557   : > { %6772 = vpow2.f32 %v4619_v24  ;;  %v5444_v16 = vmul.f32 -0.5, %v4609_v38 }
 0x558   : > { %6774 = vpow2.f32 %v4621_v34  ;;  %v5445_v2 = vmul.f32 -0.5, %v4610_v41 }
 0x559   : > { %v4623_v7 = vmul.f32 1.442695, %v5444_v16 }
 0x55a   : > { %v4625_v39 = vmul.f32 1.442695, %v5445_v2 }
 0x55b   : > { %6776 = vpow2.f32 %v4623_v7 }
 0x55c   : > { %6778 = vpow2.f32 %v4625_v39 }
 0x561   : > { %v6773_v9 = vpop.eup %6772 }
 0x562   : > { %v6775_v13 = vpop.eup %6774  ;;  %v4627_v31 = vadd.f32 1.0, %v6773_v9 }
 0x563   : > { %v4628_v20 = vadd.f32 1.0, %v6775_v13 }
 0x564   : > { %6780 = vrcp.f32 %v4627_v31 }
 0x565   : > { %v6777_v53 = vpop.eup %6776  ;;  %6782 = vrcp.f32 %v4628_v20 }
 0x566   : > { %v6779_v56 = vpop.eup %6778  ;;  %v4629_v8 = vadd.f32 1.0, %v6777_v53 }
 0x567   : > { %v4630_v36 = vadd.f32 1.0, %v6779_v56 }
 0x568   : > { %6784 = vrcp.f32 %v4629_v8 }
 0x569   : > { %6786 = vrcp.f32 %v4630_v36 }
 0x56e   : > { %v6781_v51 = vpop.eup %6780 }
 0x56f   : > { %v6783_v17 = vpop.eup %6782 }
 0x570   : > { %v4643_v50 = vcombine.low %v6781_v51, %v6783_v17 }
 0x572   : > { %v6785_v33 = vpop.eup %6784  ;;  %v4651_v12 = vrot.slane %v4643_v50, %v4650_v46 }
 0x573   : > { %v6787_v22 = vpop.eup %6786 }
 0x574   : > { %v4644_v44 = vcombine.low %v6785_v33, %v6787_v22 }
 0x576   : > { %v4658_v6 = vrot.slane %v4644_v44, %v4650_v46 }
 0x578   : > { %v4659_v14 = vcombine.low %v4651_v12, %v4658_v6 }
 0x57a   : > { %v4666_v54 = vrot.slane %v4659_v14, %v4650_v46 }
 0x57c   : > { %4672 = vst.msk [vmem:[%s409_s27] sm:$0xf] %vm4670_vm9, %v4666_v54 }
 0x57d   : > { %6821 = shalt.err (!%p6818_p3)
}
 0x57e   : > { %s6822_s16 = scalar_lea.hbm %s9028_s18, 64  ;;  %s6826_s30 = scalar_lea.hbm %s9082_s12, 128 }
 0x57f   : > { %p6823_p4 = scmp.ne.s32.totalorder %s9028_s18, %s6822_s16  ;;  %p6827_p9 = scmp.lt.u32.totalorder %s9028_s18, %s9082_s12 }
 0x580   : > { %p6828_p10 = scmp.lt.u32.totalorder %s6826_s30, %s6822_s16  ;;  %p6830_p12 = scmp.lt.u32.totalorder %s6822_s16, %s9028_s18 }
 0x581   : > { %p6824_p7 = pnand %p6823_p4, %p6983_p5 }
 0x582   : > { %p6829_p11 = por %p6828_p10, %p6827_p9 }
 0x583   : > { %p6825_p8 = pneg %p6824_p7 }
 0x584   : > { %p6831_p13 = por %p6830_p12, %p6829_p11 }
 0x586   : > { %p6832_p0 = pnand %p6831_p13, %p6825_p8 }
 0x588   : > { %6835 = shalt.err (!%p6832_p0)
}
 0x589   : > { %6716 = dma.vmem_to_hbm [thread:$0]  (%p6983_p5), %s9030_s29, 64, %s9028_s18, %s4674_s19  }
 0x58a PF: > { %p6722_p1 = scmp.ge.s32.totalorder %s6870_s26, 2  ;;  %s4700_s0 = sand.u32 1, %s6858_s23  }
 0x58b   : > { %s4701_s20 = scalar_lea.sflag [#allocation4], %s4700_s0 }
 0x58c   : > { %p6719_p2 = pnand %p6722_p1, %p6987_p6 }
 0x58e   : > { %6853 = dma.done.wait (!%p6719_p2), %s4701_s20, 64  }
 0x58f   : > { %6855 = vsyncadd (!%p6719_p2), %s4701_s20, 4294967232  ;;  %p24_p3 = scmp.ge.s32.totalorder %s6971_s28, 4   ;;  %s9407_s23 = smov %s6862_s24 }
 0x590   : > { %s9408_s24 = smov %s6866_s25  ;;  %s9409_s25 = smov %s6981_s13 }
 0x591   : > { %s9410_s26 = smov %s6971_s28  ;;  %26 = sbr.rel (!%p24_p3) target bundleno = 6 (0x6), region = 103 }
 0x598   :  { %4706 = vsyncpa [#allocation4], 1 }
 0x599   :  { %4708 = vsyncpa [#allocation4 + $0x1], 1 }

</bundles_post_ra>
